<compile_context>
chip_gen: v7x
topology: tpu7x:2x2x1
jax: 0.10.0
libtpu: 0.0.40
codegen_flags: <defaults>
</compile_context>

<pallas_src>
import functools

import numpy as np
import jax
import jax.numpy as jnp
from jax.experimental import pallas as pl
from jax.experimental.pallas import tpu as pltpu


def _round_up(x, m):
    return ((x + m - 1) // m) * m


# ---------------------------------------------------------------------------
# Pallas kernels
# ---------------------------------------------------------------------------

def _conv_mm_t_kernel(wt_ref, at_ref, o_ref):
    """(Cout,K) bf16 x (K,tn) bf16 -> (Cout,tn) f32, lane-dense store."""
    o_ref[...] = jnp.dot(wt_ref[...], at_ref[...],
                         preferred_element_type=jnp.float32)


def _conv_mm_t_bias_kernel(wt_ref, at_ref, b_ref, o_ref):
    """Same as above plus a per-output-channel bias (broadcast over lanes)."""
    o_ref[...] = jnp.dot(wt_ref[...], at_ref[...],
                         preferred_element_type=jnp.float32) + b_ref[...]


def _convlstm_seq_kernel(ccx_ref, wbig_ref, h_out_ref, h_scr, c_scr, *, phpad):
    """Full ConvLSTM recurrence: one grid step per timestep, h/c live in VMEM.

    ccx_ref : (Bpad, 4*phpad) precomputed input-to-gate conv (+bias) for step t,
              gate-major, 128-lane-aligned layout (pad columns are zero).
    wbig_ref: (phpad, 4*phpad) bf16 block-Toeplitz matrix implementing the
              hidden-to-gate convolution; constant index_map -> VMEM resident.
    """
    t = pl.program_id(0)

    @pl.when(t == 0)
    def _():
        h_scr[...] = jnp.zeros_like(h_scr)
        c_scr[...] = jnp.zeros_like(c_scr)

    # bf16 operands halve the MXU weight-push bytes; accumulate in f32.
    cc = jnp.dot(h_scr[...].astype(jnp.bfloat16), wbig_ref[...],
                 preferred_element_type=jnp.float32) + ccx_ref[...]

    def sig(z):  # numerically stable sigmoid (tanh runs on the EUP)
        return 0.5 * (jnp.tanh(0.5 * z) + 1.0)

    i = sig(cc[:, 0 * phpad:1 * phpad])
    f = sig(cc[:, 1 * phpad:2 * phpad])
    o = sig(cc[:, 2 * phpad:3 * phpad])
    g = jnp.tanh(cc[:, 3 * phpad:4 * phpad])

    c_new = f * c_scr[...] + i * g
    h_new = o * jnp.tanh(c_new)
    c_scr[...] = c_new
    h_scr[...] = h_new
    h_out_ref[...] = h_new


# ---------------------------------------------------------------------------
# Conv2d via K-major im2col + lane-dense Pallas matmul
# ---------------------------------------------------------------------------

def conv2d_pallas_t(x, w, b, stride, pad_h, pad_w, negative_slope=None,
                    tn_max=1536):
    """Channel-major Conv2d as im2col + Pallas MXU matmul with lane-dense output.

    x: (Cin, N, H, W) f32; w: (Cout, Cin, kh, kw) PyTorch layout; b: (Cout,) or
    None (drop bias when a training-mode BN follows: its mean subtraction
    cancels any per-channel constant exactly).
    negative_slope: LeakyReLU applied to the conv INPUT (blockUNet places the
    activation before the conv); applied once here, not to replicated patches.
    Returns (Cout, N, Ho, Wo) f32.
    """
    Cin, N, H, W = x.shape
    Cout, _, kh, kw = w.shape
    sh, sw = stride
    if negative_slope is not None:
        x = jnp.where(x > 0, x, x * negative_slope)
    # bf16 patches/weights halve the dominant HBM->VMEM DMA traffic; the MXU
    # accumulates in f32 via preferred_element_type.
    x = x.astype(jnp.bfloat16)
    xp = jnp.pad(x, ((0, 0), (0, 0), pad_h, pad_w))
    Hp = H + pad_h[0] + pad_h[1]
    Wp = W + pad_w[0] + pad_w[1]
    Ho = (Hp - kh) // sh + 1
    Wo = (Wp - kw) // sw + 1

    # K-major patch matrix (K, M): built straight from the channel-major frames
    # so no minor-dim transpose of the big patch matrix is ever materialized.
    taps = [xp[:, :, i:i + Ho * sh:sh, j:j + Wo * sw:sw]
            for i in range(kh) for j in range(kw)]
    K = kh * kw * Cin
    M = N * Ho * Wo
    At = jnp.stack(taps, axis=0).reshape(K, M)
    # Weight as (Cout, K) with the same (ki, kj, cin) K-order.
    Wt = jnp.transpose(w, (0, 2, 3, 1)).reshape(Cout, K).astype(jnp.bfloat16)

    # Lane axis = M: pad to a multiple of 128, pick few fat tiles, but keep the
    # "parallel" grid at >= 2 steps when possible so v7x's two TCs share work.
    Mp = _round_up(M, 128)
    tn = min(tn_max, Mp)
    if Mp >= 256:
        tn = min(tn, _round_up(Mp // 2, 128))
    grid_m = pl.cdiv(Mp, tn)
    Mp = grid_m * tn
    if Mp != M:
        At = jnp.pad(At, ((0, 0), (0, Mp - M)))

    in_specs = [
        pl.BlockSpec((Cout, K), lambda i: (0, 0)),   # weight, VMEM resident
        pl.BlockSpec((K, tn), lambda i: (0, i)),     # patch tile
    ]
    args = [Wt, At]
    if b is not None:
        in_specs.append(pl.BlockSpec((Cout, 1), lambda i: (0, 0)))
        args.append(b.reshape(Cout, 1).astype(jnp.float32))
        kernel = _conv_mm_t_bias_kernel
    else:
        kernel = _conv_mm_t_kernel

    # TODO(synk): im2col is still materialized by XLA in HBM; fully fusing it
    #   (halo-tiled input DMA + per-tap accumulation) would cut patch traffic
    #   further (mostly a v5e win) but needs manual DMA; left out for robustness.
    out = pl.pallas_call(
        kernel,
        out_shape=jax.ShapeDtypeStruct((Cout, Mp), jnp.float32),
        grid=(grid_m,),
        in_specs=in_specs,
        out_specs=pl.BlockSpec((Cout, tn), lambda i: (0, i)),
        compiler_params=pltpu.CompilerParams(dimension_semantics=("parallel",)),
    )(*args)

    return out[:, :M].reshape(Cout, N, Ho, Wo)


def batchnorm_per_frame(x, B, T, eps=1e-5):
    """Training-mode BatchNorm2d of a fresh module (gamma=1, beta=0).

    The reference applies BN inside the per-timestep loop, so statistics are
    over (batch, H, W) of each frame separately; x is channel-major (C, B*T, .)
    so folding T into the batch for the conv does not change those statistics.
    """
    C, N, Ho, Wo = x.shape
    xs = x.reshape(C, B, T, Ho, Wo)
    mean = jnp.mean(xs, axis=(1, 3, 4), keepdims=True)
    var = jnp.mean(jnp.square(xs - mean), axis=(1, 3, 4), keepdims=True)
    return ((xs - mean) * jax.lax.rsqrt(var + eps)).reshape(C, N, Ho, Wo)


# ---------------------------------------------------------------------------
# ConvLSTM hidden-to-gate conv as a block-Toeplitz matrix
# ---------------------------------------------------------------------------

def _hidden_conv_matrix(wl_h, Ho, Wo, Ppad, hid, kh=4, kw=4, pad_top=1, pad_left=1):
    """(Ppad*hid, 4*Ppad*hid) matrix so that, with h laid out as
    h[b, p*hid + ch] (p = y*Wo + x), h @ Wbig gives the hidden-to-gate 4x4 conv
    output in gate-major layout [g, p_out, ch_out].  Pad rows/cols are zero."""
    ind = np.zeros((Ppad, Ppad, kh, kw), np.float32)
    for yo in range(Ho):
        for xo in range(Wo):
            p_out = yo * Wo + xo
            for ki in range(kh):
                for kj in range(kw):
                    yi = yo - pad_top + ki
                    xi = xo - pad_left + kj
                    if 0 <= yi < Ho and 0 <= xi < Wo:
                        ind[yi * Wo + xi, p_out, ki, kj] = 1.0
    wh = wl_h.reshape(4, hid, hid, kh, kw)          # (gate, co, ci, ki, kj)
    wh = jnp.transpose(wh, (0, 3, 4, 2, 1))         # (gate, ki, kj, ci, co)
    blk = jnp.einsum('pqij,gijcd->pcgqd', ind, wh)  # (p_in, ci, gate, p_out, co)
    return blk.reshape(Ppad * hid, 4 * Ppad * hid)


# ---------------------------------------------------------------------------
# Parameters (deterministic init, PyTorch-like uniform bounds)
# ---------------------------------------------------------------------------

def init_params(key, channels=8):
    def conv_p(k, cout, cin, kh, kw):
        k1, k2 = jax.random.split(k)
        bound = 1.0 / jnp.sqrt(jnp.float32(cin * kh * kw))
        w = jax.random.uniform(k1, (cout, cin, kh, kw), jnp.float32, -bound, bound)
        b = jax.random.uniform(k2, (cout,), jnp.float32, -bound, bound)
        return w, b

    keys = jax.random.split(key, 6)
    p = {}
    p['w1'], p['b1'] = conv_p(keys[0], channels, 12, 4, 4)
    p['w2'], p['b2'] = conv_p(keys[1], channels * 2, channels, 4, 4)
    p['w3'], p['b3'] = conv_p(keys[2], channels * 2, channels * 2, 4, 4)
    p['w4'], p['b4'] = conv_p(keys[3], channels * 4, channels * 2, 5, 5)
    p['w5'], p['b5'] = conv_p(keys[4], channels * 8, channels * 4, 2, 3)
    # ConvLSTM conv: in = input_dim + hidden_dim = 8c+4c, out = 4*hidden_dim.
    p['wl'], p['bl'] = conv_p(keys[5], 4 * channels * 4, channels * 8 + channels * 4, 4, 4)
    return p


# ---------------------------------------------------------------------------
# Forward pass (mirrors CnnEncoder_ConvLSTM.forward)
# ---------------------------------------------------------------------------

def forward(params, x_3d):
    """x_3d: (B, T, 12, H, W) float32. Returns (B, T, hid, H', W')."""
    B, T, Cin, H, W = x_3d.shape

    # ---- Encoder: fold T into the batch; channel-major frames so every conv
    #      output is stored lane-dense (Cout on sublanes, B*T*H*W on lanes).
    x = jnp.transpose(x_3d.reshape(B * T, Cin, H, W), (1, 0, 2, 3))  # (C,N,H,W)
    out1 = conv2d_pallas_t(x, params['w1'], params['b1'], (2, 2), (1, 1), (1, 1))
    # conv2..conv5: bias dropped (cancelled exactly by the following BN mean).
    out2 = batchnorm_per_frame(conv2d_pallas_t(out1, params['w2'], None,
                                               (2, 2), (1, 1), (1, 1), 0.2), B, T)
    out3 = batchnorm_per_frame(conv2d_pallas_t(out2, params['w3'], None,
                                               (2, 2), (1, 1), (1, 1), 0.2), B, T)
    out4 = batchnorm_per_frame(conv2d_pallas_t(out3, params['w4'], None,
                                               (1, 1), (1, 1), (0, 0), 0.2), B, T)
    out5 = batchnorm_per_frame(conv2d_pallas_t(out4, params['w5'], None,
                                               (1, 1), (0, 0), (0, 0), 0.2), B, T)
    Cfeat, N, Ho, Wo = out5.shape

    # ---- ConvLSTM (single layer, batch_first, zero initial state) ----
    # TODO(synk): the ConvLSTM class source was not provided; the standard cell
    #   (cat[x,h] -> conv -> i,f,o,g gates) with spatial-size-preserving
    #   asymmetric padding (1,2)/(1,2) for the even 4x4 kernel is assumed.
    wl, bl = params['wl'], params['bl']
    hid = bl.shape[0] // 4
    wl_x, wl_h = wl[:, :Cfeat], wl[:, Cfeat:]
    P = Ho * Wo
    Ppad = P
    while (Ppad * hid) % 128:      # pad spatial positions so every gate slice
        Ppad += 1                  # is 128-lane aligned inside the kernel
    PHpad = Ppad * hid
    Bpad = _round_up(B, 8)         # full sublane tiles for the recurrence

    # Input-to-gate conv (+ bias) for all timesteps in one lane-dense Pallas
    # matmul, then rearranged into the gate-major, lane-aligned layout
    # (pad columns are zero so pad positions stay exactly zero in h/c).
    ccx = conv2d_pallas_t(out5, wl_x, bl, (1, 1), (1, 2), (1, 2))  # (4*hid,N,Ho,Wo)
    ccx = ccx.reshape(4, hid, B, T, P)
    ccx = jnp.transpose(ccx, (3, 2, 0, 4, 1))                      # (T,B,g,P,hid)
    ccx = jnp.pad(ccx, ((0, 0), (0, Bpad - B), (0, 0), (0, Ppad - P), (0, 0)))
    ccx = ccx.reshape(T, Bpad, 4 * PHpad)

    # Hidden-to-gate conv as a VMEM-resident bf16 block-Toeplitz matmul.
    wbig = _hidden_conv_matrix(wl_h, Ho, Wo, Ppad, hid).astype(jnp.bfloat16)

    # TODO(synk): for long T on v7x the 4 gate-column blocks of wbig could be
    #   split across the two TensorCores; with T this small it is not worth it.
    hs = pl.pallas_call(
        functools.partial(_convlstm_seq_kernel, phpad=PHpad),
        out_shape=jax.ShapeDtypeStruct((T, Bpad, PHpad), jnp.float32),
        grid=(T,),
        in_specs=[
            pl.BlockSpec((None, Bpad, 4 * PHpad), lambda t: (t, 0, 0)),
            pl.BlockSpec((PHpad, 4 * PHpad), lambda t: (0, 0)),
        ],
        out_specs=pl.BlockSpec((None, Bpad, PHpad), lambda t: (t, 0, 0)),
        scratch_shapes=[pltpu.VMEM((Bpad, PHpad), jnp.float32),   # h state
                        pltpu.VMEM((Bpad, PHpad), jnp.float32)],  # c state
        compiler_params=pltpu.CompilerParams(
            dimension_semantics=("arbitrary",)),  # sequential recurrence over T
    )(ccx, wbig)

    hs = hs.reshape(T, Bpad, Ppad, hid)[:, :B, :P, :].reshape(T, B, Ho, Wo, hid)
    return jnp.transpose(hs, (1, 0, 4, 2, 3))      # (B, T, hid, Ho, Wo)


# ---------------------------------------------------------------------------

if __name__ == "__main__":
    key = jax.random.PRNGKey(0)
    pkey, xkey = jax.random.split(key)
    params = init_params(pkey, channels=8)

    B, T, C, H, W = 2, 3, 12, 64, 64
    x = jax.random.normal(xkey, (B, T, C, H, W), jnp.float32)

    out = jax.jit(forward)(params, x)
    out = jax.block_until_ready(out)
    assert out.shape == (B, T, 32, 5, 2), out.shape
    assert bool(jnp.all(jnp.isfinite(out)))
    print("KERNEL_OK")
</pallas_src>

<mosaic_0001>
module attributes {stable_mosaic.version = 11 : i64} {
  func.func @_conv_mm_t_bias_kernel(%arg0: i32, %arg1: memref<8x192xbf16, #tpu.memory_space<vmem>>, %arg2: memref<192x1536xbf16, #tpu.memory_space<vmem>>, %arg3: memref<8x1xf32, #tpu.memory_space<vmem>>, %arg4: memref<8x1536xf32, #tpu.memory_space<vmem>>) attributes {dimension_semantics = [#tpu.dimension_semantics<parallel>], iteration_bounds = array<i64: 4>, scalar_prefetch = 0 : i64, scratch_operands = 0 : i64, tpu.core_type = #tpu.core_type<tc>, window_params = [{pipeline_mode = #tpu.pipeline_mode<synchronous>, transform_indices = @transform_0, window_bounds = array<i64: 8, 192>}, {transform_indices = @transform_1, window_bounds = array<i64: 192, 1536>}, {pipeline_mode = #tpu.pipeline_mode<synchronous>, transform_indices = @transform_2, window_bounds = array<i64: 8, 1>}, {transform_indices = @transform_3, window_bounds = array<i64: 8, 1536>}]} {
    %c0 = arith.constant 0 : index
    %c0_0 = arith.constant 0 : index
    %0 = vector.load %arg1[%c0, %c0_0] : memref<8x192xbf16, #tpu.memory_space<vmem>>, vector<8x192xbf16>
    %c0_1 = arith.constant 0 : index
    %c0_2 = arith.constant 0 : index
    %1 = vector.load %arg2[%c0_1, %c0_2] : memref<192x1536xbf16, #tpu.memory_space<vmem>>, vector<192x1536xbf16>
    %cst = arith.constant dense<0.000000e+00> : vector<8x1536xf32>
    %2 = tpu.matmul %0, %1, %cst {dimension_numbers = #tpu.dot_dimension_numbers<[1], [0], [0], [1], [0, 0, 1, 1], [], []>} : vector<8x192xbf16>, vector<192x1536xbf16>, vector<8x1536xf32> -> vector<8x1536xf32>
    %c0_3 = arith.constant 0 : index
    %c0_4 = arith.constant 0 : index
    %3 = vector.load %arg3[%c0_3, %c0_4] : memref<8x1xf32, #tpu.memory_space<vmem>>, vector<8x1xf32>
    %4 = vector.broadcast %3 : vector<8x1xf32> to vector<8x1536xf32>
    %5 = arith.addf %2, %4 : vector<8x1536xf32>
    %c0_5 = arith.constant 0 : index
    %c0_6 = arith.constant 0 : index
    %6 = vector.load %arg4[%c0_5, %c0_6] : memref<8x1536xf32, #tpu.memory_space<vmem>>, vector<8x1536xf32>
    tpu.vector_store %arg4[%c0_5, %c0_6], %5 {strides = array<i32>} : memref<8x1536xf32, #tpu.memory_space<vmem>>, vector<8x1536xf32>,
    return
  }
  func.func @transform_0(%arg0: i32) -> (i32, i32) {
    %c0_i32 = arith.constant 0 : i32
    %c0_i32_0 = arith.constant 0 : i32
    %c0_i32_1 = arith.constant 0 : i32
    return %c0_i32, %c0_i32_0 : i32, i32
  }
  func.func @transform_1(%arg0: i32) -> (i32, i32) {
    %c0_i32 = arith.constant 0 : i32
    %c0_i32_0 = arith.constant 0 : i32
    return %c0_i32, %arg0 : i32, i32
  }
  func.func @transform_2(%arg0: i32) -> (i32, i32) {
    %c0_i32 = arith.constant 0 : i32
    %c0_i32_0 = arith.constant 0 : i32
    %c0_i32_1 = arith.constant 0 : i32
    return %c0_i32, %c0_i32_0 : i32, i32
  }
  func.func @transform_3(%arg0: i32) -> (i32, i32) {
    %c0_i32 = arith.constant 0 : i32
    %c0_i32_0 = arith.constant 0 : i32
    return %c0_i32, %arg0 : i32, i32
  }
}

module attributes {stable_mosaic.version = 11 : i64} {
  func.func @_conv_mm_t_kernel(%arg0: i32, %arg1: memref<16x128xbf16, #tpu.memory_space<vmem>>, %arg2: memref<128x768xbf16, #tpu.memory_space<vmem>>, %arg3: memref<16x768xf32, #tpu.memory_space<vmem>>) attributes {dimension_semantics = [#tpu.dimension_semantics<parallel>], iteration_bounds = array<i64: 2>, scalar_prefetch = 0 : i64, scratch_operands = 0 : i64, tpu.core_type = #tpu.core_type<tc>, window_params = [{pipeline_mode = #tpu.pipeline_mode<synchronous>, transform_indices = @transform_0, window_bounds = array<i64: 16, 128>}, {transform_indices = @transform_1, window_bounds = array<i64: 128, 768>}, {transform_indices = @transform_2, window_bounds = array<i64: 16, 768>}]} {
    %c0 = arith.constant 0 : index
    %c0_0 = arith.constant 0 : index
    %0 = vector.load %arg1[%c0, %c0_0] : memref<16x128xbf16, #tpu.memory_space<vmem>>, vector<16x128xbf16>
    %c0_1 = arith.constant 0 : index
    %c0_2 = arith.constant 0 : index
    %1 = vector.load %arg2[%c0_1, %c0_2] : memref<128x768xbf16, #tpu.memory_space<vmem>>, vector<128x768xbf16>
    %cst = arith.constant dense<0.000000e+00> : vector<16x768xf32>
    %2 = tpu.matmul %0, %1, %cst {dimension_numbers = #tpu.dot_dimension_numbers<[1], [0], [0], [1], [0, 0, 1, 1], [], []>} : vector<16x128xbf16>, vector<128x768xbf16>, vector<16x768xf32> -> vector<16x768xf32>
    %c0_3 = arith.constant 0 : index
    %c0_4 = arith.constant 0 : index
    %3 = vector.load %arg3[%c0_3, %c0_4] : memref<16x768xf32, #tpu.memory_space<vmem>>, vector<16x768xf32>
    tpu.vector_store %arg3[%c0_3, %c0_4], %2 {strides = array<i32>} : memref<16x768xf32, #tpu.memory_space<vmem>>, vector<16x768xf32>,
    return
  }
  func.func @transform_0(%arg0: i32) -> (i32, i32) {
    %c0_i32 = arith.constant 0 : i32
    %c0_i32_0 = arith.constant 0 : i32
    %c0_i32_1 = arith.constant 0 : i32
    return %c0_i32, %c0_i32_0 : i32, i32
  }
  func.func @transform_1(%arg0: i32) -> (i32, i32) {
    %c0_i32 = arith.constant 0 : i32
    %c0_i32_0 = arith.constant 0 : i32
    return %c0_i32, %arg0 : i32, i32
  }
  func.func @transform_2(%arg0: i32) -> (i32, i32) {
    %c0_i32 = arith.constant 0 : i32
    %c0_i32_0 = arith.constant 0 : i32
    return %c0_i32, %arg0 : i32, i32
  }
}

module attributes {stable_mosaic.version = 11 : i64} {
  func.func @_conv_mm_t_kernel(%arg0: i32, %arg1: memref<16x256xbf16, #tpu.memory_space<vmem>>, %arg2: memref<256x256xbf16, #tpu.memory_space<vmem>>, %arg3: memref<16x256xf32, #tpu.memory_space<vmem>>) attributes {dimension_semantics = [#tpu.dimension_semantics<parallel>], iteration_bounds = array<i64: 2>, scalar_prefetch = 0 : i64, scratch_operands = 0 : i64, tpu.core_type = #tpu.core_type<tc>, window_params = [{pipeline_mode = #tpu.pipeline_mode<synchronous>, transform_indices = @transform_0, window_bounds = array<i64: 16, 256>}, {transform_indices = @transform_1, window_bounds = array<i64: 256, 256>}, {transform_indices = @transform_2, window_bounds = array<i64: 16, 256>}]} {
    %c0 = arith.constant 0 : index
    %c0_0 = arith.constant 0 : index
    %0 = vector.load %arg1[%c0, %c0_0] : memref<16x256xbf16, #tpu.memory_space<vmem>>, vector<16x256xbf16>
    %c0_1 = arith.constant 0 : index
    %c0_2 = arith.constant 0 : index
    %1 = vector.load %arg2[%c0_1, %c0_2] : memref<256x256xbf16, #tpu.memory_space<vmem>>, vector<256x256xbf16>
    %cst = arith.constant dense<0.000000e+00> : vector<16x256xf32>
    %2 = tpu.matmul %0, %1, %cst {dimension_numbers = #tpu.dot_dimension_numbers<[1], [0], [0], [1], [0, 0, 1, 1], [], []>} : vector<16x256xbf16>, vector<256x256xbf16>, vector<16x256xf32> -> vector<16x256xf32>
    %c0_3 = arith.constant 0 : index
    %c0_4 = arith.constant 0 : index
    %3 = vector.load %arg3[%c0_3, %c0_4] : memref<16x256xf32, #tpu.memory_space<vmem>>, vector<16x256xf32>
    tpu.vector_store %arg3[%c0_3, %c0_4], %2 {strides = array<i32>} : memref<16x256xf32, #tpu.memory_space<vmem>>, vector<16x256xf32>,
    return
  }
  func.func @transform_0(%arg0: i32) -> (i32, i32) {
    %c0_i32 = arith.constant 0 : i32
    %c0_i32_0 = arith.constant 0 : i32
    %c0_i32_1 = arith.constant 0 : i32
    return %c0_i32, %c0_i32_0 : i32, i32
  }
  func.func @transform_1(%arg0: i32) -> (i32, i32) {
    %c0_i32 = arith.constant 0 : i32
    %c0_i32_0 = arith.constant 0 : i32
    return %c0_i32, %arg0 : i32, i32
  }
  func.func @transform_2(%arg0: i32) -> (i32, i32) {
    %c0_i32 = arith.constant 0 : i32
    %c0_i32_0 = arith.constant 0 : i32
    return %c0_i32, %arg0 : i32, i32
  }
}

module attributes {stable_mosaic.version = 11 : i64} {
  func.func @_conv_mm_t_kernel(%arg0: i32, %arg1: memref<32x400xbf16, #tpu.memory_space<vmem>>, %arg2: memref<400x128xbf16, #tpu.memory_space<vmem>>, %arg3: memref<32x128xf32, #tpu.memory_space<vmem>>) attributes {dimension_semantics = [#tpu.dimension_semantics<parallel>], iteration_bounds = array<i64: 2>, scalar_prefetch = 0 : i64, scratch_operands = 0 : i64, tpu.core_type = #tpu.core_type<tc>, window_params = [{pipeline_mode = #tpu.pipeline_mode<synchronous>, transform_indices = @transform_0, window_bounds = array<i64: 32, 400>}, {transform_indices = @transform_1, window_bounds = array<i64: 400, 128>}, {transform_indices = @transform_2, window_bounds = array<i64: 32, 128>}]} {
    %c0 = arith.constant 0 : index
    %c0_0 = arith.constant 0 : index
    %0 = vector.load %arg1[%c0, %c0_0] : memref<32x400xbf16, #tpu.memory_space<vmem>>, vector<32x400xbf16>
    %c0_1 = arith.constant 0 : index
    %c0_2 = arith.constant 0 : index
    %1 = vector.load %arg2[%c0_1, %c0_2] : memref<400x128xbf16, #tpu.memory_space<vmem>>, vector<400x128xbf16>
    %cst = arith.constant dense<0.000000e+00> : vector<32x128xf32>
    %2 = tpu.matmul %0, %1, %cst {dimension_numbers = #tpu.dot_dimension_numbers<[1], [0], [0], [1], [0, 0, 1, 1], [], []>} : vector<32x400xbf16>, vector<400x128xbf16>, vector<32x128xf32> -> vector<32x128xf32>
    %c0_3 = arith.constant 0 : index
    %c0_4 = arith.constant 0 : index
    %3 = vector.load %arg3[%c0_3, %c0_4] : memref<32x128xf32, #tpu.memory_space<vmem>>, vector<32x128xf32>
    tpu.vector_store %arg3[%c0_3, %c0_4], %2 {strides = array<i32>} : memref<32x128xf32, #tpu.memory_space<vmem>>, vector<32x128xf32>,
    return
  }
  func.func @transform_0(%arg0: i32) -> (i32, i32) {
    %c0_i32 = arith.constant 0 : i32
    %c0_i32_0 = arith.constant 0 : i32
    %c0_i32_1 = arith.constant 0 : i32
    return %c0_i32, %c0_i32_0 : i32, i32
  }
  func.func @transform_1(%arg0: i32) -> (i32, i32) {
    %c0_i32 = arith.constant 0 : i32
    %c0_i32_0 = arith.constant 0 : i32
    return %c0_i32, %arg0 : i32, i32
  }
  func.func @transform_2(%arg0: i32) -> (i32, i32) {
    %c0_i32 = arith.constant 0 : i32
    %c0_i32_0 = arith.constant 0 : i32
    return %c0_i32, %arg0 : i32, i32
  }
}

module attributes {stable_mosaic.version = 11 : i64} {
  func.func @_conv_mm_t_kernel(%arg0: i32, %arg1: memref<64x192xbf16, #tpu.memory_space<vmem>>, %arg2: memref<192x128xbf16, #tpu.memory_space<vmem>>, %arg3: memref<64x128xf32, #tpu.memory_space<vmem>>) attributes {dimension_semantics = [#tpu.dimension_semantics<parallel>], iteration_bounds = array<i64: 1>, scalar_prefetch = 0 : i64, scratch_operands = 0 : i64, tpu.core_type = #tpu.core_type<tc>, window_params = [{pipeline_mode = #tpu.pipeline_mode<synchronous>, transform_indices = @transform_0, window_bounds = array<i64: 64, 192>}, {transform_indices = @transform_1, window_bounds = array<i64: 192, 128>}, {transform_indices = @transform_2, window_bounds = array<i64: 64, 128>}]} {
    %c0 = arith.constant 0 : index
    %c0_0 = arith.constant 0 : index
    %0 = vector.load %arg1[%c0, %c0_0] : memref<64x192xbf16, #tpu.memory_space<vmem>>, vector<64x192xbf16>
    %c0_1 = arith.constant 0 : index
    %c0_2 = arith.constant 0 : index
    %1 = vector.load %arg2[%c0_1, %c0_2] : memref<192x128xbf16, #tpu.memory_space<vmem>>, vector<192x128xbf16>
    %cst = arith.constant dense<0.000000e+00> : vector<64x128xf32>
    %2 = tpu.matmul %0, %1, %cst {dimension_numbers = #tpu.dot_dimension_numbers<[1], [0], [0], [1], [0, 0, 1, 1], [], []>} : vector<64x192xbf16>, vector<192x128xbf16>, vector<64x128xf32> -> vector<64x128xf32>
    %c0_3 = arith.constant 0 : index
    %c0_4 = arith.constant 0 : index
    %3 = vector.load %arg3[%c0_3, %c0_4] : memref<64x128xf32, #tpu.memory_space<vmem>>, vector<64x128xf32>
    tpu.vector_store %arg3[%c0_3, %c0_4], %2 {strides = array<i32>} : memref<64x128xf32, #tpu.memory_space<vmem>>, vector<64x128xf32>,
    return
  }
  func.func @transform_0(%arg0: i32) -> (i32, i32) {
    %c0_i32 = arith.constant 0 : i32
    %c0_i32_0 = arith.constant 0 : i32
    %c0_i32_1 = arith.constant 0 : i32
    return %c0_i32, %c0_i32_0 : i32, i32
  }
  func.func @transform_1(%arg0: i32) -> (i32, i32) {
    %c0_i32 = arith.constant 0 : i32
    %c0_i32_0 = arith.constant 0 : i32
    return %c0_i32, %arg0 : i32, i32
  }
  func.func @transform_2(%arg0: i32) -> (i32, i32) {
    %c0_i32 = arith.constant 0 : i32
    %c0_i32_0 = arith.constant 0 : i32
    return %c0_i32, %arg0 : i32, i32
  }
}

module attributes {stable_mosaic.version = 11 : i64} {
  func.func @_conv_mm_t_bias_kernel(%arg0: i32, %arg1: memref<128x1024xbf16, #tpu.memory_space<vmem>>, %arg2: memref<1024x128xbf16, #tpu.memory_space<vmem>>, %arg3: memref<128x1xf32, #tpu.memory_space<vmem>>, %arg4: memref<128x128xf32, #tpu.memory_space<vmem>>) attributes {dimension_semantics = [#tpu.dimension_semantics<parallel>], iteration_bounds = array<i64: 1>, scalar_prefetch = 0 : i64, scratch_operands = 0 : i64, tpu.core_type = #tpu.core_type<tc>, window_params = [{pipeline_mode = #tpu.pipeline_mode<synchronous>, transform_indices = @transform_0, window_bounds = array<i64: 128, 1024>}, {transform_indices = @transform_1, window_bounds = array<i64: 1024, 128>}, {pipeline_mode = #tpu.pipeline_mode<synchronous>, transform_indices = @transform_2, window_bounds = array<i64: 128, 1>}, {transform_indices = @transform_3, window_bounds = array<i64: 128, 128>}]} {
    %c0 = arith.constant 0 : index
    %c0_0 = arith.constant 0 : index
    %0 = vector.load %arg1[%c0, %c0_0] : memref<128x1024xbf16, #tpu.memory_space<vmem>>, vector<128x1024xbf16>
    %c0_1 = arith.constant 0 : index
    %c0_2 = arith.constant 0 : index
    %1 = vector.load %arg2[%c0_1, %c0_2] : memref<1024x128xbf16, #tpu.memory_space<vmem>>, vector<1024x128xbf16>
    %cst = arith.constant dense<0.000000e+00> : vector<128x128xf32>
    %2 = tpu.matmul %0, %1, %cst {dimension_numbers = #tpu.dot_dimension_numbers<[1], [0], [0], [1], [0, 0, 1, 1], [], []>} : vector<128x1024xbf16>, vector<1024x128xbf16>, vector<128x128xf32> -> vector<128x128xf32>
    %c0_3 = arith.constant 0 : index
    %c0_4 = arith.constant 0 : index
    %3 = vector.load %arg3[%c0_3, %c0_4] : memref<128x1xf32, #tpu.memory_space<vmem>>, vector<128x1xf32>
    %4 = vector.broadcast %3 : vector<128x1xf32> to vector<128x128xf32>
    %5 = arith.addf %2, %4 : vector<128x128xf32>
    %c0_5 = arith.constant 0 : index
    %c0_6 = arith.constant 0 : index
    %6 = vector.load %arg4[%c0_5, %c0_6] : memref<128x128xf32, #tpu.memory_space<vmem>>, vector<128x128xf32>
    tpu.vector_store %arg4[%c0_5, %c0_6], %5 {strides = array<i32>} : memref<128x128xf32, #tpu.memory_space<vmem>>, vector<128x128xf32>,
    return
  }
  func.func @transform_0(%arg0: i32) -> (i32, i32) {
    %c0_i32 = arith.constant 0 : i32
    %c0_i32_0 = arith.constant 0 : i32
    %c0_i32_1 = arith.constant 0 : i32
    return %c0_i32, %c0_i32_0 : i32, i32
  }
  func.func @transform_1(%arg0: i32) -> (i32, i32) {
    %c0_i32 = arith.constant 0 : i32
    %c0_i32_0 = arith.constant 0 : i32
    return %c0_i32, %arg0 : i32, i32
  }
  func.func @transform_2(%arg0: i32) -> (i32, i32) {
    %c0_i32 = arith.constant 0 : i32
    %c0_i32_0 = arith.constant 0 : i32
    %c0_i32_1 = arith.constant 0 : i32
    return %c0_i32, %c0_i32_0 : i32, i32
  }
  func.func @transform_3(%arg0: i32) -> (i32, i32) {
    %c0_i32 = arith.constant 0 : i32
    %c0_i32_0 = arith.constant 0 : i32
    return %c0_i32, %arg0 : i32, i32
  }
}

module attributes {stable_mosaic.version = 11 : i64} {
  func.func @_convlstm_seq_kernel(%arg0: i32, %arg1: memref<1x8x1536xf32, #tpu.memory_space<vmem>>, %arg2: memref<384x1536xbf16, #tpu.memory_space<vmem>>, %arg3: memref<1x8x384xf32, #tpu.memory_space<vmem>>, %arg4: memref<8x384xf32, #tpu.memory_space<vmem>>, %arg5: memref<8x384xf32, #tpu.memory_space<vmem>>) attributes {dimension_semantics = [#tpu.dimension_semantics<arbitrary>], iteration_bounds = array<i64: 3>, scalar_prefetch = 0 : i64, scratch_operands = 2 : i64, tpu.core_type = #tpu.core_type<tc>, window_params = [{transform_indices = @transform_0, window_bounds = array<i64: 1, 8, 1536>}, {pipeline_mode = #tpu.pipeline_mode<synchronous>, transform_indices = @transform_1, window_bounds = array<i64: 384, 1536>}, {transform_indices = @transform_2, window_bounds = array<i64: 1, 8, 384>}]} {
    %c0_i32 = arith.constant 0 : i32
    %0 = arith.cmpi eq, %arg0, %c0_i32 : i32
    %1 = arith.extui %0 : i1 to i32
    %c0_i32_0 = arith.constant 0 : i32
    %2 = arith.cmpi ne, %1, %c0_i32_0 : i32
    scf.if %2 {
      %cst_25 = arith.constant 0.000000e+00 : f32
      %47 = vector.broadcast %cst_25 : f32 to vector<8x384xf32>
      %c0_26 = arith.constant 0 : index
      %c0_27 = arith.constant 0 : index
      %48 = vector.load %arg4[%c0_26, %c0_27] : memref<8x384xf32, #tpu.memory_space<vmem>>, vector<8x384xf32>
      tpu.vector_store %arg4[%c0_26, %c0_27], %47 {strides = array<i32>} : memref<8x384xf32, #tpu.memory_space<vmem>>, vector<8x384xf32>,
      %cst_28 = arith.constant 0.000000e+00 : f32
      %49 = vector.broadcast %cst_28 : f32 to vector<8x384xf32>
      %c0_29 = arith.constant 0 : index
      %c0_30 = arith.constant 0 : index
      %50 = vector.load %arg5[%c0_29, %c0_30] : memref<8x384xf32, #tpu.memory_space<vmem>>, vector<8x384xf32>
      tpu.vector_store %arg5[%c0_29, %c0_30], %49 {strides = array<i32>} : memref<8x384xf32, #tpu.memory_space<vmem>>, vector<8x384xf32>,
    } else {
    }
    %c0 = arith.constant 0 : index
    %c0_1 = arith.constant 0 : index
    %3 = vector.load %arg4[%c0, %c0_1] : memref<8x384xf32, #tpu.memory_space<vmem>>, vector<8x384xf32>
    %4 = arith.truncf %3 : vector<8x384xf32> to vector<8x384xbf16>
    %c0_2 = arith.constant 0 : index
    %c0_3 = arith.constant 0 : index
    %5 = vector.load %arg2[%c0_2, %c0_3] : memref<384x1536xbf16, #tpu.memory_space<vmem>>, vector<384x1536xbf16>
    %cst = arith.constant dense<0.000000e+00> : vector<8x1536xf32>
    %6 = tpu.matmul %4, %5, %cst {dimension_numbers = #tpu.dot_dimension_numbers<[1], [0], [0], [1], [0, 0, 1, 1], [], []>} : vector<8x384xbf16>, vector<384x1536xbf16>, vector<8x1536xf32> -> vector<8x1536xf32>
    %c0_4 = arith.constant 0 : index
    %c0_5 = arith.constant 0 : index
    %c0_6 = arith.constant 0 : index
    %7 = vector.load %arg1[%c0_4, %c0_5, %c0_6] : memref<1x8x1536xf32, #tpu.memory_space<vmem>>, vector<1x8x1536xf32>
    %8 = vector.shape_cast %7 : vector<1x8x1536xf32> to vector<8x1536xf32>
    %9 = arith.addf %6, %8 : vector<8x1536xf32>
    %10 = vector.extract_strided_slice %9 {offsets = [0, 0], sizes = [8, 384], strides = [1, 1]} : vector<8x1536xf32> to vector<8x384xf32>
    %cst_7 = arith.constant 5.000000e-01 : f32
    %11 = vector.broadcast %cst_7 : f32 to vector<8x384xf32>
    %12 = arith.mulf %11, %10 : vector<8x384xf32>
    %13 = math.tanh %12 : vector<8x384xf32>
    %cst_8 = arith.constant 1.000000e+00 : f32
    %14 = vector.broadcast %cst_8 : f32 to vector<8x384xf32>
    %15 = arith.addf %13, %14 : vector<8x384xf32>
    %cst_9 = arith.constant 5.000000e-01 : f32
    %16 = vector.broadcast %cst_9 : f32 to vector<8x384xf32>
    %17 = arith.mulf %16, %15 : vector<8x384xf32>
    %18 = vector.extract_strided_slice %9 {offsets = [0, 384], sizes = [8, 384], strides = [1, 1]} : vector<8x1536xf32> to vector<8x384xf32>
    %cst_10 = arith.constant 5.000000e-01 : f32
    %19 = vector.broadcast %cst_10 : f32 to vector<8x384xf32>
    %20 = arith.mulf %19, %18 : vector<8x384xf32>
    %21 = math.tanh %20 : vector<8x384xf32>
    %cst_11 = arith.constant 1.000000e+00 : f32
    %22 = vector.broadcast %cst_11 : f32 to vector<8x384xf32>
    %23 = arith.addf %21, %22 : vector<8x384xf32>
    %cst_12 = arith.constant 5.000000e-01 : f32
    %24 = vector.broadcast %cst_12 : f32 to vector<8x384xf32>
    %25 = arith.mulf %24, %23 : vector<8x384xf32>
    %26 = vector.extract_strided_slice %9 {offsets = [0, 768], sizes = [8, 384], strides = [1, 1]} : vector<8x1536xf32> to vector<8x384xf32>
    %cst_13 = arith.constant 5.000000e-01 : f32
    %27 = vector.broadcast %cst_13 : f32 to vector<8x384xf32>
    %28 = arith.mulf %27, %26 : vector<8x384xf32>
    %29 = math.tanh %28 : vector<8x384xf32>
    %cst_14 = arith.constant 1.000000e+00 : f32
    %30 = vector.broadcast %cst_14 : f32 to vector<8x384xf32>
    %31 = arith.addf %29, %30 : vector<8x384xf32>
    %cst_15 = arith.constant 5.000000e-01 : f32
    %32 = vector.broadcast %cst_15 : f32 to vector<8x384xf32>
    %33 = arith.mulf %32, %31 : vector<8x384xf32>
    %34 = vector.extract_strided_slice %9 {offsets = [0, 1152], sizes = [8, 384], strides = [1, 1]} : vector<8x1536xf32> to vector<8x384xf32>
    %35 = math.tanh %34 : vector<8x384xf32>
    %c0_16 = arith.constant 0 : index
    %c0_17 = arith.constant 0 : index
    %36 = vector.load %arg5[%c0_16, %c0_17] : memref<8x384xf32, #tpu.memory_space<vmem>>, vector<8x384xf32>
    %37 = arith.mulf %25, %36 : vector<8x384xf32>
    %38 = arith.mulf %17, %35 : vector<8x384xf32>
    %39 = arith.addf %37, %38 : vector<8x384xf32>
    %40 = math.tanh %39 : vector<8x384xf32>
    %41 = arith.mulf %33, %40 : vector<8x384xf32>
    %c0_18 = arith.constant 0 : index
    %c0_19 = arith.constant 0 : index
    %42 = vector.load %arg5[%c0_18, %c0_19] : memref<8x384xf32, #tpu.memory_space<vmem>>, vector<8x384xf32>
    tpu.vector_store %arg5[%c0_18, %c0_19], %39 {strides = array<i32>} : memref<8x384xf32, #tpu.memory_space<vmem>>, vector<8x384xf32>,
    %c0_20 = arith.constant 0 : index
    %c0_21 = arith.constant 0 : index
    %43 = vector.load %arg4[%c0_20, %c0_21] : memref<8x384xf32, #tpu.memory_space<vmem>>, vector<8x384xf32>
    tpu.vector_store %arg4[%c0_20, %c0_21], %41 {strides = array<i32>} : memref<8x384xf32, #tpu.memory_space<vmem>>, vector<8x384xf32>,
    %c0_22 = arith.constant 0 : index
    %c0_23 = arith.constant 0 : index
    %c0_24 = arith.constant 0 : index
    %44 = vector.load %arg3[%c0_22, %c0_23, %c0_24] : memref<1x8x384xf32, #tpu.memory_space<vmem>>, vector<1x8x384xf32>
    %45 = vector.shape_cast %44 : vector<1x8x384xf32> to vector<8x384xf32>
    %46 = vector.shape_cast %41 : vector<8x384xf32> to vector<1x8x384xf32>
    tpu.vector_store %arg3[%c0_22, %c0_23, %c0_24], %46 {strides = array<i32>} : memref<1x8x384xf32, #tpu.memory_space<vmem>>, vector<1x8x384xf32>,
    return
  }
  func.func @transform_0(%arg0: i32) -> (i32, i32, i32) {
    %c0_i32 = arith.constant 0 : i32
    %c0_i32_0 = arith.constant 0 : i32
    %c0_i32_1 = arith.constant 0 : i32
    return %arg0, %c0_i32, %c0_i32_0 : i32, i32, i32
  }
  func.func @transform_1(%arg0: i32) -> (i32, i32) {
    %c0_i32 = arith.constant 0 : i32
    %c0_i32_0 = arith.constant 0 : i32
    %c0_i32_1 = arith.constant 0 : i32
    return %c0_i32, %c0_i32_0 : i32, i32
  }
  func.func @transform_2(%arg0: i32) -> (i32, i32, i32) {
    %c0_i32 = arith.constant 0 : i32
    %c0_i32_0 = arith.constant 0 : i32
    %c0_i32_1 = arith.constant 0 : i32
    return %arg0, %c0_i32, %c0_i32_0 : i32, i32, i32
  }
}

</mosaic_0001>

<bundles_post_ra>
// kernel: forward.7
= control target key start
LH: loop header
LB: loop body
LE: loop exit
PB: predicated region body
PF: predicated region fallthrough
CT: control target
= control target key end

     0   :  { %s2134_s12 = smov 0   ;;  %s2136_s13 = smov 0   ;;  %s2672_s0 = inlined_call_operand.vmem [shape: bf16[8,192], index: 0, kind: input, shape index: {}]   ;;  %s2673_s1 = inlined_call_operand.vmem [shape: bf16[192,6144], index: 1, kind: input, shape index: {}]   ;;  %s2674_s2 = inlined_call_operand.vmem [shape: f32[8,1], index: 2, kind: input, shape index: {}]   ;;  %s2675_s3 = inlined_call_operand.vmem [shape: f32[8,6144], index: 3, kind: output, shape index: {}]  }
   0x1   :  { %s2138_s14 = smov 0  }
   0x2 LB: > { %s1681_s15 = sadd.s32 4294967295, %s2111_s14   ;;  %s2151_s16 = sadd.s32 1, %s2111_s14   ;;  %s2111_s14 = sphi %s2138_s14, %s2678_s14   ;;  %s2107_s13 = sphi %s2136_s13, %s2677_s13   ;;  %s2103_s12 = sphi %s2134_s12, %s2676_s12  }
   0x3   : > { %s38_s17 = ssub.s32 %s2111_s14, %s2151_s16  ;;  %s41_s18 = sadd.s32 1, %s2107_s13 }
   0x4   : > { %p39_p0 = scmp.eq.s32.totalorder %s38_s17, 0  ;;  %p48_p1 = scmp.ne.s32.totalorder %s2107_s13, %s2103_s12 }
   0x5   : > { %p49_p2 = scmp.eq.s32.totalorder %s2111_s14, 0  ;;  %p1684_p4 = scmp.ge.s32.totalorder %s2111_s14, 4 }
   0x6   : > { %s2160_s19 = scalar_select %p39_p0, %s2107_s13, %s41_s18  }
   0x7   : > { %p50_p3 = por %p49_p2, %p48_p1  ;;  %127 = sbr.rel (%p1684_p4) target bundleno = 91 (0x5b), region = 24 }
   0xe   : > { %130 = sbr.rel (!%p50_p3) target bundleno = 91 (0x5b), region = 28  ;;  %s132_s20 = sand.u32 (%p50_p3), 1, %s2107_s13  }
   0xf   : > { %s1842_s21 = smul.u32 (%p50_p3), 48, %s2111_s14 }
  0x10   : > { %s1843_s22 = smul.u32 (%p50_p3), 1152, %s132_s20 }
  0x11   : > { %s2168_s25 = scalar_lea.vmem (%p50_p3), %s2673_s1, %s1842_s21 }
  0x12   : > { %v150_v0 = vld [vmem:[%s2168_s25] sm:$0xff] (%p50_p3)  ;;  %v152_v1 = vld [vmem:[%s2168_s25 + $0x8] sm:$0xff] (%p50_p3)  ;;  %v154_v2 = vld [vmem:[%s2168_s25 + $0x10] sm:$0xff] (%p50_p3)  ;;  %s2173_s26 = scalar_lea.vmem (%p50_p3), [#allocation2], %s1843_s22 }
  0x13   : > { %151 = vst [vmem:[%s2173_s26] sm:$0xff] (%p50_p3), %v150_v0  ;;  %153 = vst [vmem:[%s2173_s26 + $0x8] sm:$0xff] (%p50_p3), %v152_v1  ;;  %v156_v3 = vld [vmem:[%s2168_s25 + $0x18] sm:$0xff] (%p50_p3)  ;;  %v158_v4 = vld [vmem:[%s2168_s25 + $0x20] sm:$0xff] (%p50_p3) }
  0x14   : > { %155 = vst [vmem:[%s2173_s26 + $0x10] sm:$0xff] (%p50_p3), %v154_v2  ;;  %v160_v5 = vld [vmem:[%s2168_s25 + $0x28] sm:$0xff] (%p50_p3)  ;;  %157 = vst [vmem:[%s2173_s26 + $0x18] sm:$0xff] (%p50_p3), %v156_v3  ;;  %v162_v6 = vld [vmem:[%s2168_s25 + $0xc0] sm:$0xff] (%p50_p3) }
  0x15   : > { %159 = vst [vmem:[%s2173_s26 + $0x20] sm:$0xff] %v158_v4  ;;  %161 = vst [vmem:[%s2173_s26 + $0x28] sm:$0xff] %v160_v5  ;;  %v164_v7 = vld [vmem:[%s2168_s25 + $0xc8] sm:$0xff]  ;;  %v166_v8 = vld [vmem:[%s2168_s25 + $0xd0] sm:$0xff] }
  0x16   : > { %163 = vst [vmem:[%s2173_s26 + $0x30] sm:$0xff] %v162_v6  ;;  %165 = vst [vmem:[%s2173_s26 + $0x38] sm:$0xff] %v164_v7  ;;  %v168_v9 = vld [vmem:[%s2168_s25 + $0xd8] sm:$0xff]  ;;  %v170_v10 = vld [vmem:[%s2168_s25 + $0xe0] sm:$0xff] }
  0x17   : > { %167 = vst [vmem:[%s2173_s26 + $0x40] sm:$0xff] %v166_v8  ;;  %v172_v11 = vld [vmem:[%s2168_s25 + $0xe8] sm:$0xff]  ;;  %169 = vst [vmem:[%s2173_s26 + $0x48] sm:$0xff] %v168_v9  ;;  %v174_v12 = vld [vmem:[%s2168_s25 + $0x180] sm:$0xff] }
  0x18   : > { %171 = vst [vmem:[%s2173_s26 + $0x50] sm:$0xff] %v170_v10  ;;  %173 = vst [vmem:[%s2173_s26 + $0x58] sm:$0xff] %v172_v11  ;;  %v176_v13 = vld [vmem:[%s2168_s25 + $0x188] sm:$0xff]  ;;  %v178_v14 = vld [vmem:[%s2168_s25 + $0x190] sm:$0xff] }
  0x19   : > { %175 = vst [vmem:[%s2173_s26 + $0x60] sm:$0xff] %v174_v12  ;;  %177 = vst [vmem:[%s2173_s26 + $0x68] sm:$0xff] %v176_v13  ;;  %v180_v15 = vld [vmem:[%s2168_s25 + $0x198] sm:$0xff]  ;;  %v182_v16 = vld [vmem:[%s2168_s25 + $0x1a0] sm:$0xff] }
  0x1a   : > { %179 = vst [vmem:[%s2173_s26 + $0x70] sm:$0xff] %v178_v14  ;;  %v184_v17 = vld [vmem:[%s2168_s25 + $0x1a8] sm:$0xff]  ;;  %181 = vst [vmem:[%s2173_s26 + $0x78] sm:$0xff] %v180_v15  ;;  %v186_v18 = vld [vmem:[%s2168_s25 + $0x240] sm:$0xff] }
  0x1b   : > { %183 = vst [vmem:[%s2173_s26 + $0x80] sm:$0xff] %v182_v16  ;;  %185 = vst [vmem:[%s2173_s26 + $0x88] sm:$0xff] %v184_v17  ;;  %v188_v19 = vld [vmem:[%s2168_s25 + $0x248] sm:$0xff]  ;;  %v190_v20 = vld [vmem:[%s2168_s25 + $0x250] sm:$0xff] }
  0x1c   : > { %187 = vst [vmem:[%s2173_s26 + $0x90] sm:$0xff] %v186_v18  ;;  %189 = vst [vmem:[%s2173_s26 + $0x98] sm:$0xff] %v188_v19  ;;  %v192_v21 = vld [vmem:[%s2168_s25 + $0x258] sm:$0xff]  ;;  %v194_v22 = vld [vmem:[%s2168_s25 + $0x260] sm:$0xff] }
  0x1d   : > { %191 = vst [vmem:[%s2173_s26 + $0xa0] sm:$0xff] %v190_v20  ;;  %v196_v23 = vld [vmem:[%s2168_s25 + $0x268] sm:$0xff]  ;;  %193 = vst [vmem:[%s2173_s26 + $0xa8] sm:$0xff] %v192_v21  ;;  %v198_v24 = vld [vmem:[%s2168_s25 + $0x300] sm:$0xff] }
  0x1e   : > { %195 = vst [vmem:[%s2173_s26 + $0xb0] sm:$0xff] %v194_v22  ;;  %197 = vst [vmem:[%s2173_s26 + $0xb8] sm:$0xff] %v196_v23  ;;  %v200_v25 = vld [vmem:[%s2168_s25 + $0x308] sm:$0xff]  ;;  %v202_v26 = vld [vmem:[%s2168_s25 + $0x310] sm:$0xff] }
  0x1f   : > { %199 = vst [vmem:[%s2173_s26 + $0xc0] sm:$0xff] %v198_v24  ;;  %201 = vst [vmem:[%s2173_s26 + $0xc8] sm:$0xff] %v200_v25  ;;  %v204_v27 = vld [vmem:[%s2168_s25 + $0x318] sm:$0xff]  ;;  %v206_v28 = vld [vmem:[%s2168_s25 + $0x320] sm:$0xff] }
  0x20   : > { %203 = vst [vmem:[%s2173_s26 + $0xd0] sm:$0xff] %v202_v26  ;;  %v208_v29 = vld [vmem:[%s2168_s25 + $0x328] sm:$0xff]  ;;  %205 = vst [vmem:[%s2173_s26 + $0xd8] sm:$0xff] %v204_v27  ;;  %v210_v30 = vld [vmem:[%s2168_s25 + $0x3c0] sm:$0xff] }
  0x21   : > { %207 = vst [vmem:[%s2173_s26 + $0xe0] sm:$0xff] %v206_v28  ;;  %209 = vst [vmem:[%s2173_s26 + $0xe8] sm:$0xff] %v208_v29  ;;  %v212_v31 = vld [vmem:[%s2168_s25 + $0x3c8] sm:$0xff]  ;;  %v214_v32 = vld [vmem:[%s2168_s25 + $0x3d0] sm:$0xff] }
  0x22   : > { %211 = vst [vmem:[%s2173_s26 + $0xf0] sm:$0xff] %v210_v30  ;;  %213 = vst [vmem:[%s2173_s26 + $0xf8] sm:$0xff] %v212_v31  ;;  %v216_v33 = vld [vmem:[%s2168_s25 + $0x3d8] sm:$0xff]  ;;  %v218_v34 = vld [vmem:[%s2168_s25 + $0x3e0] sm:$0xff] }
  0x23   : > { %215 = vst [vmem:[%s2173_s26 + $0x100] sm:$0xff] %v214_v32  ;;  %v220_v35 = vld [vmem:[%s2168_s25 + $0x3e8] sm:$0xff]  ;;  %217 = vst [vmem:[%s2173_s26 + $0x108] sm:$0xff] %v216_v33  ;;  %v222_v36 = vld [vmem:[%s2168_s25 + $0x480] sm:$0xff] }
  0x24   : > { %219 = vst [vmem:[%s2173_s26 + $0x110] sm:$0xff] %v218_v34  ;;  %221 = vst [vmem:[%s2173_s26 + $0x118] sm:$0xff] %v220_v35  ;;  %v224_v37 = vld [vmem:[%s2168_s25 + $0x488] sm:$0xff]  ;;  %v226_v38 = vld [vmem:[%s2168_s25 + $0x490] sm:$0xff] }
  0x25   : > { %223 = vst [vmem:[%s2173_s26 + $0x120] sm:$0xff] %v222_v36  ;;  %225 = vst [vmem:[%s2173_s26 + $0x128] sm:$0xff] %v224_v37  ;;  %v228_v39 = vld [vmem:[%s2168_s25 + $0x498] sm:$0xff]  ;;  %v230_v40 = vld [vmem:[%s2168_s25 + $0x4a0] sm:$0xff] }
  0x26   : > { %227 = vst [vmem:[%s2173_s26 + $0x130] sm:$0xff] %v226_v38  ;;  %v232_v41 = vld [vmem:[%s2168_s25 + $0x4a8] sm:$0xff]  ;;  %229 = vst [vmem:[%s2173_s26 + $0x138] sm:$0xff] %v228_v39  ;;  %v234_v42 = vld [vmem:[%s2168_s25 + $0x540] sm:$0xff] }
  0x27   : > { %231 = vst [vmem:[%s2173_s26 + $0x140] sm:$0xff] %v230_v40  ;;  %233 = vst [vmem:[%s2173_s26 + $0x148] sm:$0xff] %v232_v41  ;;  %v236_v43 = vld [vmem:[%s2168_s25 + $0x548] sm:$0xff]  ;;  %v238_v44 = vld [vmem:[%s2168_s25 + $0x550] sm:$0xff] }
  0x28   : > { %235 = vst [vmem:[%s2173_s26 + $0x150] sm:$0xff] %v234_v42  ;;  %237 = vst [vmem:[%s2173_s26 + $0x158] sm:$0xff] %v236_v43  ;;  %v240_v45 = vld [vmem:[%s2168_s25 + $0x558] sm:$0xff]  ;;  %v242_v46 = vld [vmem:[%s2168_s25 + $0x560] sm:$0xff] }
  0x29   : > { %239 = vst [vmem:[%s2173_s26 + $0x160] sm:$0xff] %v238_v44  ;;  %v244_v47 = vld [vmem:[%s2168_s25 + $0x568] sm:$0xff]  ;;  %241 = vst [vmem:[%s2173_s26 + $0x168] sm:$0xff] %v240_v45  ;;  %v246_v48 = vld [vmem:[%s2168_s25 + $0x600] sm:$0xff] }
  0x2a   : > { %243 = vst [vmem:[%s2173_s26 + $0x170] sm:$0xff] %v242_v46  ;;  %245 = vst [vmem:[%s2173_s26 + $0x178] sm:$0xff] %v244_v47  ;;  %v248_v49 = vld [vmem:[%s2168_s25 + $0x608] sm:$0xff]  ;;  %v250_v50 = vld [vmem:[%s2168_s25 + $0x610] sm:$0xff] }
  0x2b   : > { %247 = vst [vmem:[%s2173_s26 + $0x180] sm:$0xff] %v246_v48  ;;  %249 = vst [vmem:[%s2173_s26 + $0x188] sm:$0xff] %v248_v49  ;;  %v252_v51 = vld [vmem:[%s2168_s25 + $0x618] sm:$0xff]  ;;  %v254_v52 = vld [vmem:[%s2168_s25 + $0x620] sm:$0xff] }
  0x2c   : > { %251 = vst [vmem:[%s2173_s26 + $0x190] sm:$0xff] %v250_v50  ;;  %v256_v53 = vld [vmem:[%s2168_s25 + $0x628] sm:$0xff]  ;;  %253 = vst [vmem:[%s2173_s26 + $0x198] sm:$0xff] %v252_v51  ;;  %v258_v54 = vld [vmem:[%s2168_s25 + $0x6c0] sm:$0xff] }
  0x2d   : > { %255 = vst [vmem:[%s2173_s26 + $0x1a0] sm:$0xff] %v254_v52  ;;  %257 = vst [vmem:[%s2173_s26 + $0x1a8] sm:$0xff] %v256_v53  ;;  %v260_v55 = vld [vmem:[%s2168_s25 + $0x6c8] sm:$0xff]  ;;  %v262_v56 = vld [vmem:[%s2168_s25 + $0x6d0] sm:$0xff] }
  0x2e   : > { %259 = vst [vmem:[%s2173_s26 + $0x1b0] sm:$0xff] %v258_v54  ;;  %261 = vst [vmem:[%s2173_s26 + $0x1b8] sm:$0xff] %v260_v55  ;;  %v264_v57 = vld [vmem:[%s2168_s25 + $0x6d8] sm:$0xff]  ;;  %v266_v58 = vld [vmem:[%s2168_s25 + $0x6e0] sm:$0xff] }
  0x2f   : > { %263 = vst [vmem:[%s2173_s26 + $0x1c0] sm:$0xff] %v262_v56  ;;  %v268_v59 = vld [vmem:[%s2168_s25 + $0x6e8] sm:$0xff]  ;;  %265 = vst [vmem:[%s2173_s26 + $0x1c8] sm:$0xff] %v264_v57  ;;  %v270_v60 = vld [vmem:[%s2168_s25 + $0x780] sm:$0xff] }
  0x30   : > { %267 = vst [vmem:[%s2173_s26 + $0x1d0] sm:$0xff] %v266_v58  ;;  %269 = vst [vmem:[%s2173_s26 + $0x1d8] sm:$0xff] %v268_v59  ;;  %v272_v61 = vld [vmem:[%s2168_s25 + $0x788] sm:$0xff]  ;;  %v274_v62 = vld [vmem:[%s2168_s25 + $0x790] sm:$0xff] }
  0x31   : > { %271 = vst [vmem:[%s2173_s26 + $0x1e0] sm:$0xff] %v270_v60  ;;  %273 = vst [vmem:[%s2173_s26 + $0x1e8] sm:$0xff] %v272_v61  ;;  %v276_v63 = vld [vmem:[%s2168_s25 + $0x798] sm:$0xff]  ;;  %v278_v0 = vld [vmem:[%s2168_s25 + $0x7a0] sm:$0xff] }
  0x32   : > { %275 = vst [vmem:[%s2173_s26 + $0x1f0] sm:$0xff] %v274_v62  ;;  %v280_v1 = vld [vmem:[%s2168_s25 + $0x7a8] sm:$0xff]  ;;  %277 = vst [vmem:[%s2173_s26 + $0x1f8] sm:$0xff] %v276_v63  ;;  %v282_v2 = vld [vmem:[%s2168_s25 + $0x840] sm:$0xff] }
  0x33   : > { %279 = vst [vmem:[%s2173_s26 + $0x200] sm:$0xff] %v278_v0  ;;  %281 = vst [vmem:[%s2173_s26 + $0x208] sm:$0xff] %v280_v1  ;;  %v284_v3 = vld [vmem:[%s2168_s25 + $0x848] sm:$0xff]  ;;  %v286_v4 = vld [vmem:[%s2168_s25 + $0x850] sm:$0xff] }
  0x34   : > { %283 = vst [vmem:[%s2173_s26 + $0x210] sm:$0xff] %v282_v2  ;;  %285 = vst [vmem:[%s2173_s26 + $0x218] sm:$0xff] %v284_v3  ;;  %v288_v5 = vld [vmem:[%s2168_s25 + $0x858] sm:$0xff]  ;;  %v290_v6 = vld [vmem:[%s2168_s25 + $0x860] sm:$0xff] }
  0x35   : > { %287 = vst [vmem:[%s2173_s26 + $0x220] sm:$0xff] %v286_v4  ;;  %v292_v7 = vld [vmem:[%s2168_s25 + $0x868] sm:$0xff]  ;;  %289 = vst [vmem:[%s2173_s26 + $0x228] sm:$0xff] %v288_v5  ;;  %v294_v8 = vld [vmem:[%s2168_s25 + $0x900] sm:$0xff] }
  0x36   : > { %291 = vst [vmem:[%s2173_s26 + $0x230] sm:$0xff] %v290_v6  ;;  %293 = vst [vmem:[%s2173_s26 + $0x238] sm:$0xff] %v292_v7  ;;  %v296_v9 = vld [vmem:[%s2168_s25 + $0x908] sm:$0xff]  ;;  %v298_v10 = vld [vmem:[%s2168_s25 + $0x910] sm:$0xff] }
  0x37   : > { %295 = vst [vmem:[%s2173_s26 + $0x240] sm:$0xff] %v294_v8  ;;  %297 = vst [vmem:[%s2173_s26 + $0x248] sm:$0xff] %v296_v9  ;;  %v300_v11 = vld [vmem:[%s2168_s25 + $0x918] sm:$0xff]  ;;  %v302_v12 = vld [vmem:[%s2168_s25 + $0x920] sm:$0xff] }
  0x38   : > { %299 = vst [vmem:[%s2173_s26 + $0x250] sm:$0xff] %v298_v10  ;;  %v304_v13 = vld [vmem:[%s2168_s25 + $0x928] sm:$0xff]  ;;  %301 = vst [vmem:[%s2173_s26 + $0x258] sm:$0xff] %v300_v11  ;;  %v306_v14 = vld [vmem:[%s2168_s25 + $0x9c0] sm:$0xff] }
  0x39   : > { %303 = vst [vmem:[%s2173_s26 + $0x260] sm:$0xff] %v302_v12  ;;  %305 = vst [vmem:[%s2173_s26 + $0x268] sm:$0xff] %v304_v13  ;;  %v308_v15 = vld [vmem:[%s2168_s25 + $0x9c8] sm:$0xff]  ;;  %v310_v16 = vld [vmem:[%s2168_s25 + $0x9d0] sm:$0xff] }
  0x3a   : > { %307 = vst [vmem:[%s2173_s26 + $0x270] sm:$0xff] %v306_v14  ;;  %309 = vst [vmem:[%s2173_s26 + $0x278] sm:$0xff] %v308_v15  ;;  %v312_v17 = vld [vmem:[%s2168_s25 + $0x9d8] sm:$0xff]  ;;  %v314_v18 = vld [vmem:[%s2168_s25 + $0x9e0] sm:$0xff] }
  0x3b   : > { %311 = vst [vmem:[%s2173_s26 + $0x280] sm:$0xff] %v310_v16  ;;  %v316_v19 = vld [vmem:[%s2168_s25 + $0x9e8] sm:$0xff]  ;;  %313 = vst [vmem:[%s2173_s26 + $0x288] sm:$0xff] %v312_v17  ;;  %v318_v20 = vld [vmem:[%s2168_s25 + $0xa80] sm:$0xff] }
  0x3c   : > { %315 = vst [vmem:[%s2173_s26 + $0x290] sm:$0xff] %v314_v18  ;;  %317 = vst [vmem:[%s2173_s26 + $0x298] sm:$0xff] %v316_v19  ;;  %v320_v21 = vld [vmem:[%s2168_s25 + $0xa88] sm:$0xff]  ;;  %v322_v22 = vld [vmem:[%s2168_s25 + $0xa90] sm:$0xff] }
  0x3d   : > { %319 = vst [vmem:[%s2173_s26 + $0x2a0] sm:$0xff] %v318_v20  ;;  %321 = vst [vmem:[%s2173_s26 + $0x2a8] sm:$0xff] %v320_v21  ;;  %v324_v23 = vld [vmem:[%s2168_s25 + $0xa98] sm:$0xff]  ;;  %v326_v24 = vld [vmem:[%s2168_s25 + $0xaa0] sm:$0xff] }
  0x3e   : > { %323 = vst [vmem:[%s2173_s26 + $0x2b0] sm:$0xff] %v322_v22  ;;  %v328_v25 = vld [vmem:[%s2168_s25 + $0xaa8] sm:$0xff]  ;;  %325 = vst [vmem:[%s2173_s26 + $0x2b8] sm:$0xff] %v324_v23  ;;  %v330_v26 = vld [vmem:[%s2168_s25 + $0xb40] sm:$0xff] }
  0x3f   : > { %327 = vst [vmem:[%s2173_s26 + $0x2c0] sm:$0xff] %v326_v24  ;;  %329 = vst [vmem:[%s2173_s26 + $0x2c8] sm:$0xff] %v328_v25  ;;  %v332_v27 = vld [vmem:[%s2168_s25 + $0xb48] sm:$0xff]  ;;  %v334_v28 = vld [vmem:[%s2168_s25 + $0xb50] sm:$0xff] }
  0x40   : > { %331 = vst [vmem:[%s2173_s26 + $0x2d0] sm:$0xff] %v330_v26  ;;  %333 = vst [vmem:[%s2173_s26 + $0x2d8] sm:$0xff] %v332_v27  ;;  %v336_v29 = vld [vmem:[%s2168_s25 + $0xb58] sm:$0xff]  ;;  %v338_v30 = vld [vmem:[%s2168_s25 + $0xb60] sm:$0xff] }
  0x41   : > { %335 = vst [vmem:[%s2173_s26 + $0x2e0] sm:$0xff] %v334_v28  ;;  %v340_v31 = vld [vmem:[%s2168_s25 + $0xb68] sm:$0xff]  ;;  %337 = vst [vmem:[%s2173_s26 + $0x2e8] sm:$0xff] %v336_v29  ;;  %v342_v32 = vld [vmem:[%s2168_s25 + $0xc00] sm:$0xff] }
  0x42   : > { %339 = vst [vmem:[%s2173_s26 + $0x2f0] sm:$0xff] %v338_v30  ;;  %341 = vst [vmem:[%s2173_s26 + $0x2f8] sm:$0xff] %v340_v31  ;;  %v344_v33 = vld [vmem:[%s2168_s25 + $0xc08] sm:$0xff]  ;;  %v346_v34 = vld [vmem:[%s2168_s25 + $0xc10] sm:$0xff] }
  0x43   : > { %343 = vst [vmem:[%s2173_s26 + $0x300] sm:$0xff] %v342_v32  ;;  %345 = vst [vmem:[%s2173_s26 + $0x308] sm:$0xff] %v344_v33  ;;  %v348_v35 = vld [vmem:[%s2168_s25 + $0xc18] sm:$0xff]  ;;  %v350_v36 = vld [vmem:[%s2168_s25 + $0xc20] sm:$0xff] }
  0x44   : > { %347 = vst [vmem:[%s2173_s26 + $0x310] sm:$0xff] %v346_v34  ;;  %v352_v37 = vld [vmem:[%s2168_s25 + $0xc28] sm:$0xff]  ;;  %349 = vst [vmem:[%s2173_s26 + $0x318] sm:$0xff] %v348_v35  ;;  %v354_v38 = vld [vmem:[%s2168_s25 + $0xcc0] sm:$0xff] }
  0x45   : > { %351 = vst [vmem:[%s2173_s26 + $0x320] sm:$0xff] %v350_v36  ;;  %353 = vst [vmem:[%s2173_s26 + $0x328] sm:$0xff] %v352_v37  ;;  %v356_v39 = vld [vmem:[%s2168_s25 + $0xcc8] sm:$0xff]  ;;  %v358_v40 = vld [vmem:[%s2168_s25 + $0xcd0] sm:$0xff] }
  0x46   : > { %355 = vst [vmem:[%s2173_s26 + $0x330] sm:$0xff] %v354_v38  ;;  %357 = vst [vmem:[%s2173_s26 + $0x338] sm:$0xff] %v356_v39  ;;  %v360_v41 = vld [vmem:[%s2168_s25 + $0xcd8] sm:$0xff]  ;;  %v362_v42 = vld [vmem:[%s2168_s25 + $0xce0] sm:$0xff] }
  0x47   : > { %359 = vst [vmem:[%s2173_s26 + $0x340] sm:$0xff] %v358_v40  ;;  %v364_v43 = vld [vmem:[%s2168_s25 + $0xce8] sm:$0xff]  ;;  %361 = vst [vmem:[%s2173_s26 + $0x348] sm:$0xff] %v360_v41  ;;  %v366_v44 = vld [vmem:[%s2168_s25 + $0xd80] sm:$0xff] }
  0x48   : > { %363 = vst [vmem:[%s2173_s26 + $0x350] sm:$0xff] %v362_v42  ;;  %365 = vst [vmem:[%s2173_s26 + $0x358] sm:$0xff] %v364_v43  ;;  %v368_v45 = vld [vmem:[%s2168_s25 + $0xd88] sm:$0xff]  ;;  %v370_v46 = vld [vmem:[%s2168_s25 + $0xd90] sm:$0xff] }
  0x49   : > { %367 = vst [vmem:[%s2173_s26 + $0x360] sm:$0xff] %v366_v44  ;;  %369 = vst [vmem:[%s2173_s26 + $0x368] sm:$0xff] %v368_v45  ;;  %v372_v47 = vld [vmem:[%s2168_s25 + $0xd98] sm:$0xff]  ;;  %v374_v48 = vld [vmem:[%s2168_s25 + $0xda0] sm:$0xff] }
  0x4a   : > { %371 = vst [vmem:[%s2173_s26 + $0x370] sm:$0xff] %v370_v46  ;;  %v376_v49 = vld [vmem:[%s2168_s25 + $0xda8] sm:$0xff]  ;;  %373 = vst [vmem:[%s2173_s26 + $0x378] sm:$0xff] %v372_v47  ;;  %v378_v50 = vld [vmem:[%s2168_s25 + $0xe40] sm:$0xff] }
  0x4b   : > { %375 = vst [vmem:[%s2173_s26 + $0x380] sm:$0xff] %v374_v48  ;;  %377 = vst [vmem:[%s2173_s26 + $0x388] sm:$0xff] %v376_v49  ;;  %v380_v51 = vld [vmem:[%s2168_s25 + $0xe48] sm:$0xff]  ;;  %v382_v52 = vld [vmem:[%s2168_s25 + $0xe50] sm:$0xff] }
  0x4c   : > { %379 = vst [vmem:[%s2173_s26 + $0x390] sm:$0xff] %v378_v50  ;;  %381 = vst [vmem:[%s2173_s26 + $0x398] sm:$0xff] %v380_v51  ;;  %v384_v53 = vld [vmem:[%s2168_s25 + $0xe58] sm:$0xff]  ;;  %v386_v54 = vld [vmem:[%s2168_s25 + $0xe60] sm:$0xff] }
  0x4d   : > { %383 = vst [vmem:[%s2173_s26 + $0x3a0] sm:$0xff] %v382_v52  ;;  %v388_v55 = vld [vmem:[%s2168_s25 + $0xe68] sm:$0xff]  ;;  %385 = vst [vmem:[%s2173_s26 + $0x3a8] sm:$0xff] %v384_v53  ;;  %v390_v56 = vld [vmem:[%s2168_s25 + $0xf00] sm:$0xff] }
  0x4e   : > { %387 = vst [vmem:[%s2173_s26 + $0x3b0] sm:$0xff] %v386_v54  ;;  %389 = vst [vmem:[%s2173_s26 + $0x3b8] sm:$0xff] %v388_v55  ;;  %v392_v57 = vld [vmem:[%s2168_s25 + $0xf08] sm:$0xff]  ;;  %v394_v58 = vld [vmem:[%s2168_s25 + $0xf10] sm:$0xff] }
  0x4f   : > { %391 = vst [vmem:[%s2173_s26 + $0x3c0] sm:$0xff] %v390_v56  ;;  %393 = vst [vmem:[%s2173_s26 + $0x3c8] sm:$0xff] %v392_v57  ;;  %v396_v59 = vld [vmem:[%s2168_s25 + $0xf18] sm:$0xff]  ;;  %v398_v60 = vld [vmem:[%s2168_s25 + $0xf20] sm:$0xff] }
  0x50   : > { %395 = vst [vmem:[%s2173_s26 + $0x3d0] sm:$0xff] %v394_v58  ;;  %v400_v61 = vld [vmem:[%s2168_s25 + $0xf28] sm:$0xff]  ;;  %397 = vst [vmem:[%s2173_s26 + $0x3d8] sm:$0xff] %v396_v59  ;;  %v402_v62 = vld [vmem:[%s2168_s25 + $0xfc0] sm:$0xff] }
  0x51   : > { %399 = vst [vmem:[%s2173_s26 + $0x3e0] sm:$0xff] %v398_v60  ;;  %401 = vst [vmem:[%s2173_s26 + $0x3e8] sm:$0xff] %v400_v61  ;;  %v404_v63 = vld [vmem:[%s2168_s25 + $0xfc8] sm:$0xff]  ;;  %v406_v0 = vld [vmem:[%s2168_s25 + $0xfd0] sm:$0xff] }
  0x52   : > { %403 = vst [vmem:[%s2173_s26 + $0x3f0] sm:$0xff] %v402_v62  ;;  %405 = vst [vmem:[%s2173_s26 + $0x3f8] sm:$0xff] %v404_v63  ;;  %v408_v1 = vld [vmem:[%s2168_s25 + $0xfd8] sm:$0xff]  ;;  %v410_v2 = vld [vmem:[%s2168_s25 + $0xfe0] sm:$0xff] }
  0x53   : > { %407 = vst [vmem:[%s2173_s26 + $0x400] sm:$0xff] %v406_v0  ;;  %v412_v3 = vld [vmem:[%s2168_s25 + $0xfe8] sm:$0xff]  ;;  %409 = vst [vmem:[%s2173_s26 + $0x408] sm:$0xff] %v408_v1  ;;  %v414_v4 = vld [vmem:[%s2168_s25 + $0x1080] sm:$0xff] }
  0x54   : > { %411 = vst [vmem:[%s2173_s26 + $0x410] sm:$0xff] %v410_v2  ;;  %413 = vst [vmem:[%s2173_s26 + $0x418] sm:$0xff] %v412_v3  ;;  %v416_v5 = vld [vmem:[%s2168_s25 + $0x1088] sm:$0xff]  ;;  %v418_v6 = vld [vmem:[%s2168_s25 + $0x1090] sm:$0xff] }
  0x55   : > { %415 = vst [vmem:[%s2173_s26 + $0x420] sm:$0xff] %v414_v4  ;;  %417 = vst [vmem:[%s2173_s26 + $0x428] sm:$0xff] %v416_v5  ;;  %v420_v7 = vld [vmem:[%s2168_s25 + $0x1098] sm:$0xff]  ;;  %v422_v8 = vld [vmem:[%s2168_s25 + $0x10a0] sm:$0xff] }
  0x56   : > { %419 = vst [vmem:[%s2173_s26 + $0x430] sm:$0xff] %v418_v6  ;;  %v424_v9 = vld [vmem:[%s2168_s25 + $0x10a8] sm:$0xff]  ;;  %421 = vst [vmem:[%s2173_s26 + $0x438] sm:$0xff] %v420_v7  ;;  %v426_v10 = vld [vmem:[%s2168_s25 + $0x1140] sm:$0xff] }
  0x57   : > { %423 = vst [vmem:[%s2173_s26 + $0x440] sm:$0xff] %v422_v8  ;;  %425 = vst [vmem:[%s2173_s26 + $0x448] sm:$0xff] %v424_v9  ;;  %v428_v11 = vld [vmem:[%s2168_s25 + $0x1148] sm:$0xff]  ;;  %v430_v12 = vld [vmem:[%s2168_s25 + $0x1150] sm:$0xff] }
  0x58   : > { %427 = vst [vmem:[%s2173_s26 + $0x450] sm:$0xff] %v426_v10  ;;  %429 = vst [vmem:[%s2173_s26 + $0x458] sm:$0xff] %v428_v11  ;;  %v432_v13 = vld [vmem:[%s2168_s25 + $0x1158] sm:$0xff]  ;;  %v434_v14 = vld [vmem:[%s2168_s25 + $0x1160] sm:$0xff] }
  0x59   : > { %431 = vst [vmem:[%s2173_s26 + $0x460] sm:$0xff] %v430_v12  ;;  %v436_v15 = vld [vmem:[%s2168_s25 + $0x1168] sm:$0xff]  ;;  %433 = vst [vmem:[%s2173_s26 + $0x468] sm:$0xff] %v432_v13 }
  0x5a   : > { %435 = vst [vmem:[%s2173_s26 + $0x470] sm:$0xff] %v434_v14  ;;  %437 = vst [vmem:[%s2173_s26 + $0x478] sm:$0xff] %v436_v15 }
  0x5b PF: > { %p1686_p5 = scmp.ge.s32.totalorder %s2111_s14, 1  ;;  %p442_p6 = scmp.lt.s32.totalorder %s2111_s14, 5 }
  0x5d   : > { %p443_p7 = pnand %p1686_p5, %p442_p6 }
  0x5e   : > { %s449_s27 = sand.u32 (!%p443_p7), 1, %s2103_s12   ;;  %v2466_v16 = vld [vmem:[%s2672_s0] sm:$0xff] (!%p443_p7)  ;;  %vm1357_vm0 = vcmask (!%p443_p7), 523264   ;;  %v2113_v26 = vmov (!%p443_p7), 0   ;;  %s473_s7 = smul.u32 (!%p443_p7), 12, %s1681_s15 }
  0x5f   : > { %446 = sbr.rel (%p443_p7) target bundleno = 460 (0x1cc), region = 51  ;;  %v2470_v17 = vcombine.high (!%p443_p7), %v2466_v16, %v2466_v16  ;;  %1870 = vset.pattern.permute.xlu0 (!%p443_p7), %v2113_v26  ;;  %v2530_v5 = vcombine.low (!%p443_p7), %v2466_v16, %v2466_v16 }
  0x60   : > { %s1844_s30 = smul.u32 (!%p443_p7), 1152, %s449_s27  ;;  %p474_p8 = scmp.lt.s32.totalorder (!%p443_p7), %s473_s7, 47 }
  0x61   : > { %1834 = vmatprep.mubr.msk.bf16.mxu0 (!%p443_p7), %vm1357_vm0, %v2470_v17  ;;  %1835 = vmatprep.mubr.msk.bf16.mxu1 (!%p443_p7), %vm1357_vm0, %v2470_v17 }
  0x62   : > { %s2476_s4 = scalar_lea.vmem (!%p443_p7), [#allocation2], %s1844_s30 }
  0x63   : > { %v1871_v18 = vld [vmem:[%s2476_s4 + $0x4] ss:$48 sps:$4 sm:$0xff] (!%p443_p7)   ;;  %v1873_v19 = vld [vmem:[%s2476_s4 + $0xc] ss:$48 sps:$4 sm:$0xff] (!%p443_p7)   ;;  %v1875_v20 = vld [vmem:[%s2476_s4] ss:$48 sps:$4 sm:$0xff] (!%p443_p7)  }
  0x64   : > { %1361 = vmatprep.subr.bf16.mxu0 (!%p443_p7), %v1871_v18  ;;  %v1876_v21 = vld [vmem:[%s2476_s4 + $0x8] ss:$48 sps:$4 sm:$0xff] (!%p443_p7)   ;;  %1402 = vmatprep.subr.bf16.mxu1 (!%p443_p7), %v1873_v19  ;;  %v1877_v22 = vld [vmem:[%s2476_s4 + $0x64] ss:$48 sps:$4 sm:$0xff] (!%p443_p7)   ;;  %v1879_v23 = vld [vmem:[%s2476_s4 + $0x6c] ss:$48 sps:$4 sm:$0xff] (!%p443_p7)  }
  0x65   : > { %1362 = vmatpush1.bf16.msra.mxu0 (!%p443_p7), %v1875_v20  ;;  %1403 = vmatpush1.bf16.msra.mxu1 (!%p443_p7), %v1876_v21  ;;  %v1881_v24 = vld [vmem:[%s2476_s4 + $0x60] ss:$48 sps:$4 sm:$0xff] (!%p443_p7)   ;;  %v1882_v25 = vld [vmem:[%s2476_s4 + $0x68] ss:$48 sps:$4 sm:$0xff] (!%p443_p7)   ;;  %v1883_v27 = vld [vmem:[%s2476_s4 + $0xc4] ss:$48 sps:$4 sm:$0xff] (!%p443_p7)  }
  0x66   : > { %1363 = vmatprep.subr.bf16.mxu0 %v1877_v22  ;;  %1404 = vmatprep.subr.bf16.mxu1 %v1879_v23  ;;  %v1885_v28 = vld [vmem:[%s2476_s4 + $0xcc] ss:$48 sps:$4 sm:$0xff]   ;;  %v1887_v29 = vld [vmem:[%s2476_s4 + $0xc0] ss:$48 sps:$4 sm:$0xff]   ;;  %v1888_v30 = vld [vmem:[%s2476_s4 + $0xc8] ss:$48 sps:$4 sm:$0xff]  }
  0x67   : > { %v1889_v31 = vld [vmem:[%s2476_s4 + $0x124] ss:$48 sps:$4 sm:$0xff]   ;;  %v1891_v32 = vld [vmem:[%s2476_s4 + $0x12c] ss:$48 sps:$4 sm:$0xff]   ;;  %v1893_v33 = vld [vmem:[%s2476_s4 + $0x120] ss:$48 sps:$4 sm:$0xff]  }
  0x68   : > { %v1894_v34 = vld [vmem:[%s2476_s4 + $0x128] ss:$48 sps:$4 sm:$0xff]   ;;  %v1895_v35 = vld [vmem:[%s2476_s4 + $0x184] ss:$48 sps:$4 sm:$0xff]   ;;  %v1897_v36 = vld [vmem:[%s2476_s4 + $0x18c] ss:$48 sps:$4 sm:$0xff]  }
  0x69   : > { %1364 = vmatpush1.bf16.msra.mxu0 %v1881_v24  ;;  %1405 = vmatpush1.bf16.msra.mxu1 %v1882_v25  ;;  %v1899_v37 = vld [vmem:[%s2476_s4 + $0x180] ss:$48 sps:$4 sm:$0xff]   ;;  %v1900_v38 = vld [vmem:[%s2476_s4 + $0x188] ss:$48 sps:$4 sm:$0xff]   ;;  %v1901_v39 = vld [vmem:[%s2476_s4 + $0x1e4] ss:$48 sps:$4 sm:$0xff]  }
  0x6a   : > { %1365 = vmatprep.subr.bf16.mxu0 %v1883_v27  ;;  %1406 = vmatprep.subr.bf16.mxu1 %v1885_v28  ;;  %v1903_v40 = vld [vmem:[%s2476_s4 + $0x1ec] ss:$48 sps:$4 sm:$0xff]   ;;  %v1905_v41 = vld [vmem:[%s2476_s4 + $0x1e0] ss:$48 sps:$4 sm:$0xff]   ;;  %v1906_v42 = vld [vmem:[%s2476_s4 + $0x1e8] ss:$48 sps:$4 sm:$0xff]  }
  0x6b   : > { %v1907_v43 = vld [vmem:[%s2476_s4 + $0x244] ss:$48 sps:$4 sm:$0xff]   ;;  %v1909_v44 = vld [vmem:[%s2476_s4 + $0x24c] ss:$48 sps:$4 sm:$0xff]   ;;  %v1911_v45 = vld [vmem:[%s2476_s4 + $0x240] ss:$48 sps:$4 sm:$0xff]  }
  0x6c   : > { %v1912_v46 = vld [vmem:[%s2476_s4 + $0x248] ss:$48 sps:$4 sm:$0xff]   ;;  %v1913_v47 = vld [vmem:[%s2476_s4 + $0x2a4] ss:$48 sps:$4 sm:$0xff]   ;;  %v1915_v48 = vld [vmem:[%s2476_s4 + $0x2ac] ss:$48 sps:$4 sm:$0xff]  }
  0x6d   : > { %1366 = vmatpush1.bf16.msra.mxu0 %v1887_v29  ;;  %1407 = vmatpush1.bf16.msra.mxu1 %v1888_v30  ;;  %v1917_v49 = vld [vmem:[%s2476_s4 + $0x2a0] ss:$48 sps:$4 sm:$0xff]   ;;  %v1918_v50 = vld [vmem:[%s2476_s4 + $0x2a8] ss:$48 sps:$4 sm:$0xff]   ;;  %v1919_v51 = vld [vmem:[%s2476_s4 + $0x304] ss:$48 sps:$4 sm:$0xff]  }
  0x6e   : > { %1367 = vmatprep.subr.bf16.mxu0 %v1889_v31  ;;  %1408 = vmatprep.subr.bf16.mxu1 %v1891_v32  ;;  %v1921_v52 = vld [vmem:[%s2476_s4 + $0x30c] ss:$48 sps:$4 sm:$0xff]   ;;  %v1923_v53 = vld [vmem:[%s2476_s4 + $0x300] ss:$48 sps:$4 sm:$0xff]   ;;  %v1924_v54 = vld [vmem:[%s2476_s4 + $0x308] ss:$48 sps:$4 sm:$0xff]  }
  0x6f   : > { %v1925_v55 = vld [vmem:[%s2476_s4 + $0x364] ss:$48 sps:$4 sm:$0xff]   ;;  %v1927_v56 = vld [vmem:[%s2476_s4 + $0x36c] ss:$48 sps:$4 sm:$0xff]   ;;  %v1929_v57 = vld [vmem:[%s2476_s4 + $0x360] ss:$48 sps:$4 sm:$0xff]  }
  0x70   : > { %v1930_v58 = vld [vmem:[%s2476_s4 + $0x368] ss:$48 sps:$4 sm:$0xff]   ;;  %v1931_v59 = vld [vmem:[%s2476_s4 + $0x3c4] ss:$48 sps:$4 sm:$0xff]   ;;  %v1933_v60 = vld [vmem:[%s2476_s4 + $0x3cc] ss:$48 sps:$4 sm:$0xff]  }
  0x71   : > { %1368 = vmatpush1.bf16.msra.mxu0 %v1893_v33  ;;  %1409 = vmatpush1.bf16.msra.mxu1 %v1894_v34  ;;  %v1935_v61 = vld [vmem:[%s2476_s4 + $0x3c0] ss:$48 sps:$4 sm:$0xff]   ;;  %v1936_v62 = vld [vmem:[%s2476_s4 + $0x3c8] ss:$48 sps:$4 sm:$0xff]   ;;  %v1937_v63 = vld [vmem:[%s2476_s4 + $0x424] ss:$48 sps:$4 sm:$0xff]  }
  0x72   : > { %1369 = vmatprep.subr.bf16.mxu0 %v1895_v35  ;;  %1410 = vmatprep.subr.bf16.mxu1 %v1897_v36  ;;  %v1939_v0 = vld [vmem:[%s2476_s4 + $0x42c] ss:$48 sps:$4 sm:$0xff]   ;;  %v1941_v1 = vld [vmem:[%s2476_s4 + $0x420] ss:$48 sps:$4 sm:$0xff]   ;;  %v1942_v2 = vld [vmem:[%s2476_s4 + $0x428] ss:$48 sps:$4 sm:$0xff]  }
  0x73   : > { %v1947_v3 = vld [vmem:[%s2476_s4 + $0x14] ss:$48 sps:$4 sm:$0xff]   ;;  %v1950_v4 = vld [vmem:[%s2476_s4 + $0x1c] ss:$48 sps:$4 sm:$0xff]   ;;  %v1945_v6 = vld [vmem:[%s2476_s4 + $0x10] ss:$48 sps:$4 sm:$0xff]  }
  0x74   : > { %v1948_v7 = vld [vmem:[%s2476_s4 + $0x18] ss:$48 sps:$4 sm:$0xff]   ;;  %v1953_v8 = vld [vmem:[%s2476_s4 + $0x74] ss:$48 sps:$4 sm:$0xff]   ;;  %v1956_v9 = vld [vmem:[%s2476_s4 + $0x7c] ss:$48 sps:$4 sm:$0xff]  }
  0x75   : > { %1370 = vmatpush1.bf16.msra.mxu0 %v1899_v37  ;;  %1411 = vmatpush1.bf16.msra.mxu1 %v1900_v38  ;;  %v1951_v10 = vld [vmem:[%s2476_s4 + $0x70] ss:$48 sps:$4 sm:$0xff]   ;;  %v1954_v11 = vld [vmem:[%s2476_s4 + $0x78] ss:$48 sps:$4 sm:$0xff]   ;;  %v1959_v12 = vld [vmem:[%s2476_s4 + $0xd4] ss:$48 sps:$4 sm:$0xff]  }
  0x76   : > { %1371 = vmatprep.subr.bf16.mxu0 %v1901_v39  ;;  %1412 = vmatprep.subr.bf16.mxu1 %v1903_v40  ;;  %v1962_v13 = vld [vmem:[%s2476_s4 + $0xdc] ss:$48 sps:$4 sm:$0xff]   ;;  %v1957_v14 = vld [vmem:[%s2476_s4 + $0xd0] ss:$48 sps:$4 sm:$0xff]   ;;  %v1960_v15 = vld [vmem:[%s2476_s4 + $0xd8] ss:$48 sps:$4 sm:$0xff]  }
  0x77   : > { %v1965_v16 = vld [vmem:[%s2476_s4 + $0x134] ss:$48 sps:$4 sm:$0xff]   ;;  %v1968_v18 = vld [vmem:[%s2476_s4 + $0x13c] ss:$48 sps:$4 sm:$0xff]   ;;  %v1963_v19 = vld [vmem:[%s2476_s4 + $0x130] ss:$48 sps:$4 sm:$0xff]  }
  0x78   : > { %v1966_v20 = vld [vmem:[%s2476_s4 + $0x138] ss:$48 sps:$4 sm:$0xff]   ;;  %v1971_v21 = vld [vmem:[%s2476_s4 + $0x194] ss:$48 sps:$4 sm:$0xff]   ;;  %v1974_v22 = vld [vmem:[%s2476_s4 + $0x19c] ss:$48 sps:$4 sm:$0xff]  }
  0x79   : > { %1372 = vmatpush1.bf16.msra.mxu0 %v1905_v41  ;;  %1413 = vmatpush1.bf16.msra.mxu1 %v1906_v42  ;;  %v1969_v23 = vld [vmem:[%s2476_s4 + $0x190] ss:$48 sps:$4 sm:$0xff]   ;;  %v1972_v24 = vld [vmem:[%s2476_s4 + $0x198] ss:$48 sps:$4 sm:$0xff]   ;;  %v1977_v25 = vld [vmem:[%s2476_s4 + $0x1f4] ss:$48 sps:$4 sm:$0xff]  }
  0x7a   : > { %1373 = vmatprep.subr.bf16.mxu0 %v1907_v43  ;;  %1414 = vmatprep.subr.bf16.mxu1 %v1909_v44  ;;  %v1980_v26 = vld [vmem:[%s2476_s4 + $0x1fc] ss:$48 sps:$4 sm:$0xff]   ;;  %v1975_v27 = vld [vmem:[%s2476_s4 + $0x1f0] ss:$48 sps:$4 sm:$0xff]   ;;  %v1978_v28 = vld [vmem:[%s2476_s4 + $0x1f8] ss:$48 sps:$4 sm:$0xff]  }
  0x7b   : > { %v1983_v29 = vld [vmem:[%s2476_s4 + $0x254] ss:$48 sps:$4 sm:$0xff]   ;;  %v1986_v30 = vld [vmem:[%s2476_s4 + $0x25c] ss:$48 sps:$4 sm:$0xff]   ;;  %v1981_v31 = vld [vmem:[%s2476_s4 + $0x250] ss:$48 sps:$4 sm:$0xff]  }
  0x7c   : > { %v1984_v32 = vld [vmem:[%s2476_s4 + $0x258] ss:$48 sps:$4 sm:$0xff]   ;;  %v1989_v33 = vld [vmem:[%s2476_s4 + $0x2b4] ss:$48 sps:$4 sm:$0xff]   ;;  %v1992_v34 = vld [vmem:[%s2476_s4 + $0x2bc] ss:$48 sps:$4 sm:$0xff]  }
  0x7d   : > { %1374 = vmatpush1.bf16.msra.mxu0 %v1911_v45  ;;  %1415 = vmatpush1.bf16.msra.mxu1 %v1912_v46  ;;  %v1987_v35 = vld [vmem:[%s2476_s4 + $0x2b0] ss:$48 sps:$4 sm:$0xff]   ;;  %v1990_v36 = vld [vmem:[%s2476_s4 + $0x2b8] ss:$48 sps:$4 sm:$0xff]   ;;  %v1995_v37 = vld [vmem:[%s2476_s4 + $0x314] ss:$48 sps:$4 sm:$0xff]  }
  0x7e   : > { %1375 = vmatprep.subr.bf16.mxu0 %v1913_v47  ;;  %1416 = vmatprep.subr.bf16.mxu1 %v1915_v48  ;;  %v1998_v38 = vld [vmem:[%s2476_s4 + $0x31c] ss:$48 sps:$4 sm:$0xff]   ;;  %v1993_v39 = vld [vmem:[%s2476_s4 + $0x310] ss:$48 sps:$4 sm:$0xff]   ;;  %v1996_v40 = vld [vmem:[%s2476_s4 + $0x318] ss:$48 sps:$4 sm:$0xff]  }
  0x7f   : > { %v2001_v41 = vld [vmem:[%s2476_s4 + $0x374] ss:$48 sps:$4 sm:$0xff]   ;;  %v2004_v42 = vld [vmem:[%s2476_s4 + $0x37c] ss:$48 sps:$4 sm:$0xff]   ;;  %v1999_v43 = vld [vmem:[%s2476_s4 + $0x370] ss:$48 sps:$4 sm:$0xff]  }
  0x80   : > { %v2002_v44 = vld [vmem:[%s2476_s4 + $0x378] ss:$48 sps:$4 sm:$0xff]   ;;  %v2007_v45 = vld [vmem:[%s2476_s4 + $0x3d4] ss:$48 sps:$4 sm:$0xff]   ;;  %v2010_v46 = vld [vmem:[%s2476_s4 + $0x3dc] ss:$48 sps:$4 sm:$0xff]  }
  0x81   : > { %1376 = vmatpush1.bf16.msra.mxu0 %v1917_v49  ;;  %1417 = vmatpush1.bf16.msra.mxu1 %v1918_v50  ;;  %v2005_v47 = vld [vmem:[%s2476_s4 + $0x3d0] ss:$48 sps:$4 sm:$0xff]   ;;  %v2008_v48 = vld [vmem:[%s2476_s4 + $0x3d8] ss:$48 sps:$4 sm:$0xff]   ;;  %v2013_v49 = vld [vmem:[%s2476_s4 + $0x434] ss:$48 sps:$4 sm:$0xff]  }
  0x82   : > { %1377 = vmatprep.subr.bf16.mxu0 %v1919_v51  ;;  %1418 = vmatprep.subr.bf16.mxu1 %v1921_v52  ;;  %v2016_v50 = vld [vmem:[%s2476_s4 + $0x43c] ss:$48 sps:$4 sm:$0xff]   ;;  %v625_v51 = vld [vmem:[%s2674_s2] sm:$0xff]  ;;  %s2680_s7 = smov (!%p474_p8, %s473_s7), 47 }
  0x83   : > { %v2011_v52 = vld [vmem:[%s2476_s4 + $0x430] ss:$48 sps:$4 sm:$0xff]   ;;  %628 = vperm.xlu0 %1870, %v625_v51   ;;  %s1687_s8 = sshll.u32 %s2680_s7, 3 }
  0x84   : > { %s2648_s11 = scalar_lea.vmem %s2675_s3, %s1687_s8 }
  0x85   : > { %1378 = vmatpush1.bf16.msra.mxu0 %v1923_v53  ;;  %1419 = vmatpush1.bf16.msra.mxu1 %v1924_v54  ;;  %v2014_v53 = vld [vmem:[%s2476_s4 + $0x438] ss:$48 sps:$4 sm:$0xff]   ;;  %v2019_v54 = vld [vmem:[%s2476_s4 + $0x24] ss:$48 sps:$4 sm:$0xff]  }
  0x86   : > { %1379 = vmatprep.subr.bf16.mxu0 %v1925_v55  ;;  %1420 = vmatprep.subr.bf16.mxu1 %v1927_v56  ;;  %v2022_v55 = vld [vmem:[%s2476_s4 + $0x2c] ss:$48 sps:$4 sm:$0xff]   ;;  %v2017_v56 = vld [vmem:[%s2476_s4 + $0x20] ss:$48 sps:$4 sm:$0xff]  }
  0x89   : > { %1380 = vmatpush1.bf16.msra.mxu0 %v1929_v57  ;;  %1421 = vmatpush1.bf16.msra.mxu1 %v1930_v58  ;;  %v2020_v57 = vld [vmem:[%s2476_s4 + $0x28] ss:$48 sps:$4 sm:$0xff]   ;;  %v2025_v58 = vld [vmem:[%s2476_s4 + $0x84] ss:$48 sps:$4 sm:$0xff]  }
  0x8a   : > { %1381 = vmatprep.subr.bf16.mxu0 %v1931_v59  ;;  %1422 = vmatprep.subr.bf16.mxu1 %v1933_v60  ;;  %v2028_v59 = vld [vmem:[%s2476_s4 + $0x8c] ss:$48 sps:$4 sm:$0xff]   ;;  %v2023_v60 = vld [vmem:[%s2476_s4 + $0x80] ss:$48 sps:$4 sm:$0xff]  }
  0x8d   : > { %1382 = vmatpush1.bf16.msra.mxu0 %v1935_v61  ;;  %1423 = vmatpush1.bf16.msra.mxu1 %v1936_v62  ;;  %v2026_v61 = vld [vmem:[%s2476_s4 + $0x88] ss:$48 sps:$4 sm:$0xff]   ;;  %v2031_v62 = vld [vmem:[%s2476_s4 + $0xe4] ss:$48 sps:$4 sm:$0xff]  }
  0x8e   : > { %1383 = vmatprep.subr.bf16.mxu0 %v1937_v63  ;;  %1424 = vmatprep.subr.bf16.mxu1 %v1939_v0  ;;  %v2034_v63 = vld [vmem:[%s2476_s4 + $0xec] ss:$48 sps:$4 sm:$0xff]   ;;  %v2029_v0 = vld [vmem:[%s2476_s4 + $0xe0] ss:$48 sps:$4 sm:$0xff]  }
  0x91   : > { %1384 = vmatpush1.bf16.msra.mxu0 %v1941_v1  ;;  %1425 = vmatpush1.bf16.msra.mxu1 %v1942_v2  ;;  %v2032_v1 = vld [vmem:[%s2476_s4 + $0xe8] ss:$48 sps:$4 sm:$0xff]   ;;  %v2037_v2 = vld [vmem:[%s2476_s4 + $0x144] ss:$48 sps:$4 sm:$0xff]  }
  0x92   : > { %1443 = vmatprep.subr.bf16.mxu0 %v1947_v3  ;;  %1484 = vmatprep.subr.bf16.mxu1 %v1950_v4  ;;  %v2040_v3 = vld [vmem:[%s2476_s4 + $0x14c] ss:$48 sps:$4 sm:$0xff]   ;;  %v2035_v4 = vld [vmem:[%s2476_s4 + $0x140] ss:$48 sps:$4 sm:$0xff]  }
  0x94   : > { %1394 = vmatmul.mubr.bf16.vlgmr.msra.gmra.mrb[0].mxu0 %v2530_v5  ;;  %1435 = vmatmul.mubr.bf16.vlgmr.msra.gmra.mrb[0].mxu1 %v2530_v5 }
  0x95   : > { %1444 = vmatpush1.bf16.msra.mxu0 %v1945_v6  ;;  %1485 = vmatpush1.bf16.msra.mxu1 %v1948_v7  ;;  %v2038_v6 = vld [vmem:[%s2476_s4 + $0x148] ss:$48 sps:$4 sm:$0xff]   ;;  %v2046_v7 = vld [vmem:[%s2476_s4 + $0x1ac] ss:$48 sps:$4 sm:$0xff]  }
  0x96   : > { %1445 = vmatprep.subr.bf16.mxu0 %v1953_v8  ;;  %1486 = vmatprep.subr.bf16.mxu1 %v1956_v9  ;;  %v2041_v8 = vld [vmem:[%s2476_s4 + $0x1a0] ss:$48 sps:$4 sm:$0xff]   ;;  %v2044_v9 = vld [vmem:[%s2476_s4 + $0x1a8] ss:$48 sps:$4 sm:$0xff]  }
  0x97   : > { %1836 = vmatprep.mubr.msk.bf16.mxu0 %vm1357_vm0, %v2470_v17  ;;  %1837 = vmatprep.mubr.msk.bf16.mxu1 %vm1357_vm0, %v2470_v17 }
  0x99   : > { %1446 = vmatpush1.bf16.msra.mxu0 %v1951_v10  ;;  %1487 = vmatpush1.bf16.msra.mxu1 %v1954_v11  ;;  %v2049_v10 = vld [vmem:[%s2476_s4 + $0x204] ss:$48 sps:$4 sm:$0xff]   ;;  %v2052_v11 = vld [vmem:[%s2476_s4 + $0x20c] ss:$48 sps:$4 sm:$0xff]  }
  0x9a   : > { %1447 = vmatprep.subr.bf16.mxu0 %v1959_v12  ;;  %1488 = vmatprep.subr.bf16.mxu1 %v1962_v13  ;;  %v2047_v12 = vld [vmem:[%s2476_s4 + $0x200] ss:$48 sps:$4 sm:$0xff]   ;;  %v2050_v13 = vld [vmem:[%s2476_s4 + $0x208] ss:$48 sps:$4 sm:$0xff]  }
  0x9d   : > { %1448 = vmatpush1.bf16.msra.mxu0 %v1957_v14  ;;  %1489 = vmatpush1.bf16.msra.mxu1 %v1960_v15  ;;  %v2055_v14 = vld [vmem:[%s2476_s4 + $0x264] ss:$48 sps:$4 sm:$0xff]   ;;  %v2058_v15 = vld [vmem:[%s2476_s4 + $0x26c] ss:$48 sps:$4 sm:$0xff]  }
  0x9e   : > { %1449 = vmatprep.subr.bf16.mxu0 %v1965_v16  ;;  %1490 = vmatprep.subr.bf16.mxu1 %v1968_v18  ;;  %v2053_v16 = vld [vmem:[%s2476_s4 + $0x260] ss:$48 sps:$4 sm:$0xff]   ;;  %v2056_v18 = vld [vmem:[%s2476_s4 + $0x268] ss:$48 sps:$4 sm:$0xff]  }
  0xa1   : > { %1450 = vmatpush1.bf16.msra.mxu0 %v1963_v19  ;;  %1491 = vmatpush1.bf16.msra.mxu1 %v1966_v20  ;;  %v2061_v19 = vld [vmem:[%s2476_s4 + $0x2c4] ss:$48 sps:$4 sm:$0xff]   ;;  %v2064_v20 = vld [vmem:[%s2476_s4 + $0x2cc] ss:$48 sps:$4 sm:$0xff]  }
  0xa2   : > { %1451 = vmatprep.subr.bf16.mxu0 %v1971_v21  ;;  %1492 = vmatprep.subr.bf16.mxu1 %v1974_v22  ;;  %v2059_v21 = vld [vmem:[%s2476_s4 + $0x2c0] ss:$48 sps:$4 sm:$0xff]   ;;  %v2062_v22 = vld [vmem:[%s2476_s4 + $0x2c8] ss:$48 sps:$4 sm:$0xff]  }
  0xa5   : > { %1452 = vmatpush1.bf16.msra.mxu0 %v1969_v23  ;;  %1493 = vmatpush1.bf16.msra.mxu1 %v1972_v24  ;;  %v2067_v23 = vld [vmem:[%s2476_s4 + $0x324] ss:$48 sps:$4 sm:$0xff]   ;;  %v2070_v24 = vld [vmem:[%s2476_s4 + $0x32c] ss:$48 sps:$4 sm:$0xff]  }
  0xa6   : > { %1453 = vmatprep.subr.bf16.mxu0 %v1977_v25  ;;  %1494 = vmatprep.subr.bf16.mxu1 %v1980_v26  ;;  %v2065_v25 = vld [vmem:[%s2476_s4 + $0x320] ss:$48 sps:$4 sm:$0xff]   ;;  %v2068_v26 = vld [vmem:[%s2476_s4 + $0x328] ss:$48 sps:$4 sm:$0xff]  }
  0xa9   : > { %1454 = vmatpush1.bf16.msra.mxu0 %v1975_v27  ;;  %1495 = vmatpush1.bf16.msra.mxu1 %v1978_v28  ;;  %v2073_v27 = vld [vmem:[%s2476_s4 + $0x384] ss:$48 sps:$4 sm:$0xff]   ;;  %v2076_v28 = vld [vmem:[%s2476_s4 + $0x38c] ss:$48 sps:$4 sm:$0xff]  }
  0xaa   : > { %1455 = vmatprep.subr.bf16.mxu0 %v1983_v29  ;;  %1496 = vmatprep.subr.bf16.mxu1 %v1986_v30  ;;  %v2071_v29 = vld [vmem:[%s2476_s4 + $0x380] ss:$48 sps:$4 sm:$0xff]   ;;  %v2074_v30 = vld [vmem:[%s2476_s4 + $0x388] ss:$48 sps:$4 sm:$0xff]  }
  0xad   : > { %1456 = vmatpush1.bf16.msra.mxu0 %v1981_v31  ;;  %1497 = vmatpush1.bf16.msra.mxu1 %v1984_v32  ;;  %v2079_v31 = vld [vmem:[%s2476_s4 + $0x3e4] ss:$48 sps:$4 sm:$0xff]   ;;  %v2082_v32 = vld [vmem:[%s2476_s4 + $0x3ec] ss:$48 sps:$4 sm:$0xff]  }
  0xae   : > { %1457 = vmatprep.subr.bf16.mxu0 %v1989_v33  ;;  %1498 = vmatprep.subr.bf16.mxu1 %v1992_v34  ;;  %v2077_v33 = vld [vmem:[%s2476_s4 + $0x3e0] ss:$48 sps:$4 sm:$0xff]   ;;  %v2080_v34 = vld [vmem:[%s2476_s4 + $0x3e8] ss:$48 sps:$4 sm:$0xff]  }
  0xb1   : > { %1458 = vmatpush1.bf16.msra.mxu0 %v1987_v35  ;;  %1499 = vmatpush1.bf16.msra.mxu1 %v1990_v36  ;;  %v2085_v35 = vld [vmem:[%s2476_s4 + $0x444] ss:$48 sps:$4 sm:$0xff]   ;;  %v2088_v36 = vld [vmem:[%s2476_s4 + $0x44c] ss:$48 sps:$4 sm:$0xff]  }
  0xb2   : > { %1459 = vmatprep.subr.bf16.mxu0 %v1995_v37  ;;  %1500 = vmatprep.subr.bf16.mxu1 %v1998_v38  ;;  %v2083_v37 = vld [vmem:[%s2476_s4 + $0x440] ss:$48 sps:$4 sm:$0xff]   ;;  %v2086_v38 = vld [vmem:[%s2476_s4 + $0x448] ss:$48 sps:$4 sm:$0xff]  }
  0xb5   : > { %1460 = vmatpush1.bf16.msra.mxu0 %v1993_v39  ;;  %1501 = vmatpush1.bf16.msra.mxu1 %v1996_v40 }
  0xb6   : > { %1461 = vmatprep.subr.bf16.mxu0 %v2001_v41  ;;  %1502 = vmatprep.subr.bf16.mxu1 %v2004_v42 }
  0xb9   : > { %1462 = vmatpush1.bf16.msra.mxu0 %v1999_v43  ;;  %1503 = vmatpush1.bf16.msra.mxu1 %v2002_v44 }
  0xba   : > { %1463 = vmatprep.subr.bf16.mxu0 %v2007_v45  ;;  %1504 = vmatprep.subr.bf16.mxu1 %v2010_v46 }
  0xbd   : > { %1464 = vmatpush1.bf16.msra.mxu0 %v2005_v47  ;;  %1505 = vmatpush1.bf16.msra.mxu1 %v2008_v48 }
  0xbe   : > { %1465 = vmatprep.subr.bf16.mxu0 %v2013_v49  ;;  %1506 = vmatprep.subr.bf16.mxu1 %v2016_v50 }
  0xc1   : > { %1466 = vmatpush1.bf16.msra.mxu0 %v2011_v52  ;;  %1507 = vmatpush1.bf16.msra.mxu1 %v2014_v53 }
  0xc2   : > { %1525 = vmatprep.subr.bf16.mxu0 %v2019_v54  ;;  %1566 = vmatprep.subr.bf16.mxu1 %v2022_v55 }
  0xc4   : > { %1476 = vmatmul.mubr.bf16.vlgmr.msra.gmra.mrb[4].mxu0 %v2530_v5  ;;  %1517 = vmatmul.mubr.bf16.vlgmr.msra.gmra.mrb[4].mxu1 %v2530_v5 }
  0xc5   : > { %1526 = vmatpush1.bf16.msra.mxu0 %v2017_v56  ;;  %1567 = vmatpush1.bf16.msra.mxu1 %v2020_v57 }
  0xc6   : > { %1527 = vmatprep.subr.bf16.mxu0 %v2025_v58  ;;  %1568 = vmatprep.subr.bf16.mxu1 %v2028_v59 }
  0xc7   : > { %1838 = vmatprep.mubr.msk.bf16.mxu0 %vm1357_vm0, %v2470_v17  ;;  %1839 = vmatprep.mubr.msk.bf16.mxu1 %vm1357_vm0, %v2470_v17  ;;  %v2043_v17 = vld [vmem:[%s2476_s4 + $0x1a4] ss:$48 sps:$4 sm:$0xff]  }
  0xc9   : > { %1528 = vmatpush1.bf16.msra.mxu0 %v2023_v60  ;;  %1569 = vmatpush1.bf16.msra.mxu1 %v2026_v61 }
  0xca   : > { %1529 = vmatprep.subr.bf16.mxu0 %v2031_v62  ;;  %1570 = vmatprep.subr.bf16.mxu1 %v2034_v63 }
  0xcd   : > { %1530 = vmatpush1.bf16.msra.mxu0 %v2029_v0  ;;  %1571 = vmatpush1.bf16.msra.mxu1 %v2032_v1 }
  0xce   : > { %1531 = vmatprep.subr.bf16.mxu0 %v2037_v2  ;;  %1572 = vmatprep.subr.bf16.mxu1 %v2040_v3 }
  0xd1   : > { %1532 = vmatpush1.bf16.msra.mxu0 %v2035_v4  ;;  %1573 = vmatpush1.bf16.msra.mxu1 %v2038_v6 }
  0xd2   : > { %1533 = vmatprep.subr.bf16.mxu0 %v2043_v17  ;;  %1574 = vmatprep.subr.bf16.mxu1 %v2046_v7 }
  0xd5   : > { %1534 = vmatpush1.bf16.msra.mxu0 %v2041_v8  ;;  %1575 = vmatpush1.bf16.msra.mxu1 %v2044_v9 }
  0xd6   : > { %1535 = vmatprep.subr.bf16.mxu0 %v2049_v10  ;;  %1576 = vmatprep.subr.bf16.mxu1 %v2052_v11 }
  0xd9   : > { %1536 = vmatpush1.bf16.msra.mxu0 %v2047_v12  ;;  %1577 = vmatpush1.bf16.msra.mxu1 %v2050_v13 }
  0xda   : > { %1537 = vmatprep.subr.bf16.mxu0 %v2055_v14  ;;  %1578 = vmatprep.subr.bf16.mxu1 %v2058_v15 }
  0xdd   : > { %1538 = vmatpush1.bf16.msra.mxu0 %v2053_v16  ;;  %1579 = vmatpush1.bf16.msra.mxu1 %v2056_v18 }
  0xde   : > { %1539 = vmatprep.subr.bf16.mxu0 %v2061_v19  ;;  %1580 = vmatprep.subr.bf16.mxu1 %v2064_v20 }
  0xe1   : > { %1540 = vmatpush1.bf16.msra.mxu0 %v2059_v21  ;;  %1581 = vmatpush1.bf16.msra.mxu1 %v2062_v22 }
  0xe2   : > { %1541 = vmatprep.subr.bf16.mxu0 %v2067_v23  ;;  %1582 = vmatprep.subr.bf16.mxu1 %v2070_v24 }
  0xe5   : > { %1542 = vmatpush1.bf16.msra.mxu0 %v2065_v25  ;;  %1583 = vmatpush1.bf16.msra.mxu1 %v2068_v26 }
  0xe6   : > { %1543 = vmatprep.subr.bf16.mxu0 %v2073_v27  ;;  %1584 = vmatprep.subr.bf16.mxu1 %v2076_v28 }
  0xe9   : > { %1544 = vmatpush1.bf16.msra.mxu0 %v2071_v29  ;;  %1585 = vmatpush1.bf16.msra.mxu1 %v2074_v30 }
  0xea   : > { %1545 = vmatprep.subr.bf16.mxu0 %v2079_v31  ;;  %1586 = vmatprep.subr.bf16.mxu1 %v2082_v32 }
  0xed   : > { %1546 = vmatpush1.bf16.msra.mxu0 %v2077_v33  ;;  %1587 = vmatpush1.bf16.msra.mxu1 %v2080_v34 }
  0xee   : > { %1547 = vmatprep.subr.bf16.mxu0 %v2085_v35  ;;  %1588 = vmatprep.subr.bf16.mxu1 %v2088_v36 }
  0xf1   : > { %1548 = vmatpush1.bf16.msra.mxu0 %v2083_v37  ;;  %1589 = vmatpush1.bf16.msra.mxu1 %v2086_v38 }
  0xf4   : > { %1558 = vmatmul.mubr.bf16.vlgmr.msra.gmra.mrb[8].mxu0 %v2530_v5  ;;  %1599 = vmatmul.mubr.bf16.vlgmr.msra.gmra.mrb[8].mxu1 %v2530_v5 }
 0x102   : > { %v629_v39 = vpop.permute.xlu0 %628 }
 0x167   : > { %v1395_v40 = vpop.f32.mrb[0].mxu0  ;;  %v1436_v41 = vpop.f32.mrb[0].mxu1 }
 0x168   : > { %v1396_v42 = vadd.f32 %v1395_v40, %v629_v39  ;;  %v1437_v43 = vadd.f32 %v1436_v41, %v629_v39  ;;  %v1397_v5 = vpop.f32.mrb[1].mxu0  ;;  %v1438_v44 = vpop.f32.mrb[1].mxu1 }
 0x169   : > { %v1398_v45 = vadd.f32 %v1397_v5, %v629_v39  ;;  %v1439_v46 = vadd.f32 %v1438_v44, %v629_v39  ;;  %v1399_v47 = vpop.f32.mrb[2].mxu0  ;;  %v1440_v48 = vpop.f32.mrb[2].mxu1 }
 0x16a   : > { %1607 = vst [vmem:[%s2648_s11] sm:$0xff] %v1396_v42  ;;  %1609 = vst [vmem:[%s2648_s11 + $0x10] sm:$0xff] %v1437_v43  ;;  %v1400_v49 = vpop.f32.mrb[3].mxu0  ;;  %v1441_v50 = vpop.f32.mrb[3].mxu1 }
 0x16b   : > { %1608 = vst [vmem:[%s2648_s11 + $0x8] sm:$0xff] %v1398_v45  ;;  %1610 = vst [vmem:[%s2648_s11 + $0x18] sm:$0xff] %v1439_v46 }
 0x197   : > { %v1477_v51 = vpop.f32.mrb[4].mxu0  ;;  %v1518_v52 = vpop.f32.mrb[4].mxu1 }
 0x198   : > { %v1478_v53 = vadd.f32 %v1477_v51, %v629_v39  ;;  %v1519_v54 = vadd.f32 %v1518_v52, %v629_v39  ;;  %v1479_v55 = vpop.f32.mrb[5].mxu0  ;;  %v1520_v56 = vpop.f32.mrb[5].mxu1 }
 0x199   : > { %v1480_v57 = vadd.f32 %v1479_v55, %v629_v39  ;;  %v1521_v58 = vadd.f32 %v1520_v56, %v629_v39  ;;  %v1481_v59 = vpop.f32.mrb[6].mxu0  ;;  %v1522_v60 = vpop.f32.mrb[6].mxu1 }
 0x19a   : > { %1611 = vst [vmem:[%s2648_s11 + $0x20] sm:$0xff] %v1478_v53  ;;  %1613 = vst [vmem:[%s2648_s11 + $0x30] sm:$0xff] %v1519_v54  ;;  %v1482_v61 = vpop.f32.mrb[7].mxu0  ;;  %v1523_v62 = vpop.f32.mrb[7].mxu1 }
 0x19b   : > { %1612 = vst [vmem:[%s2648_s11 + $0x28] sm:$0xff] %v1480_v57  ;;  %1614 = vst [vmem:[%s2648_s11 + $0x38] sm:$0xff] %v1521_v58 }
 0x1c7   : > { %v1559_v63 = vpop.f32.mrb[8].mxu0  ;;  %v1600_v0 = vpop.f32.mrb[8].mxu1 }
 0x1c8   : > { %v1560_v1 = vadd.f32 %v1559_v63, %v629_v39  ;;  %v1601_v2 = vadd.f32 %v1600_v0, %v629_v39  ;;  %v1561_v3 = vpop.f32.mrb[9].mxu0  ;;  %v1602_v4 = vpop.f32.mrb[9].mxu1 }
 0x1c9   : > { %v1562_v6 = vadd.f32 %v1561_v3, %v629_v39  ;;  %v1603_v17 = vadd.f32 %v1602_v4, %v629_v39  ;;  %v1563_v7 = vpop.f32.mrb[10].mxu0  ;;  %v1604_v8 = vpop.f32.mrb[10].mxu1 }
 0x1ca   : > { %1615 = vst [vmem:[%s2648_s11 + $0x40] sm:$0xff] %v1560_v1  ;;  %1617 = vst [vmem:[%s2648_s11 + $0x50] sm:$0xff] %v1601_v2  ;;  %v1564_v9 = vpop.f32.mrb[11].mxu0  ;;  %v1605_v10 = vpop.f32.mrb[11].mxu1 }
 0x1cb   : > { %1616 = vst [vmem:[%s2648_s11 + $0x48] sm:$0xff] %v1562_v6  ;;  %1618 = vst [vmem:[%s2648_s11 + $0x58] sm:$0xff] %v1603_v17 }
 0x1cc PF: > { %p10_p9 = scmp.ge.s32.totalorder %s2151_s16, 6   ;;  %s2676_s12 = smov %s2107_s13 }
 0x1cd   : > { %s2677_s13 = smov %s2160_s19  ;;  %s2678_s14 = smov %s2151_s16 }
 0x1ce   :  { %12 = sbr.rel (!%p10_p9) target bundleno = 2 (0x2), region = 90 }

// kernel: forward.8
= control target key start
LH: loop header
LB: loop body
LE: loop exit
PB: predicated region body
PF: predicated region fallthrough
CT: control target
= control target key end

     0   :  { %s998_s9 = smov 0   ;;  %s1000_s10 = smov 0   ;;  %s1244_s0 = inlined_call_operand.vmem [shape: bf16[16,128], index: 0, kind: input, shape index: {}]   ;;  %s1245_s1 = inlined_call_operand.vmem [shape: bf16[128,1536], index: 1, kind: input, shape index: {}]   ;;  %s1246_s2 = inlined_call_operand.vmem [shape: f32[16,1536], index: 2, kind: output, shape index: {}]  }
   0x1   :  { %s1002_s11 = smov 0  }
   0x2 LB: > { %s797_s12 = sadd.s32 4294967295, %s980_s11   ;;  %s1015_s13 = sadd.s32 1, %s980_s11   ;;  %s980_s11 = sphi %s1002_s11, %s1250_s11   ;;  %s976_s10 = sphi %s1000_s10, %s1249_s10   ;;  %s972_s9 = sphi %s998_s9, %s1248_s9  }
   0x3   : > { %s37_s14 = ssub.s32 %s980_s11, %s1015_s13  ;;  %s40_s15 = sadd.s32 1, %s976_s10 }
   0x4   : > { %p38_p0 = scmp.eq.s32.totalorder %s37_s14, 0  ;;  %p47_p1 = scmp.ne.s32.totalorder %s976_s10, %s972_s9 }
   0x5   : > { %p48_p2 = scmp.eq.s32.totalorder %s980_s11, 0  ;;  %p77_p3 = scmp.eq.s32.totalorder %s797_s12, 1 }
   0x6   : > { %s1026_s16 = scalar_select %p38_p0, %s976_s10, %s40_s15  }
   0x7   : > { %p49_p4 = por %p48_p2, %p47_p1  ;;  %p1028_p5 = por %p77_p3, %p47_p1 }
   0x8   : > { %p800_p6 = scmp.ge.s32.totalorder %s980_s11, 2 }
   0xa   : > { %102 = sbr.rel (%p800_p6) target bundleno = 46 (0x2e), region = 20 }
  0x11   : > { %105 = sbr.rel (!%p49_p4) target bundleno = 46 (0x2e), region = 24  ;;  %s107_s18 = sand.u32 (%p49_p4), 1, %s976_s10  }
  0x12   : > { %s855_s19 = smul.u32 (%p49_p4), 24, %s980_s11 }
  0x13   : > { %s857_s20 = smul.u32 (%p49_p4), 384, %s107_s18 }
  0x14   : > { %s1038_s23 = scalar_lea.vmem (%p49_p4), %s1245_s1, %s855_s19 }
  0x15   : > { %v125_v0 = vld [vmem:[%s1038_s23] sm:$0xff] (%p49_p4)  ;;  %v127_v1 = vld [vmem:[%s1038_s23 + $0x8] sm:$0xff] (%p49_p4)  ;;  %v129_v2 = vld [vmem:[%s1038_s23 + $0x10] sm:$0xff] (%p49_p4)  ;;  %s1043_s24 = scalar_lea.vmem (%p49_p4), [#allocation2], %s857_s20 }
  0x16   : > { %126 = vst [vmem:[%s1043_s24] sm:$0xff] (%p49_p4), %v125_v0  ;;  %128 = vst [vmem:[%s1043_s24 + $0x8] sm:$0xff] (%p49_p4), %v127_v1  ;;  %v131_v3 = vld [vmem:[%s1038_s23 + $0x30] sm:$0xff] (%p49_p4)  ;;  %v133_v4 = vld [vmem:[%s1038_s23 + $0x38] sm:$0xff] (%p49_p4) }
  0x17   : > { %130 = vst [vmem:[%s1043_s24 + $0x10] sm:$0xff] (%p49_p4), %v129_v2  ;;  %v135_v5 = vld [vmem:[%s1038_s23 + $0x40] sm:$0xff] (%p49_p4)  ;;  %132 = vst [vmem:[%s1043_s24 + $0x18] sm:$0xff] (%p49_p4), %v131_v3  ;;  %v139_v7 = vld [vmem:[%s1038_s23 + $0x68] sm:$0xff] (%p49_p4) }
  0x18   : > { %134 = vst [vmem:[%s1043_s24 + $0x20] sm:$0xff] %v133_v4  ;;  %136 = vst [vmem:[%s1043_s24 + $0x28] sm:$0xff] %v135_v5  ;;  %v137_v6 = vld [vmem:[%s1038_s23 + $0x60] sm:$0xff]  ;;  %v141_v8 = vld [vmem:[%s1038_s23 + $0x70] sm:$0xff] }
  0x19   : > { %138 = vst [vmem:[%s1043_s24 + $0x30] sm:$0xff] %v137_v6  ;;  %140 = vst [vmem:[%s1043_s24 + $0x38] sm:$0xff] %v139_v7  ;;  %v143_v9 = vld [vmem:[%s1038_s23 + $0x90] sm:$0xff]  ;;  %v145_v10 = vld [vmem:[%s1038_s23 + $0x98] sm:$0xff] }
  0x1a   : > { %142 = vst [vmem:[%s1043_s24 + $0x40] sm:$0xff] %v141_v8  ;;  %v147_v11 = vld [vmem:[%s1038_s23 + $0xa0] sm:$0xff]  ;;  %144 = vst [vmem:[%s1043_s24 + $0x48] sm:$0xff] %v143_v9  ;;  %v151_v13 = vld [vmem:[%s1038_s23 + $0xc8] sm:$0xff] }
  0x1b   : > { %146 = vst [vmem:[%s1043_s24 + $0x50] sm:$0xff] %v145_v10  ;;  %148 = vst [vmem:[%s1043_s24 + $0x58] sm:$0xff] %v147_v11  ;;  %v149_v12 = vld [vmem:[%s1038_s23 + $0xc0] sm:$0xff]  ;;  %v153_v14 = vld [vmem:[%s1038_s23 + $0xd0] sm:$0xff] }
  0x1c   : > { %150 = vst [vmem:[%s1043_s24 + $0x60] sm:$0xff] %v149_v12  ;;  %152 = vst [vmem:[%s1043_s24 + $0x68] sm:$0xff] %v151_v13  ;;  %v155_v15 = vld [vmem:[%s1038_s23 + $0xf0] sm:$0xff]  ;;  %v157_v16 = vld [vmem:[%s1038_s23 + $0xf8] sm:$0xff] }
  0x1d   : > { %154 = vst [vmem:[%s1043_s24 + $0x70] sm:$0xff] %v153_v14  ;;  %v159_v17 = vld [vmem:[%s1038_s23 + $0x100] sm:$0xff]  ;;  %156 = vst [vmem:[%s1043_s24 + $0x78] sm:$0xff] %v155_v15  ;;  %v163_v19 = vld [vmem:[%s1038_s23 + $0x128] sm:$0xff] }
  0x1e   : > { %158 = vst [vmem:[%s1043_s24 + $0x80] sm:$0xff] %v157_v16  ;;  %160 = vst [vmem:[%s1043_s24 + $0x88] sm:$0xff] %v159_v17  ;;  %v161_v18 = vld [vmem:[%s1038_s23 + $0x120] sm:$0xff]  ;;  %v165_v20 = vld [vmem:[%s1038_s23 + $0x130] sm:$0xff] }
  0x1f   : > { %162 = vst [vmem:[%s1043_s24 + $0x90] sm:$0xff] %v161_v18  ;;  %164 = vst [vmem:[%s1043_s24 + $0x98] sm:$0xff] %v163_v19  ;;  %v167_v21 = vld [vmem:[%s1038_s23 + $0x150] sm:$0xff]  ;;  %v169_v22 = vld [vmem:[%s1038_s23 + $0x158] sm:$0xff] }
  0x20   : > { %166 = vst [vmem:[%s1043_s24 + $0xa0] sm:$0xff] %v165_v20  ;;  %v171_v23 = vld [vmem:[%s1038_s23 + $0x160] sm:$0xff]  ;;  %168 = vst [vmem:[%s1043_s24 + $0xa8] sm:$0xff] %v167_v21  ;;  %v175_v25 = vld [vmem:[%s1038_s23 + $0x188] sm:$0xff] }
  0x21   : > { %170 = vst [vmem:[%s1043_s24 + $0xb0] sm:$0xff] %v169_v22  ;;  %172 = vst [vmem:[%s1043_s24 + $0xb8] sm:$0xff] %v171_v23  ;;  %v173_v24 = vld [vmem:[%s1038_s23 + $0x180] sm:$0xff]  ;;  %v177_v26 = vld [vmem:[%s1038_s23 + $0x190] sm:$0xff] }
  0x22   : > { %174 = vst [vmem:[%s1043_s24 + $0xc0] sm:$0xff] %v173_v24  ;;  %176 = vst [vmem:[%s1043_s24 + $0xc8] sm:$0xff] %v175_v25  ;;  %v179_v27 = vld [vmem:[%s1038_s23 + $0x1b0] sm:$0xff]  ;;  %v181_v28 = vld [vmem:[%s1038_s23 + $0x1b8] sm:$0xff] }
  0x23   : > { %178 = vst [vmem:[%s1043_s24 + $0xd0] sm:$0xff] %v177_v26  ;;  %v183_v29 = vld [vmem:[%s1038_s23 + $0x1c0] sm:$0xff]  ;;  %180 = vst [vmem:[%s1043_s24 + $0xd8] sm:$0xff] %v179_v27  ;;  %v187_v31 = vld [vmem:[%s1038_s23 + $0x1e8] sm:$0xff] }
  0x24   : > { %182 = vst [vmem:[%s1043_s24 + $0xe0] sm:$0xff] %v181_v28  ;;  %184 = vst [vmem:[%s1043_s24 + $0xe8] sm:$0xff] %v183_v29  ;;  %v185_v30 = vld [vmem:[%s1038_s23 + $0x1e0] sm:$0xff]  ;;  %v189_v32 = vld [vmem:[%s1038_s23 + $0x1f0] sm:$0xff] }
  0x25   : > { %186 = vst [vmem:[%s1043_s24 + $0xf0] sm:$0xff] %v185_v30  ;;  %188 = vst [vmem:[%s1043_s24 + $0xf8] sm:$0xff] %v187_v31  ;;  %v191_v33 = vld [vmem:[%s1038_s23 + $0x210] sm:$0xff]  ;;  %v193_v34 = vld [vmem:[%s1038_s23 + $0x218] sm:$0xff] }
  0x26   : > { %190 = vst [vmem:[%s1043_s24 + $0x100] sm:$0xff] %v189_v32  ;;  %v195_v35 = vld [vmem:[%s1038_s23 + $0x220] sm:$0xff]  ;;  %192 = vst [vmem:[%s1043_s24 + $0x108] sm:$0xff] %v191_v33  ;;  %v199_v37 = vld [vmem:[%s1038_s23 + $0x248] sm:$0xff] }
  0x27   : > { %194 = vst [vmem:[%s1043_s24 + $0x110] sm:$0xff] %v193_v34  ;;  %196 = vst [vmem:[%s1043_s24 + $0x118] sm:$0xff] %v195_v35  ;;  %v197_v36 = vld [vmem:[%s1038_s23 + $0x240] sm:$0xff]  ;;  %v201_v38 = vld [vmem:[%s1038_s23 + $0x250] sm:$0xff] }
  0x28   : > { %198 = vst [vmem:[%s1043_s24 + $0x120] sm:$0xff] %v197_v36  ;;  %200 = vst [vmem:[%s1043_s24 + $0x128] sm:$0xff] %v199_v37  ;;  %v203_v39 = vld [vmem:[%s1038_s23 + $0x270] sm:$0xff]  ;;  %v205_v40 = vld [vmem:[%s1038_s23 + $0x278] sm:$0xff] }
  0x29   : > { %202 = vst [vmem:[%s1043_s24 + $0x130] sm:$0xff] %v201_v38  ;;  %v207_v41 = vld [vmem:[%s1038_s23 + $0x280] sm:$0xff]  ;;  %204 = vst [vmem:[%s1043_s24 + $0x138] sm:$0xff] %v203_v39  ;;  %v211_v43 = vld [vmem:[%s1038_s23 + $0x2a8] sm:$0xff] }
  0x2a   : > { %206 = vst [vmem:[%s1043_s24 + $0x140] sm:$0xff] %v205_v40  ;;  %208 = vst [vmem:[%s1043_s24 + $0x148] sm:$0xff] %v207_v41  ;;  %v209_v42 = vld [vmem:[%s1038_s23 + $0x2a0] sm:$0xff]  ;;  %v213_v44 = vld [vmem:[%s1038_s23 + $0x2b0] sm:$0xff] }
  0x2b   : > { %210 = vst [vmem:[%s1043_s24 + $0x150] sm:$0xff] %v209_v42  ;;  %212 = vst [vmem:[%s1043_s24 + $0x158] sm:$0xff] %v211_v43  ;;  %v215_v45 = vld [vmem:[%s1038_s23 + $0x2d0] sm:$0xff]  ;;  %v217_v46 = vld [vmem:[%s1038_s23 + $0x2d8] sm:$0xff] }
  0x2c   : > { %214 = vst [vmem:[%s1043_s24 + $0x160] sm:$0xff] %v213_v44  ;;  %v219_v47 = vld [vmem:[%s1038_s23 + $0x2e0] sm:$0xff]  ;;  %216 = vst [vmem:[%s1043_s24 + $0x168] sm:$0xff] %v215_v45 }
  0x2d   : > { %218 = vst [vmem:[%s1043_s24 + $0x170] sm:$0xff] %v217_v46  ;;  %220 = vst [vmem:[%s1043_s24 + $0x178] sm:$0xff] %v219_v47 }
  0x2e PF: > { %p802_p7 = scmp.ge.s32.totalorder %s980_s11, 1  ;;  %p225_p8 = scmp.lt.s32.totalorder %s980_s11, 3 }
  0x30   : > { %p226_p9 = pnand %p802_p7, %p225_p8 }
  0x31   : > { %s232_s25 = sand.u32 (!%p226_p9), 1, %s972_s9   ;;  %v982_v48 = vmov (!%p226_p9), 0   ;;  %v912_v13 = vld [vmem:[%s1244_s0] sm:$0xff] (!%p226_p9)  }
  0x32   : > { %229 = sbr.rel (%p226_p9) target bundleno = 343 (0x157), region = 47  ;;  %583 = vmatprep.mubr.bf16.mxu0 (!%p226_p9), %v982_v48  ;;  %626 = vmatprep.mubr.bf16.mxu1 (!%p226_p9), %v982_v48 }
  0x33   : > { %s858_s26 = smul.u32 (!%p226_p9), 384, %s232_s25 }
  0x34   : > { %s859_s30 = smul.u32 (!%p226_p9), 96, %s232_s25 }
  0x35   : > { %s1145_s27 = scalar_lea.vmem (!%p226_p9), [#allocation2], %s858_s26 }
  0x36   : > { %v885_v49 = vld [vmem:[%s1145_s27 + $0x4] ss:$24 sps:$4 sm:$0xff] (!%p226_p9)   ;;  %v887_v50 = vld [vmem:[%s1145_s27] ss:$24 sps:$4 sm:$0xff] (!%p226_p9)   ;;  %v888_v51 = vld [vmem:[%s1145_s27 + $0x34] ss:$24 sps:$4 sm:$0xff] (!%p226_p9)  }
  0x37   : > { %551 = vmatprep.subr.bf16.mxu0 (!%p226_p9), %v885_v49  ;;  %v890_v52 = vld [vmem:[%s1145_s27 + $0x30] ss:$24 sps:$4 sm:$0xff] (!%p226_p9)   ;;  %v891_v53 = vld [vmem:[%s1145_s27 + $0x64] ss:$24 sps:$4 sm:$0xff] (!%p226_p9)   ;;  %v893_v54 = vld [vmem:[%s1145_s27 + $0x60] ss:$24 sps:$4 sm:$0xff] (!%p226_p9)  }
  0x38   : > { %552 = vmatpush1.bf16.msra.mxu0 (!%p226_p9), %v887_v50  ;;  %v894_v55 = vld [vmem:[%s1145_s27 + $0x94] ss:$24 sps:$4 sm:$0xff] (!%p226_p9)   ;;  %v896_v56 = vld [vmem:[%s1145_s27 + $0x90] ss:$24 sps:$4 sm:$0xff] (!%p226_p9)   ;;  %v897_v59 = vld [vmem:[%s1145_s27 + $0xc4] ss:$24 sps:$4 sm:$0xff] (!%p226_p9)  }
  0x39   : > { %553 = vmatprep.subr.bf16.mxu0 %v888_v51  ;;  %v909_v57 = vld [vmem:[%s1145_s27 + $0xc] ss:$24 sps:$4 sm:$0xff]   ;;  %v911_v58 = vld [vmem:[%s1145_s27 + $0x8] ss:$24 sps:$4 sm:$0xff]   ;;  %v916_v60 = vld [vmem:[%s1145_s27 + $0x3c] ss:$24 sps:$4 sm:$0xff]  }
  0x3a   : > { %594 = vmatprep.subr.bf16.mxu1 %v909_v57  ;;  %v918_v61 = vld [vmem:[%s1145_s27 + $0x38] ss:$24 sps:$4 sm:$0xff]   ;;  %v900_v63 = vld [vmem:[%s1145_s27 + $0xf4] ss:$24 sps:$4 sm:$0xff]   ;;  %v924_v1 = vld [vmem:[%s1145_s27 + $0x68] ss:$24 sps:$4 sm:$0xff]  }
  0x3b   : > { %595 = vmatpush1.bf16.msra.mxu1 %v911_v58  ;;  %v899_v62 = vld [vmem:[%s1145_s27 + $0xc0] ss:$24 sps:$4 sm:$0xff]   ;;  %v922_v0 = vld [vmem:[%s1145_s27 + $0x6c] ss:$24 sps:$4 sm:$0xff]   ;;  %v902_v2 = vld [vmem:[%s1145_s27 + $0xf0] ss:$24 sps:$4 sm:$0xff]  }
  0x3c   : > { %554 = vmatpush1.bf16.msra.mxu0 %v890_v52  ;;  %596 = vmatprep.subr.bf16.mxu1 %v916_v60  ;;  %v928_v3 = vld [vmem:[%s1145_s27 + $0x9c] ss:$24 sps:$4 sm:$0xff]   ;;  %v930_v5 = vld [vmem:[%s1145_s27 + $0x98] ss:$24 sps:$4 sm:$0xff]   ;;  %v934_v7 = vld [vmem:[%s1145_s27 + $0xcc] ss:$24 sps:$4 sm:$0xff]  }
  0x3d   : > { %555 = vmatprep.subr.bf16.mxu0 %v891_v53  ;;  %v903_v4 = vld [vmem:[%s1145_s27 + $0x124] ss:$24 sps:$4 sm:$0xff]   ;;  %v905_v6 = vld [vmem:[%s1145_s27 + $0x120] ss:$24 sps:$4 sm:$0xff]   ;;  %v906_v8 = vld [vmem:[%s1145_s27 + $0x154] ss:$24 sps:$4 sm:$0xff]  }
  0x3e   : > { %v936_v9 = vld [vmem:[%s1145_s27 + $0xc8] ss:$24 sps:$4 sm:$0xff]   ;;  %v940_v11 = vld [vmem:[%s1145_s27 + $0xfc] ss:$24 sps:$4 sm:$0xff]   ;;  %v942_v14 = vld [vmem:[%s1145_s27 + $0xf8] ss:$24 sps:$4 sm:$0xff]  }
  0x3f   : > { %597 = vmatpush1.bf16.msra.mxu1 %v918_v61  ;;  %v908_v10 = vld [vmem:[%s1145_s27 + $0x150] ss:$24 sps:$4 sm:$0xff]   ;;  %v915_v12 = vld [vmem:[%s1145_s27 + $0x14] ss:$24 sps:$4 sm:$0xff]   ;;  %v921_v17 = vld [vmem:[%s1145_s27 + $0x44] ss:$24 sps:$4 sm:$0xff]  }
  0x40   : > { %556 = vmatpush1.bf16.msra.mxu0 %v893_v54  ;;  %598 = vmatprep.subr.bf16.mxu1 %v922_v0  ;;  %v913_v15 = vld [vmem:[%s1145_s27 + $0x10] ss:$24 sps:$4 sm:$0xff]   ;;  %v946_v16 = vld [vmem:[%s1145_s27 + $0x12c] ss:$24 sps:$4 sm:$0xff]   ;;  %v919_v19 = vld [vmem:[%s1145_s27 + $0x40] ss:$24 sps:$4 sm:$0xff]  }
  0x41   : > { %557 = vmatprep.subr.bf16.mxu0 %v894_v55  ;;  %v948_v18 = vld [vmem:[%s1145_s27 + $0x128] ss:$24 sps:$4 sm:$0xff]   ;;  %v952_v20 = vld [vmem:[%s1145_s27 + $0x15c] ss:$24 sps:$4 sm:$0xff]   ;;  %v954_v22 = vld [vmem:[%s1145_s27 + $0x158] ss:$24 sps:$4 sm:$0xff]  }
  0x42   : > { %v927_v21 = vld [vmem:[%s1145_s27 + $0x74] ss:$24 sps:$4 sm:$0xff]   ;;  %v925_v23 = vld [vmem:[%s1145_s27 + $0x70] ss:$24 sps:$4 sm:$0xff]   ;;  %v933_v24 = vld [vmem:[%s1145_s27 + $0xa4] ss:$24 sps:$4 sm:$0xff]  }
  0x43   : > { %599 = vmatpush1.bf16.msra.mxu1 %v924_v1  ;;  %v931_v25 = vld [vmem:[%s1145_s27 + $0xa0] ss:$24 sps:$4 sm:$0xff]   ;;  %v939_v26 = vld [vmem:[%s1145_s27 + $0xd4] ss:$24 sps:$4 sm:$0xff]   ;;  %v937_v27 = vld [vmem:[%s1145_s27 + $0xd0] ss:$24 sps:$4 sm:$0xff]  }
  0x44   : > { %558 = vmatpush1.bf16.msra.mxu0 %v896_v56  ;;  %600 = vmatprep.subr.bf16.mxu1 %v928_v3  ;;  %v945_v28 = vld [vmem:[%s1145_s27 + $0x104] ss:$24 sps:$4 sm:$0xff]   ;;  %v943_v29 = vld [vmem:[%s1145_s27 + $0x100] ss:$24 sps:$4 sm:$0xff]   ;;  %v951_v30 = vld [vmem:[%s1145_s27 + $0x134] ss:$24 sps:$4 sm:$0xff]  }
  0x45   : > { %559 = vmatprep.subr.bf16.mxu0 %v897_v59  ;;  %v949_v31 = vld [vmem:[%s1145_s27 + $0x130] ss:$24 sps:$4 sm:$0xff]   ;;  %v957_v32 = vld [vmem:[%s1145_s27 + $0x164] ss:$24 sps:$4 sm:$0xff]   ;;  %v955_v33 = vld [vmem:[%s1145_s27 + $0x160] ss:$24 sps:$4 sm:$0xff]  }
  0x46   : > { %s1201_s3 = scalar_lea.vmem [#allocation3], %s859_s30  ;;  %s856_s4 = smul.u32 (%p1028_p5), 48, %s797_s12 }
  0x47   : > { %601 = vmatpush1.bf16.msra.mxu1 %v930_v5 }
  0x48   : > { %560 = vmatpush1.bf16.msra.mxu0 %v899_v62  ;;  %602 = vmatprep.subr.bf16.mxu1 %v934_v7  ;;  %s701_s7 = scalar_lea.vmem (%p1028_p5), %s1246_s2, %s856_s4 }
  0x49   : > { %561 = vmatprep.subr.bf16.mxu0 %v900_v63 }
  0x4b   : > { %603 = vmatpush1.bf16.msra.mxu1 %v936_v9 }
  0x4c   : > { %562 = vmatpush1.bf16.msra.mxu0 %v902_v2  ;;  %604 = vmatprep.subr.bf16.mxu1 %v940_v11 }
  0x4d   : > { %563 = vmatprep.subr.bf16.mxu0 %v903_v4 }
  0x4f   : > { %605 = vmatpush1.bf16.msra.mxu1 %v942_v14 }
  0x50   : > { %564 = vmatpush1.bf16.msra.mxu0 %v905_v6  ;;  %606 = vmatprep.subr.bf16.mxu1 %v946_v16 }
  0x51   : > { %565 = vmatprep.subr.bf16.mxu0 %v906_v8 }
  0x53   : > { %607 = vmatpush1.bf16.msra.mxu1 %v948_v18 }
  0x54   : > { %566 = vmatpush1.bf16.msra.mxu0 %v908_v10  ;;  %608 = vmatprep.subr.bf16.mxu1 %v952_v20 }
  0x55   : > { %637 = vmatprep.subr.bf16.mxu0 %v915_v12 }
  0x57   : > { %584 = vmatmul.mubr.bf16.vlgmr.msra.gmra.mrb[0].mxu0 %v912_v13  ;;  %609 = vmatpush1.bf16.msra.mxu1 %v954_v22 }
  0x58   : > { %638 = vmatpush1.bf16.msra.mxu0 %v913_v15  ;;  %669 = vmatprep.mubr.bf16.mxu0 %v982_v48 }
  0x59   : > { %639 = vmatprep.subr.bf16.mxu0 %v921_v17 }
  0x5a   : > { %627 = vmatmul.mubr.bf16.vlgmr.msra.gmra.mrb[0].mxu1 %v912_v13 }
  0x5c   : > { %640 = vmatpush1.bf16.msra.mxu0 %v919_v19 }
  0x5d   : > { %641 = vmatprep.subr.bf16.mxu0 %v927_v21 }
  0x60   : > { %642 = vmatpush1.bf16.msra.mxu0 %v925_v23 }
  0x61   : > { %643 = vmatprep.subr.bf16.mxu0 %v933_v24 }
  0x64   : > { %644 = vmatpush1.bf16.msra.mxu0 %v931_v25 }
  0x65   : > { %645 = vmatprep.subr.bf16.mxu0 %v939_v26 }
  0x68   : > { %646 = vmatpush1.bf16.msra.mxu0 %v937_v27 }
  0x69   : > { %647 = vmatprep.subr.bf16.mxu0 %v945_v28 }
  0x6c   : > { %648 = vmatpush1.bf16.msra.mxu0 %v943_v29 }
  0x6d   : > { %649 = vmatprep.subr.bf16.mxu0 %v951_v30 }
  0x70   : > { %650 = vmatpush1.bf16.msra.mxu0 %v949_v31 }
  0x71   : > { %651 = vmatprep.subr.bf16.mxu0 %v957_v32 }
  0x74   : > { %652 = vmatpush1.bf16.msra.mxu0 %v955_v33 }
  0x77   : > { %670 = vmatmul.mubr.bf16.vlgmr.msra.gmra.mrb[4].mxu0 %v912_v13 }
 0x12a   : > { %v585_v34 = vpop.f32.mrb[0].mxu0 }
 0x12b   : > { %680 = vst [vmem:[%s1201_s3] sm:$0xff] %v585_v34  ;;  %v587_v35 = vpop.f32.mrb[1].mxu0 }
 0x12c   : > { %681 = vst [vmem:[%s1201_s3 + $0x8] sm:$0xff] %v587_v35  ;;  %v589_v36 = vpop.f32.mrb[2].mxu0 }
 0x12d   : > { %686 = vst [vmem:[%s1201_s3 + $0x30] sm:$0xff] %v589_v36  ;;  %v591_v37 = vpop.f32.mrb[3].mxu0  ;;  %v628_v38 = vpop.f32.mrb[0].mxu1 }
 0x12e   : > { %687 = vst [vmem:[%s1201_s3 + $0x38] sm:$0xff] %v591_v37  ;;  %682 = vst [vmem:[%s1201_s3 + $0x10] sm:$0xff] %v628_v38  ;;  %v630_v39 = vpop.f32.mrb[1].mxu1 }
 0x12f   : > { %683 = vst [vmem:[%s1201_s3 + $0x18] sm:$0xff] %v630_v39  ;;  %v632_v40 = vpop.f32.mrb[2].mxu1 }
 0x130   : > { %688 = vst [vmem:[%s1201_s3 + $0x40] sm:$0xff] %v632_v40  ;;  %v634_v41 = vpop.f32.mrb[3].mxu1 }
 0x131   : > { %689 = vst [vmem:[%s1201_s3 + $0x48] sm:$0xff] %v634_v41 }
 0x132   : > { %v714_v46 = vld [vmem:[%s1201_s3] sm:$0xff] (%p1028_p5) }
 0x133   : > { %v716_v47 = vld [vmem:[%s1201_s3 + $0x8] sm:$0xff] (%p1028_p5)  ;;  %715 = vst [vmem:[%s701_s7] sm:$0xff] (%p1028_p5), %v714_v46 }
 0x134   : > { %v726_v52 = vld [vmem:[%s1201_s3 + $0x30] sm:$0xff] (%p1028_p5)  ;;  %717 = vst [vmem:[%s701_s7 + $0x8] sm:$0xff] (%p1028_p5), %v716_v47 }
 0x135   : > { %v718_v48 = vld [vmem:[%s1201_s3 + $0x10] sm:$0xff] (%p1028_p5)  ;;  %v728_v53 = vld [vmem:[%s1201_s3 + $0x38] sm:$0xff] (%p1028_p5)  ;;  %727 = vst [vmem:[%s701_s7 + $0x60] sm:$0xff] (%p1028_p5), %v726_v52 }
 0x136   : > { %v720_v49 = vld [vmem:[%s1201_s3 + $0x18] sm:$0xff] (%p1028_p5)  ;;  %719 = vst [vmem:[%s701_s7 + $0x10] sm:$0xff] (%p1028_p5), %v718_v48  ;;  %729 = vst [vmem:[%s701_s7 + $0x68] sm:$0xff] (%p1028_p5), %v728_v53 }
 0x137   : > { %v730_v54 = vld [vmem:[%s1201_s3 + $0x40] sm:$0xff] (%p1028_p5)  ;;  %721 = vst [vmem:[%s701_s7 + $0x18] sm:$0xff] (%p1028_p5), %v720_v49 }
 0x138   : > { %731 = vst [vmem:[%s701_s7 + $0x70] sm:$0xff] (%p1028_p5), %v730_v54  ;;  %v732_v55 = vld [vmem:[%s1201_s3 + $0x48] sm:$0xff] (%p1028_p5) }
 0x139   : > { %733 = vst [vmem:[%s701_s7 + $0x78] sm:$0xff] (%p1028_p5), %v732_v55 }
 0x148   : > { %698 = sbr.rel (!%p1028_p5) target bundleno = 343 (0x157), region = 55 }
 0x14a   : > { %v671_v42 = vpop.f32.mrb[4].mxu0 }
 0x14b   : > { %684 = vst [vmem:[%s1201_s3 + $0x20] sm:$0xff] %v671_v42  ;;  %v673_v43 = vpop.f32.mrb[5].mxu0 }
 0x14c   : > { %685 = vst [vmem:[%s1201_s3 + $0x28] sm:$0xff] %v673_v43  ;;  %v675_v44 = vpop.f32.mrb[6].mxu0 }
 0x14d   : > { %690 = vst [vmem:[%s1201_s3 + $0x50] sm:$0xff] %v675_v44  ;;  %v677_v45 = vpop.f32.mrb[7].mxu0 }
 0x14e   : > { %691 = vst [vmem:[%s1201_s3 + $0x58] sm:$0xff] %v677_v45 }
 0x152   : > { %v722_v50 = vld [vmem:[%s1201_s3 + $0x20] sm:$0xff] }
 0x153   : > { %v724_v51 = vld [vmem:[%s1201_s3 + $0x28] sm:$0xff]  ;;  %723 = vst [vmem:[%s701_s7 + $0x20] sm:$0xff] %v722_v50 }
 0x154   : > { %725 = vst [vmem:[%s701_s7 + $0x28] sm:$0xff] %v724_v51  ;;  %v734_v56 = vld [vmem:[%s1201_s3 + $0x50] sm:$0xff] }
 0x155   : > { %v736_v57 = vld [vmem:[%s1201_s3 + $0x58] sm:$0xff]  ;;  %735 = vst [vmem:[%s701_s7 + $0x80] sm:$0xff] %v734_v56 }
 0x156   : > { %737 = vst [vmem:[%s701_s7 + $0x88] sm:$0xff] %v736_v57 }
 0x157 PF: > { %p9_p10 = scmp.ge.s32.totalorder %s1015_s13, 4   ;;  %s1248_s9 = smov %s976_s10 }
 0x158   : > { %s1249_s10 = smov %s1026_s16  ;;  %s1250_s11 = smov %s1015_s13 }
 0x159   :  { %11 = sbr.rel (!%p9_p10) target bundleno = 2 (0x2), region = 109 }

// kernel: forward.9
= control target key start
LH: loop header
LB: loop body
LE: loop exit
PB: predicated region body
PF: predicated region fallthrough
CT: control target
= control target key end

     0   :  { %s804_s9 = smov 0   ;;  %s806_s10 = smov 0   ;;  %s976_s0 = inlined_call_operand.vmem [shape: bf16[16,256], index: 0, kind: input, shape index: {}]   ;;  %s977_s1 = inlined_call_operand.vmem [shape: bf16[256,512], index: 1, kind: input, shape index: {}]   ;;  %s978_s2 = inlined_call_operand.vmem [shape: f32[16,512], index: 2, kind: output, shape index: {}]  }
   0x1   :  { %s808_s11 = smov 0  }
   0x2 LB: > { %s639_s12 = sadd.s32 4294967295, %s787_s11   ;;  %s821_s13 = sadd.s32 1, %s787_s11   ;;  %s787_s11 = sphi %s808_s11, %s982_s11   ;;  %s783_s10 = sphi %s806_s10, %s981_s10   ;;  %s779_s9 = sphi %s804_s9, %s980_s9  }
   0x3   : > { %s37_s14 = ssub.s32 %s787_s11, %s821_s13  ;;  %s40_s15 = sadd.s32 1, %s783_s10 }
   0x4   : > { %p38_p0 = scmp.eq.s32.totalorder %s37_s14, 0  ;;  %p47_p1 = scmp.ne.s32.totalorder %s783_s10, %s779_s9 }
   0x5   : > { %p48_p2 = scmp.eq.s32.totalorder %s787_s11, 0  ;;  %p77_p3 = scmp.eq.s32.totalorder %s639_s12, 1 }
   0x6   : > { %s832_s16 = scalar_select %p38_p0, %s783_s10, %s40_s15  }
   0x7   : > { %p49_p4 = por %p48_p2, %p47_p1  ;;  %p834_p5 = por %p77_p3, %p47_p1 }
   0x8   : > { %p642_p6 = scmp.ge.s32.totalorder %s787_s11, 2 }
   0xa   : > { %102 = sbr.rel (%p642_p6) target bundleno = 37 (0x25), region = 20 }
  0x11   : > { %105 = sbr.rel (!%p49_p4) target bundleno = 37 (0x25), region = 24  ;;  %s107_s18 = sand.u32 (%p49_p4), 1, %s783_s10  }
  0x12   : > { %s688_s19 = sshll.u32 (%p49_p4), %s787_s11, 3  ;;  %s643_s20 = sshll.u32 (%p49_p4), %s107_s18, 8 }
  0x13   : > { %s844_s23 = scalar_lea.vmem (%p49_p4), %s977_s1, %s688_s19  ;;  %s849_s24 = scalar_lea.vmem (%p49_p4), [#allocation2], %s643_s20 }
  0x14   : > { %v202_v0 = vld [vmem:[%s844_s23] sm:$0xff] (%p49_p4)  ;;  %v204_v1 = vld [vmem:[%s844_s23 + $0x10] sm:$0xff] (%p49_p4) }
  0x15   : > { %v206_v2 = vld [vmem:[%s844_s23 + $0x20] sm:$0xff] (%p49_p4)  ;;  %203 = vst [vmem:[%s849_s24] sm:$0xff] (%p49_p4), %v202_v0  ;;  %205 = vst [vmem:[%s849_s24 + $0x8] sm:$0xff] (%p49_p4), %v204_v1  ;;  %v208_v3 = vld [vmem:[%s844_s23 + $0x30] sm:$0xff] (%p49_p4) }
  0x16   : > { %207 = vst [vmem:[%s849_s24 + $0x10] sm:$0xff] (%p49_p4), %v206_v2  ;;  %v210_v4 = vld [vmem:[%s844_s23 + $0x40] sm:$0xff] (%p49_p4)  ;;  %v212_v5 = vld [vmem:[%s844_s23 + $0x50] sm:$0xff] (%p49_p4)  ;;  %209 = vst [vmem:[%s849_s24 + $0x18] sm:$0xff] (%p49_p4), %v208_v3 }
  0x17   : > { %211 = vst [vmem:[%s849_s24 + $0x20] sm:$0xff] (%p49_p4), %v210_v4  ;;  %213 = vst [vmem:[%s849_s24 + $0x28] sm:$0xff] (%p49_p4), %v212_v5  ;;  %v214_v6 = vld [vmem:[%s844_s23 + $0x60] sm:$0xff] (%p49_p4)  ;;  %v216_v7 = vld [vmem:[%s844_s23 + $0x70] sm:$0xff] (%p49_p4) }
  0x18   : > { %v218_v8 = vld [vmem:[%s844_s23 + $0x80] sm:$0xff]  ;;  %215 = vst [vmem:[%s849_s24 + $0x30] sm:$0xff] %v214_v6  ;;  %217 = vst [vmem:[%s849_s24 + $0x38] sm:$0xff] %v216_v7  ;;  %v220_v9 = vld [vmem:[%s844_s23 + $0x90] sm:$0xff] }
  0x19   : > { %219 = vst [vmem:[%s849_s24 + $0x40] sm:$0xff] %v218_v8  ;;  %v222_v10 = vld [vmem:[%s844_s23 + $0xa0] sm:$0xff]  ;;  %v224_v11 = vld [vmem:[%s844_s23 + $0xb0] sm:$0xff]  ;;  %221 = vst [vmem:[%s849_s24 + $0x48] sm:$0xff] %v220_v9 }
  0x1a   : > { %223 = vst [vmem:[%s849_s24 + $0x50] sm:$0xff] %v222_v10  ;;  %225 = vst [vmem:[%s849_s24 + $0x58] sm:$0xff] %v224_v11  ;;  %v226_v12 = vld [vmem:[%s844_s23 + $0xc0] sm:$0xff]  ;;  %v228_v13 = vld [vmem:[%s844_s23 + $0xd0] sm:$0xff] }
  0x1b   : > { %v230_v14 = vld [vmem:[%s844_s23 + $0xe0] sm:$0xff]  ;;  %227 = vst [vmem:[%s849_s24 + $0x60] sm:$0xff] %v226_v12  ;;  %229 = vst [vmem:[%s849_s24 + $0x68] sm:$0xff] %v228_v13  ;;  %v232_v15 = vld [vmem:[%s844_s23 + $0xf0] sm:$0xff] }
  0x1c   : > { %231 = vst [vmem:[%s849_s24 + $0x70] sm:$0xff] %v230_v14  ;;  %v234_v16 = vld [vmem:[%s844_s23 + $0x100] sm:$0xff]  ;;  %v236_v17 = vld [vmem:[%s844_s23 + $0x110] sm:$0xff]  ;;  %233 = vst [vmem:[%s849_s24 + $0x78] sm:$0xff] %v232_v15 }
  0x1d   : > { %235 = vst [vmem:[%s849_s24 + $0x80] sm:$0xff] %v234_v16  ;;  %237 = vst [vmem:[%s849_s24 + $0x88] sm:$0xff] %v236_v17  ;;  %v238_v18 = vld [vmem:[%s844_s23 + $0x120] sm:$0xff]  ;;  %v240_v19 = vld [vmem:[%s844_s23 + $0x130] sm:$0xff] }
  0x1e   : > { %v242_v20 = vld [vmem:[%s844_s23 + $0x140] sm:$0xff]  ;;  %239 = vst [vmem:[%s849_s24 + $0x90] sm:$0xff] %v238_v18  ;;  %241 = vst [vmem:[%s849_s24 + $0x98] sm:$0xff] %v240_v19  ;;  %v244_v21 = vld [vmem:[%s844_s23 + $0x150] sm:$0xff] }
  0x1f   : > { %243 = vst [vmem:[%s849_s24 + $0xa0] sm:$0xff] %v242_v20  ;;  %v246_v22 = vld [vmem:[%s844_s23 + $0x160] sm:$0xff]  ;;  %v248_v23 = vld [vmem:[%s844_s23 + $0x170] sm:$0xff]  ;;  %245 = vst [vmem:[%s849_s24 + $0xa8] sm:$0xff] %v244_v21 }
  0x20   : > { %247 = vst [vmem:[%s849_s24 + $0xb0] sm:$0xff] %v246_v22  ;;  %249 = vst [vmem:[%s849_s24 + $0xb8] sm:$0xff] %v248_v23  ;;  %v250_v24 = vld [vmem:[%s844_s23 + $0x180] sm:$0xff]  ;;  %v252_v25 = vld [vmem:[%s844_s23 + $0x190] sm:$0xff] }
  0x21   : > { %v254_v26 = vld [vmem:[%s844_s23 + $0x1a0] sm:$0xff]  ;;  %251 = vst [vmem:[%s849_s24 + $0xc0] sm:$0xff] %v250_v24  ;;  %253 = vst [vmem:[%s849_s24 + $0xc8] sm:$0xff] %v252_v25  ;;  %v256_v27 = vld [vmem:[%s844_s23 + $0x1b0] sm:$0xff] }
  0x22   : > { %255 = vst [vmem:[%s849_s24 + $0xd0] sm:$0xff] %v254_v26  ;;  %v258_v28 = vld [vmem:[%s844_s23 + $0x1c0] sm:$0xff]  ;;  %v260_v29 = vld [vmem:[%s844_s23 + $0x1d0] sm:$0xff]  ;;  %257 = vst [vmem:[%s849_s24 + $0xd8] sm:$0xff] %v256_v27 }
  0x23   : > { %259 = vst [vmem:[%s849_s24 + $0xe0] sm:$0xff] %v258_v28  ;;  %261 = vst [vmem:[%s849_s24 + $0xe8] sm:$0xff] %v260_v29  ;;  %v262_v30 = vld [vmem:[%s844_s23 + $0x1e0] sm:$0xff]  ;;  %v264_v31 = vld [vmem:[%s844_s23 + $0x1f0] sm:$0xff] }
  0x24   : > { %263 = vst [vmem:[%s849_s24 + $0xf0] sm:$0xff] %v262_v30  ;;  %265 = vst [vmem:[%s849_s24 + $0xf8] sm:$0xff] %v264_v31 }
  0x25 PF: > { %p646_p7 = scmp.ge.s32.totalorder %s787_s11, 1  ;;  %p270_p8 = scmp.lt.s32.totalorder %s787_s11, 3 }
  0x27   : > { %p271_p9 = pnand %p646_p7, %p270_p8 }
  0x28   : > { %s277_s25 = sand.u32 (!%p271_p9), 1, %s779_s9   ;;  %v764_v32 = vld [vmem:[%s976_s0 + $0x4] ss:$8 sps:$4 sm:$0xff] (!%p271_p9)   ;;  %v762_v1 = vld [vmem:[%s976_s0] ss:$8 sps:$4 sm:$0xff] (!%p271_p9)  }
  0x29   : > { %274 = sbr.rel (%p271_p9) target bundleno = 332 (0x14c), region = 62  ;;  %s647_s26 = sshll.u32 (!%p271_p9), %s277_s25, 8  ;;  %535 = vmatprep.mubr.bf16.mxu0 (!%p271_p9), %v764_v32 }
  0x2a   : > { %s920_s29 = scalar_lea.vmem (!%p271_p9), [#allocation2], %s647_s26  ;;  %s648_s4 = sshll.u32 (!%p271_p9), %s277_s25, 5 }
  0x2b   : > { %v714_v33 = vld [vmem:[%s920_s29 + $0x4] ss:$8 sps:$4 sm:$0xff] (!%p271_p9)   ;;  %v716_v34 = vld [vmem:[%s920_s29] ss:$8 sps:$4 sm:$0xff] (!%p271_p9)   ;;  %v717_v35 = vld [vmem:[%s920_s29 + $0x14] ss:$8 sps:$4 sm:$0xff] (!%p271_p9)  }
  0x2c   : > { %503 = vmatprep.subr.bf16.mxu0 (!%p271_p9), %v714_v33  ;;  %v719_v36 = vld [vmem:[%s920_s29 + $0x10] ss:$8 sps:$4 sm:$0xff] (!%p271_p9)   ;;  %v720_v37 = vld [vmem:[%s920_s29 + $0x24] ss:$8 sps:$4 sm:$0xff] (!%p271_p9)   ;;  %v722_v38 = vld [vmem:[%s920_s29 + $0x20] ss:$8 sps:$4 sm:$0xff] (!%p271_p9)  }
  0x2d   : > { %504 = vmatpush1.bf16.msra.mxu0 (!%p271_p9), %v716_v34  ;;  %v723_v39 = vld [vmem:[%s920_s29 + $0x34] ss:$8 sps:$4 sm:$0xff] (!%p271_p9)   ;;  %v725_v40 = vld [vmem:[%s920_s29 + $0x30] ss:$8 sps:$4 sm:$0xff] (!%p271_p9)   ;;  %v726_v41 = vld [vmem:[%s920_s29 + $0x44] ss:$8 sps:$4 sm:$0xff] (!%p271_p9)  }
  0x2e   : > { %505 = vmatprep.subr.bf16.mxu0 (!%p271_p9), %v717_v35  ;;  %v728_v42 = vld [vmem:[%s920_s29 + $0x40] ss:$8 sps:$4 sm:$0xff] (!%p271_p9)   ;;  %v729_v43 = vld [vmem:[%s920_s29 + $0x54] ss:$8 sps:$4 sm:$0xff] (!%p271_p9)   ;;  %v731_v44 = vld [vmem:[%s920_s29 + $0x50] ss:$8 sps:$4 sm:$0xff] (!%p271_p9)  }
  0x2f   : > { %v732_v45 = vld [vmem:[%s920_s29 + $0x64] ss:$8 sps:$4 sm:$0xff] (!%p271_p9)   ;;  %v734_v46 = vld [vmem:[%s920_s29 + $0x60] ss:$8 sps:$4 sm:$0xff] (!%p271_p9)   ;;  %v735_v47 = vld [vmem:[%s920_s29 + $0x74] ss:$8 sps:$4 sm:$0xff] (!%p271_p9)  }
  0x30   : > { %v737_v48 = vld [vmem:[%s920_s29 + $0x70] ss:$8 sps:$4 sm:$0xff]   ;;  %v738_v49 = vld [vmem:[%s920_s29 + $0x84] ss:$8 sps:$4 sm:$0xff]   ;;  %v740_v50 = vld [vmem:[%s920_s29 + $0x80] ss:$8 sps:$4 sm:$0xff]  }
  0x31   : > { %506 = vmatpush1.bf16.msra.mxu0 %v719_v36  ;;  %v741_v51 = vld [vmem:[%s920_s29 + $0x94] ss:$8 sps:$4 sm:$0xff]   ;;  %v743_v52 = vld [vmem:[%s920_s29 + $0x90] ss:$8 sps:$4 sm:$0xff]   ;;  %v744_v53 = vld [vmem:[%s920_s29 + $0xa4] ss:$8 sps:$4 sm:$0xff]  }
  0x32   : > { %507 = vmatprep.subr.bf16.mxu0 %v720_v37  ;;  %v746_v54 = vld [vmem:[%s920_s29 + $0xa0] ss:$8 sps:$4 sm:$0xff]   ;;  %v747_v55 = vld [vmem:[%s920_s29 + $0xb4] ss:$8 sps:$4 sm:$0xff]   ;;  %v749_v56 = vld [vmem:[%s920_s29 + $0xb0] ss:$8 sps:$4 sm:$0xff]  }
  0x33   : > { %v750_v57 = vld [vmem:[%s920_s29 + $0xc4] ss:$8 sps:$4 sm:$0xff]   ;;  %v752_v58 = vld [vmem:[%s920_s29 + $0xc0] ss:$8 sps:$4 sm:$0xff]   ;;  %v753_v59 = vld [vmem:[%s920_s29 + $0xd4] ss:$8 sps:$4 sm:$0xff]  }
  0x34   : > { %v755_v60 = vld [vmem:[%s920_s29 + $0xd0] ss:$8 sps:$4 sm:$0xff]   ;;  %v756_v61 = vld [vmem:[%s920_s29 + $0xe4] ss:$8 sps:$4 sm:$0xff]   ;;  %v758_v62 = vld [vmem:[%s920_s29 + $0xe0] ss:$8 sps:$4 sm:$0xff]  }
  0x35   : > { %508 = vmatpush1.bf16.msra.mxu0 %v722_v38  ;;  %v759_v63 = vld [vmem:[%s920_s29 + $0xf4] ss:$8 sps:$4 sm:$0xff]   ;;  %v761_v0 = vld [vmem:[%s920_s29 + $0xf0] ss:$8 sps:$4 sm:$0xff]   ;;  %s296_s5 = scalar_lea.vmem [#allocation3], %s648_s4  ;;  %s689_s6 = sshll.u32 (%p834_p5), %s639_s12, 4 }
  0x36   : > { %509 = vmatprep.subr.bf16.mxu0 %v723_v39  ;;  %s559_s9 = scalar_lea.vmem (%p834_p5), %s978_s2, %s689_s6 }
  0x39   : > { %510 = vmatpush1.bf16.msra.mxu0 %v725_v40 }
  0x3a   : > { %511 = vmatprep.subr.bf16.mxu0 %v726_v41 }
  0x3d   : > { %512 = vmatpush1.bf16.msra.mxu0 %v728_v42 }
  0x3e   : > { %513 = vmatprep.subr.bf16.mxu0 %v729_v43 }
  0x41   : > { %514 = vmatpush1.bf16.msra.mxu0 %v731_v44 }
  0x42   : > { %515 = vmatprep.subr.bf16.mxu0 %v732_v45 }
  0x45   : > { %516 = vmatpush1.bf16.msra.mxu0 %v734_v46 }
  0x46   : > { %517 = vmatprep.subr.bf16.mxu0 %v735_v47 }
  0x49   : > { %518 = vmatpush1.bf16.msra.mxu0 %v737_v48 }
  0x4a   : > { %519 = vmatprep.subr.bf16.mxu0 %v738_v49 }
  0x4d   : > { %520 = vmatpush1.bf16.msra.mxu0 %v740_v50 }
  0x4e   : > { %521 = vmatprep.subr.bf16.mxu0 %v741_v51 }
  0x51   : > { %522 = vmatpush1.bf16.msra.mxu0 %v743_v52 }
  0x52   : > { %523 = vmatprep.subr.bf16.mxu0 %v744_v53 }
  0x55   : > { %524 = vmatpush1.bf16.msra.mxu0 %v746_v54 }
  0x56   : > { %525 = vmatprep.subr.bf16.mxu0 %v747_v55 }
  0x59   : > { %526 = vmatpush1.bf16.msra.mxu0 %v749_v56 }
  0x5a   : > { %527 = vmatprep.subr.bf16.mxu0 %v750_v57 }
  0x5d   : > { %528 = vmatpush1.bf16.msra.mxu0 %v752_v58 }
  0x5e   : > { %529 = vmatprep.subr.bf16.mxu0 %v753_v59 }
  0x61   : > { %530 = vmatpush1.bf16.msra.mxu0 %v755_v60 }
  0x62   : > { %531 = vmatprep.subr.bf16.mxu0 %v756_v61 }
  0x65   : > { %532 = vmatpush1.bf16.msra.mxu0 %v758_v62 }
  0x66   : > { %533 = vmatprep.subr.bf16.mxu0 %v759_v63 }
  0x69   : > { %534 = vmatpush1.bf16.msra.mxu0 %v761_v0 }
  0x6c   : > { %536 = vmatmul.mubr.bf16.vlgmr.msra.gmra.mrb[0].mxu0 %v762_v1 }
 0x13d   : > { %556 = sbr.rel (!%p834_p5) target bundleno = 332 (0x14c), region = 70 }
 0x13f   : > { %v537_v2 = vpop.f32.mrb[0].mxu0 }
 0x140   : > { %546 = vst [vmem:[%s296_s5] sm:$0xff] %v537_v2  ;;  %v539_v3 = vpop.f32.mrb[1].mxu0 }
 0x141   : > { %547 = vst [vmem:[%s296_s5 + $0x8] sm:$0xff] %v539_v3  ;;  %v541_v4 = vpop.f32.mrb[2].mxu0 }
 0x142   : > { %548 = vst [vmem:[%s296_s5 + $0x10] sm:$0xff] %v541_v4  ;;  %v543_v5 = vpop.f32.mrb[3].mxu0 }
 0x143   : > { %549 = vst [vmem:[%s296_s5 + $0x18] sm:$0xff] %v543_v5 }
 0x147   : > { %v572_v6 = vld [vmem:[%s296_s5] sm:$0xff] }
 0x148   : > { %v574_v7 = vld [vmem:[%s296_s5 + $0x8] sm:$0xff]  ;;  %573 = vst [vmem:[%s559_s9] sm:$0xff] %v572_v6 }
 0x149   : > { %v576_v8 = vld [vmem:[%s296_s5 + $0x10] sm:$0xff]  ;;  %575 = vst [vmem:[%s559_s9 + $0x8] sm:$0xff] %v574_v7 }
 0x14a   : > { %v578_v9 = vld [vmem:[%s296_s5 + $0x18] sm:$0xff]  ;;  %577 = vst [vmem:[%s559_s9 + $0x20] sm:$0xff] %v576_v8 }
 0x14b   : > { %579 = vst [vmem:[%s559_s9 + $0x28] sm:$0xff] %v578_v9 }
 0x14c PF: > { %p9_p10 = scmp.ge.s32.totalorder %s821_s13, 4   ;;  %s980_s9 = smov %s783_s10 }
 0x14d   : > { %s981_s10 = smov %s832_s16  ;;  %s982_s11 = smov %s821_s13 }
 0x14e   :  { %11 = sbr.rel (!%p9_p10) target bundleno = 2 (0x2), region = 124 }

// kernel: forward.10
= control target key start
LH: loop header
LB: loop body
LE: loop exit
PB: predicated region body
PF: predicated region fallthrough
CT: control target
= control target key end

     0   :  { %s1018_s9 = smov 0   ;;  %s1020_s10 = smov 0   ;;  %s1248_s0 = inlined_call_operand.vmem [shape: bf16[32,400], index: 0, kind: input, shape index: {}]   ;;  %s1249_s1 = inlined_call_operand.vmem [shape: bf16[400,256], index: 1, kind: input, shape index: {}]   ;;  %s1250_s2 = inlined_call_operand.vmem [shape: f32[32,256], index: 2, kind: output, shape index: {}]  }
   0x1   :  { %s1022_s11 = smov 0  }
   0x2 LB: > { %s840_s12 = sadd.s32 4294967295, %s1000_s11   ;;  %s1035_s13 = sadd.s32 1, %s1000_s11   ;;  %s1000_s11 = sphi %s1022_s11, %s1254_s11   ;;  %s996_s10 = sphi %s1020_s10, %s1253_s10   ;;  %s992_s9 = sphi %s1018_s9, %s1252_s9  }
   0x3   : > { %s37_s14 = ssub.s32 %s1000_s11, %s1035_s13  ;;  %s40_s15 = sadd.s32 1, %s996_s10 }
   0x4   : > { %p38_p0 = scmp.eq.s32.totalorder %s37_s14, 0  ;;  %p47_p1 = scmp.ne.s32.totalorder %s996_s10, %s992_s9 }
   0x5   : > { %p48_p2 = scmp.eq.s32.totalorder %s1000_s11, 0  ;;  %p77_p3 = scmp.eq.s32.totalorder %s840_s12, 1 }
   0x6   : > { %s1046_s16 = scalar_select %p38_p0, %s996_s10, %s40_s15  }
   0x7   : > { %p49_p4 = por %p48_p2, %p47_p1  ;;  %p1048_p5 = por %p77_p3, %p47_p1 }
   0x8   : > { %p843_p6 = scmp.ge.s32.totalorder %s1000_s11, 2 }
   0xa   : > { %102 = sbr.rel (%p843_p6) target bundleno = 54 (0x36), region = 20 }
  0x11   : > { %105 = sbr.rel (!%p49_p4) target bundleno = 54 (0x36), region = 24  ;;  %s107_s18 = sand.u32 (%p49_p4), 1, %s996_s10  }
  0x12   : > { %s844_s19 = sshll.u32 (%p49_p4), %s1000_s11, 2  ;;  %s914_s20 = smul.u32 (%p49_p4), 200, %s107_s18 }
  0x13   : > { %s1058_s23 = scalar_lea.vmem (%p49_p4), %s1249_s1, %s844_s19 }
  0x14   : > { %v127_v0 = vld [vmem:[%s1058_s23] sm:$0xf] (%p49_p4)  ;;  %v129_v1 = vld [vmem:[%s1058_s23 + $0x8] sm:$0xf] (%p49_p4)  ;;  %v131_v2 = vld [vmem:[%s1058_s23 + $0x10] sm:$0xf] (%p49_p4) }
  0x15   : > { %v133_v3 = vld [vmem:[%s1058_s23 + $0x18] sm:$0xf] (%p49_p4)  ;;  %v135_v4 = vld [vmem:[%s1058_s23 + $0x20] sm:$0xf] (%p49_p4)  ;;  %s1065_s24 = scalar_lea.vmem (%p49_p4), [#allocation2], %s914_s20 }
  0x16   : > { %128 = vst [vmem:[%s1065_s24] sm:$0xf] (%p49_p4), %v127_v0  ;;  %130 = vst [vmem:[%s1065_s24 + $0x4] sm:$0xf] (%p49_p4), %v129_v1  ;;  %v137_v5 = vld [vmem:[%s1058_s23 + $0x28] sm:$0xf] (%p49_p4) }
  0x17   : > { %132 = vst [vmem:[%s1065_s24 + $0x8] sm:$0xf] (%p49_p4), %v131_v2  ;;  %134 = vst [vmem:[%s1065_s24 + $0xc] sm:$0xf] (%p49_p4), %v133_v3  ;;  %v139_v6 = vld [vmem:[%s1058_s23 + $0x30] sm:$0xf] (%p49_p4) }
  0x18   : > { %136 = vst [vmem:[%s1065_s24 + $0x10] sm:$0xf] %v135_v4  ;;  %v141_v7 = vld [vmem:[%s1058_s23 + $0x38] sm:$0xf]  ;;  %138 = vst [vmem:[%s1065_s24 + $0x14] sm:$0xf] %v137_v5 }
  0x19   : > { %140 = vst [vmem:[%s1065_s24 + $0x18] sm:$0xf] %v139_v6  ;;  %142 = vst [vmem:[%s1065_s24 + $0x1c] sm:$0xf] %v141_v7  ;;  %v143_v8 = vld [vmem:[%s1058_s23 + $0x40] sm:$0xf] }
  0x1a   : > { %v145_v9 = vld [vmem:[%s1058_s23 + $0x48] sm:$0xf]  ;;  %v147_v10 = vld [vmem:[%s1058_s23 + $0x50] sm:$0xf]  ;;  %144 = vst [vmem:[%s1065_s24 + $0x20] sm:$0xf] %v143_v8 }
  0x1b   : > { %146 = vst [vmem:[%s1065_s24 + $0x24] sm:$0xf] %v145_v9  ;;  %148 = vst [vmem:[%s1065_s24 + $0x28] sm:$0xf] %v147_v10  ;;  %v149_v11 = vld [vmem:[%s1058_s23 + $0x58] sm:$0xf] }
  0x1c   : > { %v151_v12 = vld [vmem:[%s1058_s23 + $0x60] sm:$0xf]  ;;  %v153_v13 = vld [vmem:[%s1058_s23 + $0x68] sm:$0xf]  ;;  %150 = vst [vmem:[%s1065_s24 + $0x2c] sm:$0xf] %v149_v11 }
  0x1d   : > { %152 = vst [vmem:[%s1065_s24 + $0x30] sm:$0xf] %v151_v12  ;;  %154 = vst [vmem:[%s1065_s24 + $0x34] sm:$0xf] %v153_v13  ;;  %v155_v14 = vld [vmem:[%s1058_s23 + $0x70] sm:$0xf] }
  0x1e   : > { %v157_v15 = vld [vmem:[%s1058_s23 + $0x78] sm:$0xf]  ;;  %v159_v16 = vld [vmem:[%s1058_s23 + $0x80] sm:$0xf]  ;;  %156 = vst [vmem:[%s1065_s24 + $0x38] sm:$0xf] %v155_v14 }
  0x1f   : > { %158 = vst [vmem:[%s1065_s24 + $0x3c] sm:$0xf] %v157_v15  ;;  %160 = vst [vmem:[%s1065_s24 + $0x40] sm:$0xf] %v159_v16  ;;  %v161_v17 = vld [vmem:[%s1058_s23 + $0x88] sm:$0xf] }
  0x20   : > { %v163_v18 = vld [vmem:[%s1058_s23 + $0x90] sm:$0xf]  ;;  %v165_v19 = vld [vmem:[%s1058_s23 + $0x98] sm:$0xf]  ;;  %162 = vst [vmem:[%s1065_s24 + $0x44] sm:$0xf] %v161_v17 }
  0x21   : > { %164 = vst [vmem:[%s1065_s24 + $0x48] sm:$0xf] %v163_v18  ;;  %166 = vst [vmem:[%s1065_s24 + $0x4c] sm:$0xf] %v165_v19  ;;  %v167_v20 = vld [vmem:[%s1058_s23 + $0xa0] sm:$0xf] }
  0x22   : > { %v169_v21 = vld [vmem:[%s1058_s23 + $0xa8] sm:$0xf]  ;;  %v171_v22 = vld [vmem:[%s1058_s23 + $0xb0] sm:$0xf]  ;;  %168 = vst [vmem:[%s1065_s24 + $0x50] sm:$0xf] %v167_v20 }
  0x23   : > { %170 = vst [vmem:[%s1065_s24 + $0x54] sm:$0xf] %v169_v21  ;;  %172 = vst [vmem:[%s1065_s24 + $0x58] sm:$0xf] %v171_v22  ;;  %v173_v23 = vld [vmem:[%s1058_s23 + $0xb8] sm:$0xf] }
  0x24   : > { %v175_v24 = vld [vmem:[%s1058_s23 + $0xc0] sm:$0xf]  ;;  %v177_v25 = vld [vmem:[%s1058_s23 + $0xc8] sm:$0xf]  ;;  %174 = vst [vmem:[%s1065_s24 + $0x5c] sm:$0xf] %v173_v23 }
  0x25   : > { %176 = vst [vmem:[%s1065_s24 + $0x60] sm:$0xf] %v175_v24  ;;  %178 = vst [vmem:[%s1065_s24 + $0x64] sm:$0xf] %v177_v25  ;;  %v179_v26 = vld [vmem:[%s1058_s23 + $0xd0] sm:$0xf] }
  0x26   : > { %v181_v27 = vld [vmem:[%s1058_s23 + $0xd8] sm:$0xf]  ;;  %v183_v28 = vld [vmem:[%s1058_s23 + $0xe0] sm:$0xf]  ;;  %180 = vst [vmem:[%s1065_s24 + $0x68] sm:$0xf] %v179_v26 }
  0x27   : > { %182 = vst [vmem:[%s1065_s24 + $0x6c] sm:$0xf] %v181_v27  ;;  %184 = vst [vmem:[%s1065_s24 + $0x70] sm:$0xf] %v183_v28  ;;  %v185_v29 = vld [vmem:[%s1058_s23 + $0xe8] sm:$0xf] }
  0x28   : > { %v187_v30 = vld [vmem:[%s1058_s23 + $0xf0] sm:$0xf]  ;;  %v189_v31 = vld [vmem:[%s1058_s23 + $0xf8] sm:$0xf]  ;;  %186 = vst [vmem:[%s1065_s24 + $0x74] sm:$0xf] %v185_v29 }
  0x29   : > { %188 = vst [vmem:[%s1065_s24 + $0x78] sm:$0xf] %v187_v30  ;;  %190 = vst [vmem:[%s1065_s24 + $0x7c] sm:$0xf] %v189_v31  ;;  %v191_v32 = vld [vmem:[%s1058_s23 + $0x100] sm:$0xf] }
  0x2a   : > { %v193_v33 = vld [vmem:[%s1058_s23 + $0x108] sm:$0xf]  ;;  %v195_v34 = vld [vmem:[%s1058_s23 + $0x110] sm:$0xf]  ;;  %192 = vst [vmem:[%s1065_s24 + $0x80] sm:$0xf] %v191_v32 }
  0x2b   : > { %194 = vst [vmem:[%s1065_s24 + $0x84] sm:$0xf] %v193_v33  ;;  %196 = vst [vmem:[%s1065_s24 + $0x88] sm:$0xf] %v195_v34  ;;  %v197_v35 = vld [vmem:[%s1058_s23 + $0x118] sm:$0xf] }
  0x2c   : > { %v199_v36 = vld [vmem:[%s1058_s23 + $0x120] sm:$0xf]  ;;  %v201_v37 = vld [vmem:[%s1058_s23 + $0x128] sm:$0xf]  ;;  %198 = vst [vmem:[%s1065_s24 + $0x8c] sm:$0xf] %v197_v35 }
  0x2d   : > { %200 = vst [vmem:[%s1065_s24 + $0x90] sm:$0xf] %v199_v36  ;;  %202 = vst [vmem:[%s1065_s24 + $0x94] sm:$0xf] %v201_v37  ;;  %v203_v38 = vld [vmem:[%s1058_s23 + $0x130] sm:$0xf] }
  0x2e   : > { %v205_v39 = vld [vmem:[%s1058_s23 + $0x138] sm:$0xf]  ;;  %v207_v40 = vld [vmem:[%s1058_s23 + $0x140] sm:$0xf]  ;;  %204 = vst [vmem:[%s1065_s24 + $0x98] sm:$0xf] %v203_v38 }
  0x2f   : > { %206 = vst [vmem:[%s1065_s24 + $0x9c] sm:$0xf] %v205_v39  ;;  %208 = vst [vmem:[%s1065_s24 + $0xa0] sm:$0xf] %v207_v40  ;;  %v209_v41 = vld [vmem:[%s1058_s23 + $0x148] sm:$0xf] }
  0x30   : > { %v211_v42 = vld [vmem:[%s1058_s23 + $0x150] sm:$0xf]  ;;  %v213_v43 = vld [vmem:[%s1058_s23 + $0x158] sm:$0xf]  ;;  %210 = vst [vmem:[%s1065_s24 + $0xa4] sm:$0xf] %v209_v41 }
  0x31   : > { %212 = vst [vmem:[%s1065_s24 + $0xa8] sm:$0xf] %v211_v42  ;;  %214 = vst [vmem:[%s1065_s24 + $0xac] sm:$0xf] %v213_v43  ;;  %v215_v44 = vld [vmem:[%s1058_s23 + $0x160] sm:$0xf] }
  0x32   : > { %v217_v45 = vld [vmem:[%s1058_s23 + $0x168] sm:$0xf]  ;;  %v219_v46 = vld [vmem:[%s1058_s23 + $0x170] sm:$0xf]  ;;  %216 = vst [vmem:[%s1065_s24 + $0xb0] sm:$0xf] %v215_v44 }
  0x33   : > { %218 = vst [vmem:[%s1065_s24 + $0xb4] sm:$0xf] %v217_v45  ;;  %220 = vst [vmem:[%s1065_s24 + $0xb8] sm:$0xf] %v219_v46  ;;  %v221_v47 = vld [vmem:[%s1058_s23 + $0x178] sm:$0xf] }
  0x34   : > { %v223_v48 = vld [vmem:[%s1058_s23 + $0x180] sm:$0xf]  ;;  %v225_v49 = vld [vmem:[%s1058_s23 + $0x188] sm:$0xf]  ;;  %222 = vst [vmem:[%s1065_s24 + $0xbc] sm:$0xf] %v221_v47 }
  0x35   : > { %224 = vst [vmem:[%s1065_s24 + $0xc0] sm:$0xf] %v223_v48  ;;  %226 = vst [vmem:[%s1065_s24 + $0xc4] sm:$0xf] %v225_v49 }
  0x36 PF: > { %p845_p7 = scmp.ge.s32.totalorder %s1000_s11, 1  ;;  %p348_p8 = scmp.lt.s32.totalorder %s1000_s11, 3 }
  0x38   : > { %p349_p9 = pnand %p845_p7, %p348_p8 }
  0x39   : > { %s355_s25 = sand.u32 (!%p349_p9), 1, %s992_s9   ;;  %v1002_v50 = vmov (!%p349_p9), 0   ;;  %v967_v51 = vld [vmem:[%s1248_s0 + $0x4] ss:$16 sps:$4 sm:$0xff] (!%p349_p9)   ;;  %vm622_vm0 = vcmask (!%p349_p9), 130048  }
  0x3a   : > { %352 = sbr.rel (%p349_p9) target bundleno = 332 (0x14c), region = 65  ;;  %678 = vmatprep.subr.bf16.mxu1 (!%p349_p9), %v1002_v50  ;;  %v971_v52 = vld [vmem:[%s1248_s0 + $0xc] ss:$16 sps:$4 sm:$0xff] (!%p349_p9)   ;;  %661 = vmatprep.mubr.bf16.mxu0 (!%p349_p9), %v967_v51  ;;  %v965_v13 = vld [vmem:[%s1248_s0] ss:$16 sps:$4 sm:$0xff] (!%p349_p9)   ;;  %s846_s23 = sshll.u32 (!%p349_p9), %s355_s25, 5 }
  0x3b   : > { %s915_s26 = smul.u32 (!%p349_p9), 200, %s355_s25  ;;  %880 = vmatprep.mubr.msk.bf16.mxu1 (!%p349_p9), %vm622_vm0, %v971_v52  ;;  %v972_v15 = vld [vmem:[%s1248_s0 + $0x24] ss:$16 sps:$4 sm:$0xff] (!%p349_p9)   ;;  %v969_v16 = vld [vmem:[%s1248_s0 + $0x8] ss:$16 sps:$4 sm:$0xff] (!%p349_p9)   ;;  %s374_s24 = scalar_lea.vmem (!%p349_p9), [#allocation3], %s846_s23 }
  0x3c   : > { %v975_v17 = vld [vmem:[%s1248_s0 + $0x2c] ss:$16 sps:$4 sm:$0xff] (!%p349_p9)   ;;  %v974_v18 = vld [vmem:[%s1248_s0 + $0x20] ss:$16 sps:$4 sm:$0xff] (!%p349_p9)   ;;  %v977_v19 = vld [vmem:[%s1248_s0 + $0x28] ss:$16 sps:$4 sm:$0xff] (!%p349_p9)  }
  0x3d   : > { %s1174_s3 = scalar_lea.vmem (!%p349_p9), [#allocation2], %s915_s26 }
  0x3e   : > { %v941_v53 = vld [vmem:[%s1174_s3 + $0x40] sm:$0xff] (!%p349_p9)   ;;  %v944_v56 = vld [vmem:[%s1174_s3 + $0x48] sm:$0xff] (!%p349_p9)   ;;  %v947_v59 = vld [vmem:[%s1174_s3 + $0x50] sm:$0xff] (!%p349_p9)  }
  0x3f   : > { %v942_v54 = vld [vmem:[%s1174_s3 + $0x80] sm:$0xff] (!%p349_p9)   ;;  %886 = vmatprep.subr.bf16.mxu0 (!%p349_p9), %v941_v53  ;;  %v945_v57 = vld [vmem:[%s1174_s3 + $0x88] sm:$0xff] (!%p349_p9)   ;;  %v948_v60 = vld [vmem:[%s1174_s3 + $0x90] sm:$0xff] (!%p349_p9)  }
  0x40   : > { %v943_v55 = vld [vmem:[%s1174_s3] sm:$0xff] (!%p349_p9)   ;;  %679 = vmatpush1.bf16.msra.mxu1 (!%p349_p9), %v942_v54  ;;  %v946_v58 = vld [vmem:[%s1174_s3 + $0x8] sm:$0xff] (!%p349_p9)   ;;  %v949_v61 = vld [vmem:[%s1174_s3 + $0x10] sm:$0xff] (!%p349_p9)  }
  0x41   : > { %887 = vmatpush3.bf16.msra.mxu0 %v943_v55  ;;  %680 = vmatprep.subr.bf16.mxu1 %v1002_v50  ;;  %v950_v62 = vld [vmem:[%s1174_s3 + $0x58] sm:$0xff]   ;;  %v953_v1 = vld [vmem:[%s1174_s3 + $0x60] sm:$0xff]   ;;  %v956_v4 = vld [vmem:[%s1174_s3 + $0x68] sm:$0xff]   ;;  %s883_s9 = sshll.u32 (%p1048_p5), %s840_s12, 3 }
  0x42   : > { %888 = vmatprep.subr.bf16.mxu0 %v944_v56  ;;  %v951_v63 = vld [vmem:[%s1174_s3 + $0x98] sm:$0xff]   ;;  %v954_v2 = vld [vmem:[%s1174_s3 + $0xa0] sm:$0xff]   ;;  %v957_v5 = vld [vmem:[%s1174_s3 + $0xa8] sm:$0xff]   ;;  %s739_s27 = scalar_lea.vmem (%p1048_p5), %s1250_s2, %s883_s9 }
  0x43   : > { %v952_v0 = vld [vmem:[%s1174_s3 + $0x18] sm:$0xff]   ;;  %v955_v3 = vld [vmem:[%s1174_s3 + $0x20] sm:$0xff]   ;;  %v958_v6 = vld [vmem:[%s1174_s3 + $0x28] sm:$0xff]  }
  0x44   : > { %681 = vmatpush1.bf16.msra.mxu1 %v945_v57  ;;  %v959_v7 = vld [vmem:[%s1174_s3 + $0x70] sm:$0xff]   ;;  %v962_v10 = vld [vmem:[%s1174_s3 + $0x78] sm:$0xff]   ;;  %v968_v14 = vld [vmem:[%s1174_s3 + $0xc0] sm:$0xff]  }
  0x45   : > { %889 = vmatpush3.bf16.msra.mxu0 %v946_v58  ;;  %682 = vmatprep.subr.bf16.mxu1 %v1002_v50  ;;  %v960_v8 = vld [vmem:[%s1174_s3 + $0xb0] sm:$0xff]   ;;  %v963_v11 = vld [vmem:[%s1174_s3 + $0xb8] sm:$0xff]  }
  0x46   : > { %890 = vmatprep.subr.bf16.mxu0 %v947_v59  ;;  %v961_v9 = vld [vmem:[%s1174_s3 + $0x30] sm:$0xff]   ;;  %v964_v12 = vld [vmem:[%s1174_s3 + $0x38] sm:$0xff]  }
  0x48   : > { %683 = vmatpush1.bf16.msra.mxu1 %v948_v60 }
  0x49   : > { %891 = vmatpush3.bf16.msra.mxu0 %v949_v61  ;;  %684 = vmatprep.subr.bf16.mxu1 %v1002_v50 }
  0x4a   : > { %892 = vmatprep.subr.bf16.mxu0 %v950_v62 }
  0x4c   : > { %685 = vmatpush1.bf16.msra.mxu1 %v951_v63 }
  0x4d   : > { %893 = vmatpush3.bf16.msra.mxu0 %v952_v0  ;;  %686 = vmatprep.subr.bf16.mxu1 %v1002_v50 }
  0x4e   : > { %894 = vmatprep.subr.bf16.mxu0 %v953_v1 }
  0x50   : > { %687 = vmatpush1.bf16.msra.mxu1 %v954_v2 }
  0x51   : > { %895 = vmatpush3.bf16.msra.mxu0 %v955_v3  ;;  %688 = vmatprep.subr.bf16.mxu1 %v1002_v50 }
  0x52   : > { %896 = vmatprep.subr.bf16.mxu0 %v956_v4 }
  0x54   : > { %689 = vmatpush1.bf16.msra.mxu1 %v957_v5 }
  0x55   : > { %897 = vmatpush3.bf16.msra.mxu0 %v958_v6  ;;  %690 = vmatprep.subr.bf16.mxu1 %v1002_v50 }
  0x56   : > { %898 = vmatprep.subr.bf16.mxu0 %v959_v7 }
  0x58   : > { %691 = vmatpush1.bf16.msra.mxu1 %v960_v8 }
  0x59   : > { %899 = vmatpush3.bf16.msra.mxu0 %v961_v9  ;;  %692 = vmatprep.subr.bf16.mxu1 %v1002_v50 }
  0x5a   : > { %900 = vmatprep.subr.bf16.mxu0 %v962_v10 }
  0x5c   : > { %693 = vmatpush1.bf16.msra.mxu1 %v963_v11 }
  0x5d   : > { %901 = vmatpush3.bf16.msra.mxu0 %v964_v12  ;;  %694 = vmatprep.subr.bf16.mxu1 %v1002_v50 }
  0x60   : > { %662 = vmatmul.mubr.bf16.vlgmr.msra.gmra.mrb[0].mxu0 %v965_v13  ;;  %695 = vmatpush1.bf16.msra.mxu1 %v968_v14 }
  0x61   : > { %669 = vmatprep.mubr.bf16.mxu0 %v972_v15 }
  0x63   : > { %711 = vmatmul.mubr.bf16.vlgmr.msra.gmra.mrb[0].mxu1 %v969_v16 }
  0x64   : > { %881 = vmatprep.mubr.msk.bf16.mxu1 %vm622_vm0, %v975_v17 }
  0x68   : > { %670 = vmatmul.mubr.bf16.gmra.mrb[4].mxu0 %v974_v18 }
  0x6b   : > { %719 = vmatmul.mubr.bf16.gmra.mrb[4].mxu1 %v977_v19 }
 0x133   : > { %v902_v20 = vpop.f32.mrb[0].mxu0 }
 0x134   : > { %v903_v21 = vpop.f32.mrb[1].mxu0 }
 0x135   : > { %v904_v22 = vadd.f32 %v903_v21, %v902_v20  ;;  %v905_v23 = vpop.f32.mrb[2].mxu0 }
 0x136   : > { %v906_v24 = vpop.f32.mrb[3].mxu0  ;;  %v712_v25 = vpop.f32.mrb[0].mxu1 }
 0x137   : > { %v907_v26 = vadd.f32 %v906_v24, %v905_v23  ;;  %v713_v27 = vadd.f32 %v904_v22, %v712_v25  ;;  %v714_v28 = vpop.f32.mrb[1].mxu1 }
 0x138   : > { %v715_v29 = vpop.f32.mrb[2].mxu1 }
 0x139   : > { %727 = vst [vmem:[%s374_s24] sm:$0xff] %v713_v27  ;;  %v716_v30 = vadd.f32 %v907_v26, %v715_v29  ;;  %v717_v31 = vpop.f32.mrb[3].mxu1 }
 0x13b   : > { %728 = vst [vmem:[%s374_s24 + $0x8] sm:$0xff] %v716_v30  ;;  %v908_v32 = vpop.f32.mrb[4].mxu0 }
 0x13c   : > { %v909_v33 = vpop.f32.mrb[5].mxu0 }
 0x13d   : > { %v910_v34 = vadd.f32 %v909_v33, %v908_v32  ;;  %v911_v35 = vpop.f32.mrb[6].mxu0  ;;  %737 = sbr.rel (!%p1048_p5) target bundleno = 332 (0x14c), region = 73 }
 0x13e   : > { %v912_v36 = vpop.f32.mrb[7].mxu0  ;;  %v720_v37 = vpop.f32.mrb[4].mxu1 }
 0x13f   : > { %v913_v38 = vadd.f32 %v912_v36, %v911_v35  ;;  %v721_v39 = vadd.f32 %v910_v34, %v720_v37  ;;  %v722_v40 = vpop.f32.mrb[5].mxu1 }
 0x140   : > { %v723_v41 = vpop.f32.mrb[6].mxu1  ;;  %v773_v44 = vld [vmem:[%s374_s24] sm:$0xff] (%p1048_p5) }
 0x141   : > { %729 = vst [vmem:[%s374_s24 + $0x10] sm:$0xff] %v721_v39  ;;  %v724_v42 = vadd.f32 %v913_v38, %v723_v41  ;;  %v725_v43 = vpop.f32.mrb[7].mxu1  ;;  %774 = vst [vmem:[%s739_s27] sm:$0xff] (%p1048_p5), %v773_v44 }
 0x142   : > { %v775_v45 = vld [vmem:[%s374_s24 + $0x8] sm:$0xff] (%p1048_p5) }
 0x143   : > { %730 = vst [vmem:[%s374_s24 + $0x18] sm:$0xff] %v724_v42  ;;  %776 = vst [vmem:[%s739_s27 + $0x10] sm:$0xff] (%p1048_p5), %v775_v45 }
 0x148   : > { %v777_v46 = vld [vmem:[%s374_s24 + $0x10] sm:$0xff] }
 0x149   : > { %778 = vst [vmem:[%s739_s27 + $0x20] sm:$0xff] %v777_v46 }
 0x14a   : > { %v779_v47 = vld [vmem:[%s374_s24 + $0x18] sm:$0xff] }
 0x14b   : > { %780 = vst [vmem:[%s739_s27 + $0x30] sm:$0xff] %v779_v47 }
 0x14c PF: > { %p9_p10 = scmp.ge.s32.totalorder %s1035_s13, 4   ;;  %s1252_s9 = smov %s996_s10 }
 0x14d   : > { %s1253_s10 = smov %s1046_s16  ;;  %s1254_s11 = smov %s1035_s13 }
 0x14e   :  { %11 = sbr.rel (!%p9_p10) target bundleno = 2 (0x2), region = 142 }

// kernel: forward.11
= control target key start
LH: loop header
LB: loop body
LE: loop exit
PB: predicated region body
PF: predicated region fallthrough
CT: control target
= control target key end

     0   :  { %v315_v0 = vmov 0   ;;  %vm152_vm0 = vcmask 523264   ;;  %s443_s1 = inlined_call_operand.vmem [shape: bf16[192,128], index: 1, kind: input, shape index: {}]   ;;  %s444_s0 = inlined_call_operand.vmem [shape: bf16[64,192], index: 0, kind: input, shape index: {}]   ;;  %s445_s2 = inlined_call_operand.vmem [shape: f32[64,128], index: 2, kind: output, shape index: {}]  }
   0x1   :  { %165 = vmatprep.subr.bf16.mxu0 %v315_v0  ;;  %266 = vmatprep.subr.bf16.mxu1 %v315_v0  ;;  %v291_v1 = vld [vmem:[%s443_s1] sm:$0xff]   ;;  %v292_v2 = vld [vmem:[%s443_s1 + $0x8] sm:$0xff]   ;;  %v293_v3 = vld [vmem:[%s443_s1 + $0x10] sm:$0xff]  }
   0x2   :  { %166 = vmatpush1.bf16.msra.mxu0 %v291_v1  ;;  %278 = vmatpush1.bf16.msra.mxu1 %v291_v1  ;;  %v294_v4 = vld [vmem:[%s443_s1 + $0x18] sm:$0xff]   ;;  %v305_v5 = vld [vmem:[%s444_s0 + $0x4] ss:$8 sps:$4 sm:$0xff]   ;;  %v297_v9 = vld [vmem:[%s443_s1 + $0x30] sm:$0xff]  }
   0x3   :  { %167 = vmatprep.subr.bf16.mxu0 %v315_v0  ;;  %267 = vmatprep.subr.bf16.mxu1 %v315_v0  ;;  %v295_v6 = vld [vmem:[%s443_s1 + $0x20] sm:$0xff]   ;;  %v296_v8 = vld [vmem:[%s443_s1 + $0x28] sm:$0xff]   ;;  %v298_v10 = vld [vmem:[%s443_s1 + $0x38] sm:$0xff]  }
   0x4   :  { %v308_v7 = vld [vmem:[%s444_s0 + $0x24] ss:$8 sps:$4 sm:$0xff]   ;;  %262 = vmatprep.mubr.msk.bf16.mxu0 %vm152_vm0, %v305_v5  ;;  %v301_v13 = vld [vmem:[%s443_s1 + $0x50] sm:$0xff]   ;;  %v302_v14 = vld [vmem:[%s443_s1 + $0x58] sm:$0xff]  }
   0x5   :  { %264 = vmatprep.mubr.msk.bf16.mxu1 %vm152_vm0, %v308_v7  ;;  %v299_v11 = vld [vmem:[%s443_s1 + $0x40] sm:$0xff]   ;;  %v300_v12 = vld [vmem:[%s443_s1 + $0x48] sm:$0xff]   ;;  %v309_v17 = vld [vmem:[%s444_s0 + $0x14] ss:$8 sps:$4 sm:$0xff]  }
   0x6   :  { %168 = vmatpush1.bf16.msra.mxu0 %v292_v2  ;;  %279 = vmatpush1.bf16.msra.mxu1 %v292_v2  ;;  %v303_v15 = vld [vmem:[%s444_s0] ss:$8 sps:$4 sm:$0xff]   ;;  %v311_v18 = vld [vmem:[%s444_s0 + $0x34] ss:$8 sps:$4 sm:$0xff]   ;;  %v313_v19 = vld [vmem:[%s444_s0 + $0x10] ss:$8 sps:$4 sm:$0xff]  }
   0x7   :  { %169 = vmatprep.subr.bf16.mxu0 %v315_v0  ;;  %268 = vmatprep.subr.bf16.mxu1 %v315_v0  ;;  %v306_v16 = vld [vmem:[%s444_s0 + $0x20] ss:$8 sps:$4 sm:$0xff]   ;;  %v314_v20 = vld [vmem:[%s444_s0 + $0x30] ss:$8 sps:$4 sm:$0xff]  }
   0xa   :  { %170 = vmatpush1.bf16.msra.mxu0 %v293_v3  ;;  %280 = vmatpush1.bf16.msra.mxu1 %v293_v3 }
   0xb   :  { %171 = vmatprep.subr.bf16.mxu0 %v315_v0  ;;  %269 = vmatprep.subr.bf16.mxu1 %v315_v0 }
   0xe   :  { %172 = vmatpush1.bf16.msra.mxu0 %v294_v4  ;;  %281 = vmatpush1.bf16.msra.mxu1 %v294_v4 }
   0xf   :  { %173 = vmatprep.subr.bf16.mxu0 %v315_v0  ;;  %270 = vmatprep.subr.bf16.mxu1 %v315_v0 }
  0x12   :  { %174 = vmatpush1.bf16.msra.mxu0 %v295_v6  ;;  %282 = vmatpush1.bf16.msra.mxu1 %v295_v6 }
  0x13   :  { %175 = vmatprep.subr.bf16.mxu0 %v315_v0  ;;  %271 = vmatprep.subr.bf16.mxu1 %v315_v0 }
  0x16   :  { %176 = vmatpush1.bf16.msra.mxu0 %v296_v8  ;;  %283 = vmatpush1.bf16.msra.mxu1 %v296_v8 }
  0x17   :  { %177 = vmatprep.subr.bf16.mxu0 %v315_v0  ;;  %272 = vmatprep.subr.bf16.mxu1 %v315_v0 }
  0x1a   :  { %178 = vmatpush1.bf16.msra.mxu0 %v297_v9  ;;  %284 = vmatpush1.bf16.msra.mxu1 %v297_v9 }
  0x1b   :  { %179 = vmatprep.subr.bf16.mxu0 %v315_v0  ;;  %273 = vmatprep.subr.bf16.mxu1 %v315_v0 }
  0x1e   :  { %180 = vmatpush1.bf16.msra.mxu0 %v298_v10  ;;  %285 = vmatpush1.bf16.msra.mxu1 %v298_v10 }
  0x1f   :  { %181 = vmatprep.subr.bf16.mxu0 %v315_v0  ;;  %274 = vmatprep.subr.bf16.mxu1 %v315_v0 }
  0x22   :  { %182 = vmatpush1.bf16.msra.mxu0 %v299_v11  ;;  %286 = vmatpush1.bf16.msra.mxu1 %v299_v11 }
  0x23   :  { %183 = vmatprep.subr.bf16.mxu0 %v315_v0  ;;  %275 = vmatprep.subr.bf16.mxu1 %v315_v0 }
  0x26   :  { %184 = vmatpush1.bf16.msra.mxu0 %v300_v12  ;;  %287 = vmatpush1.bf16.msra.mxu1 %v300_v12 }
  0x27   :  { %185 = vmatprep.subr.bf16.mxu0 %v315_v0  ;;  %276 = vmatprep.subr.bf16.mxu1 %v315_v0 }
  0x2a   :  { %186 = vmatpush1.bf16.msra.mxu0 %v301_v13  ;;  %288 = vmatpush1.bf16.msra.mxu1 %v301_v13 }
  0x2b   :  { %187 = vmatprep.subr.bf16.mxu0 %v315_v0  ;;  %277 = vmatprep.subr.bf16.mxu1 %v315_v0 }
  0x2e   :  { %188 = vmatpush1.bf16.msra.mxu0 %v302_v14  ;;  %289 = vmatpush1.bf16.msra.mxu1 %v302_v14 }
  0x31   :  { %198 = vmatmul.mubr.bf16.vlgmr.msra.gmra.mrb[0].mxu0 %v303_v15  ;;  %214 = vmatmul.mubr.bf16.vlgmr.msra.gmra.mrb[0].mxu1 %v306_v16 }
  0x32   :  { %263 = vmatprep.mubr.msk.bf16.mxu0 %vm152_vm0, %v309_v17  ;;  %265 = vmatprep.mubr.msk.bf16.mxu1 %vm152_vm0, %v311_v18 }
  0x39   :  { %206 = vmatmul.mubr.bf16.gmra.mrb[4].mxu0 %v313_v19  ;;  %222 = vmatmul.mubr.bf16.gmra.mrb[4].mxu1 %v314_v20 }
 0x104   :  { %v199_v21 = vpop.f32.mrb[0].mxu0  ;;  %v215_v22 = vpop.f32.mrb[0].mxu1 }
 0x105   :  { %230 = vst [vmem:[%s445_s2] sm:$0xff] %v199_v21  ;;  %234 = vst [vmem:[%s445_s2 + $0x20] sm:$0xff] %v215_v22  ;;  %v201_v23 = vpop.f32.mrb[1].mxu0  ;;  %v217_v24 = vpop.f32.mrb[1].mxu1 }
 0x106   :  { %v202_v25 = vpop.f32.mrb[2].mxu0  ;;  %v218_v26 = vpop.f32.mrb[2].mxu1 }
 0x107   :  { %231 = vst [vmem:[%s445_s2 + $0x8] sm:$0xff] %v202_v25  ;;  %235 = vst [vmem:[%s445_s2 + $0x28] sm:$0xff] %v218_v26  ;;  %v204_v27 = vpop.f32.mrb[3].mxu0  ;;  %v220_v28 = vpop.f32.mrb[3].mxu1 }
 0x10c   :  { %v207_v29 = vpop.f32.mrb[4].mxu0  ;;  %v223_v30 = vpop.f32.mrb[4].mxu1 }
 0x10d   :  { %232 = vst [vmem:[%s445_s2 + $0x10] sm:$0xff] %v207_v29  ;;  %236 = vst [vmem:[%s445_s2 + $0x30] sm:$0xff] %v223_v30  ;;  %v209_v31 = vpop.f32.mrb[5].mxu0  ;;  %v225_v32 = vpop.f32.mrb[5].mxu1 }
 0x10e   :  { %v210_v33 = vpop.f32.mrb[6].mxu0  ;;  %v226_v34 = vpop.f32.mrb[6].mxu1 }
 0x10f   :  { %233 = vst [vmem:[%s445_s2 + $0x18] sm:$0xff] %v210_v33  ;;  %237 = vst [vmem:[%s445_s2 + $0x38] sm:$0xff] %v226_v34  ;;  %v212_v35 = vpop.f32.mrb[7].mxu0  ;;  %v228_v36 = vpop.f32.mrb[7].mxu1 }

// kernel: forward.12
= control target key start
LH: loop header
LB: loop body
LE: loop exit
PB: predicated region body
PF: predicated region fallthrough
CT: control target
= control target key end

     0   :  { %v1866_v1 = vmov 0   ;;  %s2415_s1 = inlined_call_operand.vmem [shape: bf16[1024,128], index: 1, kind: input, shape index: {}]   ;;  %s2416_s0 = inlined_call_operand.vmem [shape: bf16[128,1024], index: 0, kind: input, shape index: {}]   ;;  %s2417_s2 = inlined_call_operand.vmem [shape: f32[128,1], index: 2, kind: input, shape index: {}]   ;;  %s2418_s3 = inlined_call_operand.vmem [shape: f32[128,128], index: 3, kind: output, shape index: {}]  }
   0x1   :  { %v1802_v0 = vld [vmem:[%s2415_s1 + $0x40] sm:$0xff]   ;;  %1800 = vset.pattern.permute.xlu0 %v1866_v1  ;;  %1801 = vset.pattern.permute.xlu1 %v1866_v1  ;;  %v1806_v5 = vld [vmem:[%s2415_s1 + $0x48] sm:$0xff]   ;;  %v1810_v9 = vld [vmem:[%s2415_s1 + $0x50] sm:$0xff]  }
   0x2   :  { %v1803_v2 = vld [vmem:[%s2415_s1 + $0xc0] sm:$0xff]   ;;  %1543 = vmatprep.subr.bf16.mxu0 %v1802_v0  ;;  %v1807_v6 = vld [vmem:[%s2415_s1 + $0xc8] sm:$0xff]   ;;  %v1811_v10 = vld [vmem:[%s2415_s1 + $0xd0] sm:$0xff]  }
   0x3   :  { %v1804_v3 = vld [vmem:[%s2415_s1] sm:$0xff]   ;;  %1607 = vmatprep.subr.bf16.mxu1 %v1803_v2  ;;  %v1808_v7 = vld [vmem:[%s2415_s1 + $0x8] sm:$0xff]   ;;  %v1812_v11 = vld [vmem:[%s2415_s1 + $0x10] sm:$0xff]  }
   0x4   :  { %v1805_v4 = vld [vmem:[%s2415_s1 + $0x80] sm:$0xff]   ;;  %1544 = vmatpush3.bf16.msra.mxu0 %v1804_v3  ;;  %v1809_v8 = vld [vmem:[%s2415_s1 + $0x88] sm:$0xff]   ;;  %v1813_v12 = vld [vmem:[%s2415_s1 + $0x90] sm:$0xff]  }
   0x5   :  { %1608 = vmatpush3.bf16.msra.mxu1 %v1805_v4  ;;  %1545 = vmatprep.subr.bf16.mxu0 %v1806_v5  ;;  %v1814_v13 = vld [vmem:[%s2415_s1 + $0x58] sm:$0xff]   ;;  %v1818_v17 = vld [vmem:[%s2415_s1 + $0x60] sm:$0xff]   ;;  %v1822_v21 = vld [vmem:[%s2415_s1 + $0x68] sm:$0xff]  }
   0x6   :  { %1609 = vmatprep.subr.bf16.mxu1 %v1807_v6  ;;  %v1815_v14 = vld [vmem:[%s2415_s1 + $0xd8] sm:$0xff]   ;;  %v1819_v18 = vld [vmem:[%s2415_s1 + $0xe0] sm:$0xff]   ;;  %v1823_v22 = vld [vmem:[%s2415_s1 + $0xe8] sm:$0xff]  }
   0x7   :  { %v1816_v15 = vld [vmem:[%s2415_s1 + $0x18] sm:$0xff]   ;;  %v1820_v19 = vld [vmem:[%s2415_s1 + $0x20] sm:$0xff]   ;;  %v1824_v23 = vld [vmem:[%s2415_s1 + $0x28] sm:$0xff]  }
   0x8   :  { %1546 = vmatpush3.bf16.msra.mxu0 %v1808_v7  ;;  %v1817_v16 = vld [vmem:[%s2415_s1 + $0x98] sm:$0xff]   ;;  %v1821_v20 = vld [vmem:[%s2415_s1 + $0xa0] sm:$0xff]   ;;  %v1825_v24 = vld [vmem:[%s2415_s1 + $0xa8] sm:$0xff]  }
   0x9   :  { %1610 = vmatpush3.bf16.msra.mxu1 %v1809_v8  ;;  %1547 = vmatprep.subr.bf16.mxu0 %v1810_v9  ;;  %v1826_v25 = vld [vmem:[%s2415_s1 + $0x70] sm:$0xff]   ;;  %v1830_v29 = vld [vmem:[%s2415_s1 + $0x78] sm:$0xff]   ;;  %v15_v33 = vld [vmem:[%s2416_s0] sm:$0xff] }
   0xa   :  { %1611 = vmatprep.subr.bf16.mxu1 %v1811_v10  ;;  %v1827_v26 = vld [vmem:[%s2415_s1 + $0xf0] sm:$0xff]   ;;  %v1831_v30 = vld [vmem:[%s2415_s1 + $0xf8] sm:$0xff]   ;;  %v19_v34 = vld [vmem:[%s2416_s0 + $0x20] sm:$0xff] }
   0xb   :  { %v1828_v27 = vld [vmem:[%s2415_s1 + $0x30] sm:$0xff]   ;;  %v1832_v31 = vld [vmem:[%s2415_s1 + $0x38] sm:$0xff]   ;;  %v16_v35 = vld [vmem:[%s2416_s0 + $0x8] sm:$0xff]  ;;  %v1415_v36 = vcombine.low %v15_v33, %v19_v34  ;;  %v1416_v37 = vcombine.high %v15_v33, %v19_v34 }
   0xc   :  { %1548 = vmatpush3.bf16.msra.mxu0 %v1812_v11  ;;  %v1829_v28 = vld [vmem:[%s2415_s1 + $0xb0] sm:$0xff]   ;;  %v1833_v32 = vld [vmem:[%s2415_s1 + $0xb8] sm:$0xff]   ;;  %v20_v38 = vld [vmem:[%s2416_s0 + $0x28] sm:$0xff] }
   0xd   :  { %1612 = vmatpush3.bf16.msra.mxu1 %v1813_v12  ;;  %1549 = vmatprep.subr.bf16.mxu0 %v1814_v13  ;;  %v1417_v39 = vcombine.low %v16_v35, %v20_v38  ;;  %v1418_v40 = vcombine.high %v16_v35, %v20_v38  ;;  %v1834_v41 = vld [vmem:[%s2415_s1 + $0x140] sm:$0xff]   ;;  %v24_v48 = vld [vmem:[%s2416_s0 + $0x48] sm:$0xff]  ;;  %v1842_v63 = vld [vmem:[%s2415_s1 + $0x150] sm:$0xff]  }
   0xe   :  { %1613 = vmatprep.subr.bf16.mxu1 %v1815_v14  ;;  %1039 = vmatprep.mubr.bf16.mxu0 %v1416_v37  ;;  %v1835_v42 = vld [vmem:[%s2415_s1 + $0x100] sm:$0xff]   ;;  %v28_v49 = vld [vmem:[%s2416_s0 + $0x68] sm:$0xff]  ;;  %v1843_v0 = vld [vmem:[%s2415_s1 + $0x110] sm:$0xff]  }
   0xf   :  { %1136 = vmatprep.mubr.bf16.mxu1 %v1418_v40  ;;  %v1836_v43 = vld [vmem:[%s2415_s1 + $0x1c0] sm:$0xff]   ;;  %v1426_v50 = vcombine.high %v24_v48, %v28_v49  ;;  %v1838_v51 = vld [vmem:[%s2415_s1 + $0x148] sm:$0xff]   ;;  %v1425_v54 = vcombine.low %v24_v48, %v28_v49  ;;  %v1844_v1 = vld [vmem:[%s2415_s1 + $0x1d0] sm:$0xff]  }
  0x10   :  { %1550 = vmatpush3.bf16.msra.mxu0 %v1816_v15  ;;  %v1837_v44 = vld [vmem:[%s2415_s1 + $0x180] sm:$0xff]   ;;  %v1839_v53 = vld [vmem:[%s2415_s1 + $0x108] sm:$0xff]   ;;  %v1845_v2 = vld [vmem:[%s2415_s1 + $0x190] sm:$0xff]  }
  0x11   :  { %1614 = vmatpush3.bf16.msra.mxu1 %v1817_v16  ;;  %1551 = vmatprep.subr.bf16.mxu0 %v1818_v17  ;;  %v23_v45 = vld [vmem:[%s2416_s0 + $0x40] sm:$0xff]  ;;  %v1840_v55 = vld [vmem:[%s2415_s1 + $0x1c8] sm:$0xff]   ;;  %v1846_v11 = vld [vmem:[%s2415_s1 + $0x158] sm:$0xff]  }
  0x12   :  { %1615 = vmatprep.subr.bf16.mxu1 %v1819_v18  ;;  %v27_v46 = vld [vmem:[%s2416_s0 + $0x60] sm:$0xff]  ;;  %v1841_v56 = vld [vmem:[%s2415_s1 + $0x188] sm:$0xff]   ;;  %v1847_v12 = vld [vmem:[%s2415_s1 + $0x118] sm:$0xff]  }
  0x13   :  { %v1424_v47 = vcombine.high %v23_v45, %v27_v46  ;;  %v1423_v52 = vcombine.low %v23_v45, %v27_v46  ;;  %v31_v57 = vld [vmem:[%s2416_s0 + $0x80] sm:$0xff]  ;;  %v32_v59 = vld [vmem:[%s2416_s0 + $0x88] sm:$0xff]  ;;  %v1848_v13 = vld [vmem:[%s2415_s1 + $0x1d8] sm:$0xff]  }
  0x14   :  { %1552 = vmatpush3.bf16.msra.mxu0 %v1820_v19  ;;  %v35_v58 = vld [vmem:[%s2416_s0 + $0xa0] sm:$0xff]  ;;  %v36_v60 = vld [vmem:[%s2416_s0 + $0xa8] sm:$0xff]  ;;  %v1849_v14 = vld [vmem:[%s2415_s1 + $0x198] sm:$0xff]  }
  0x15   :  { %1616 = vmatpush3.bf16.msra.mxu1 %v1821_v20  ;;  %1553 = vmatprep.subr.bf16.mxu0 %v1822_v21  ;;  %v1432_v61 = vcombine.high %v31_v57, %v35_v58  ;;  %v1434_v62 = vcombine.high %v32_v59, %v36_v60  ;;  %v1431_v3 = vcombine.low %v31_v57, %v35_v58  ;;  %v39_v4 = vld [vmem:[%s2416_s0 + $0xc0] sm:$0xff]  ;;  %v40_v6 = vld [vmem:[%s2416_s0 + $0xc8] sm:$0xff]  ;;  %v1859_v40 = vld [vmem:[%s2415_s1 + $0x130] sm:$0xff]  }
  0x16   :  { %1617 = vmatprep.subr.bf16.mxu1 %v1823_v22  ;;  %v43_v5 = vld [vmem:[%s2416_s0 + $0xe0] sm:$0xff]  ;;  %v1433_v7 = vcombine.low %v32_v59, %v36_v60  ;;  %v44_v9 = vld [vmem:[%s2416_s0 + $0xe8] sm:$0xff]  ;;  %v1863_v49 = vld [vmem:[%s2415_s1 + $0x138] sm:$0xff]  }
  0x17   :  { %v1440_v8 = vcombine.high %v39_v4, %v43_v5  ;;  %v1442_v10 = vcombine.high %v40_v6, %v44_v9  ;;  %v47_v15 = vld [vmem:[%s2416_s0 + $0x100] sm:$0xff]  ;;  %v48_v17 = vld [vmem:[%s2416_s0 + $0x108] sm:$0xff]  ;;  %v1439_v20 = vcombine.low %v39_v4, %v43_v5  ;;  %v1441_v22 = vcombine.low %v40_v6, %v44_v9  ;;  %v17_v4 = vld [vmem:[%s2416_s0 + $0x10] sm:$0xff] }
  0x18   :  { %1554 = vmatpush3.bf16.msra.mxu0 %v1824_v23  ;;  %v51_v16 = vld [vmem:[%s2416_s0 + $0x120] sm:$0xff]  ;;  %v52_v18 = vld [vmem:[%s2416_s0 + $0x128] sm:$0xff]  ;;  %v21_v5 = vld [vmem:[%s2416_s0 + $0x30] sm:$0xff] }
  0x19   :  { %1618 = vmatpush3.bf16.msra.mxu1 %v1825_v24  ;;  %1555 = vmatprep.subr.bf16.mxu0 %v1826_v25  ;;  %v1850_v19 = vld [vmem:[%s2415_s1 + $0x160] sm:$0xff]   ;;  %v1448_v23 = vcombine.high %v47_v15, %v51_v16  ;;  %v1450_v25 = vcombine.high %v48_v17, %v52_v18  ;;  %v1856_v33 = vld [vmem:[%s2415_s1 + $0x1e8] sm:$0xff]   ;;  %v1447_v35 = vcombine.low %v47_v15, %v51_v16  ;;  %v18_v6 = vld [vmem:[%s2416_s0 + $0x18] sm:$0xff] }
  0x1a   :  { %1619 = vmatprep.subr.bf16.mxu1 %v1827_v26  ;;  %v1851_v21 = vld [vmem:[%s2415_s1 + $0x120] sm:$0xff]   ;;  %v1857_v34 = vld [vmem:[%s2415_s1 + $0x1a8] sm:$0xff]   ;;  %v25_v16 = vld [vmem:[%s2416_s0 + $0x50] sm:$0xff] }
  0x1b   :  { %v1852_v24 = vld [vmem:[%s2415_s1 + $0x1e0] sm:$0xff]   ;;  %v64_v45 = vld [vmem:[%s2416_s0 + $0x188] sm:$0xff] }
  0x1c   :  { %1556 = vmatpush3.bf16.msra.mxu0 %v1828_v27  ;;  %v1853_v26 = vld [vmem:[%s2415_s1 + $0x1a0] sm:$0xff]   ;;  %v68_v46 = vld [vmem:[%s2416_s0 + $0x1a8] sm:$0xff] }
  0x1d   :  { %1620 = vmatpush3.bf16.msra.mxu1 %v1829_v28  ;;  %1557 = vmatprep.subr.bf16.mxu0 %v1830_v29  ;;  %v55_v27 = vld [vmem:[%s2416_s0 + $0x140] sm:$0xff]  ;;  %v1854_v29 = vld [vmem:[%s2415_s1 + $0x168] sm:$0xff]  }
  0x1e   :  { %1621 = vmatprep.subr.bf16.mxu1 %v1831_v30  ;;  %v59_v28 = vld [vmem:[%s2416_s0 + $0x160] sm:$0xff]  ;;  %v56_v30 = vld [vmem:[%s2416_s0 + $0x148] sm:$0xff] }
  0x1f   :  { %v1456_v37 = vcombine.high %v55_v27, %v59_v28  ;;  %v1455_v48 = vcombine.low %v55_v27, %v59_v28  ;;  %v207_v57 = vld [vmem:[%s2417_s2] sm:$0xff]  ;;  %v72_v58 = vld [vmem:[%s2416_s0 + $0x1c8] sm:$0xff]  ;;  %v33_v28 = vld [vmem:[%s2416_s0 + $0x90] sm:$0xff] }
  0x20   :  { %1558 = vmatpush3.bf16.msra.mxu0 %v1832_v31  ;;  %v60_v31 = vld [vmem:[%s2416_s0 + $0x168] sm:$0xff]  ;;  %225 = vperm.xlu0 %1800, %v207_v57   ;;  %v215_v15 = vld [vmem:[%s2417_s2 + $0x40] sm:$0xff]  ;;  %v58_v57 = vld [vmem:[%s2416_s0 + $0x158] sm:$0xff] }
  0x21   :  { %1622 = vmatpush3.bf16.msra.mxu1 %v1833_v32  ;;  %1671 = vmatprep.subr.bf16.mxu0 %v1834_v41  ;;  %v1855_v32 = vld [vmem:[%s2415_s1 + $0x128] sm:$0xff]   ;;  %v1458_v38 = vcombine.high %v56_v30, %v60_v31  ;;  %v1860_v41 = vld [vmem:[%s2415_s1 + $0x1f0] sm:$0xff]   ;;  %v219_v27 = vld [vmem:[%s2417_s2 + $0x60] sm:$0xff] }
  0x22   :  { %1735 = vmatprep.subr.bf16.mxu1 %v1836_v43  ;;  %v67_v43 = vld [vmem:[%s2416_s0 + $0x1a0] sm:$0xff]  ;;  %v76_v59 = vld [vmem:[%s2416_s0 + $0x1e8] sm:$0xff] }
  0x23   :  { %1040 = vmatmul.mubr.bf16.vlgmr.msra.gmra.mrb[0].mxu0 %v1415_v36  ;;  %v1449_v36 = vcombine.low %v48_v17, %v52_v18  ;;  %v29_v17 = vld [vmem:[%s2416_s0 + $0x70] sm:$0xff]  ;;  %v26_v18 = vld [vmem:[%s2416_s0 + $0x58] sm:$0xff] }
  0x24   :  { %1137 = vmatmul.mubr.bf16.vlgmr.msra.gmra.mrb[0].mxu1 %v1417_v39  ;;  %1672 = vmatpush3.bf16.msra.mxu0 %v1835_v42  ;;  %v1858_v39 = vld [vmem:[%s2415_s1 + $0x170] sm:$0xff]   ;;  %v63_v42 = vld [vmem:[%s2416_s0 + $0x180] sm:$0xff] }
  0x25   :  { %1736 = vmatpush3.bf16.msra.mxu1 %v1837_v44  ;;  %1047 = vmatprep.mubr.bf16.mxu0 %v1424_v47  ;;  %v1861_v44 = vld [vmem:[%s2415_s1 + $0x1b0] sm:$0xff]   ;;  %v1862_v47 = vld [vmem:[%s2415_s1 + $0x178] sm:$0xff]   ;;  %v1463_v60 = vcombine.low %v63_v42, %v67_v43 }
  0x26   :  { %1144 = vmatprep.mubr.bf16.mxu1 %v1426_v50  ;;  %1673 = vmatprep.subr.bf16.mxu0 %v1838_v51  ;;  %v1457_v50 = vcombine.low %v56_v30, %v60_v31  ;;  %v1464_v51 = vcombine.high %v63_v42, %v67_v43  ;;  %v34_v30 = vld [vmem:[%s2416_s0 + $0x98] sm:$0xff] }
  0x27   :  { %1737 = vmatprep.subr.bf16.mxu1 %v1840_v55  ;;  %v71_v55 = vld [vmem:[%s2416_s0 + $0x1c0] sm:$0xff]  ;;  %v38_v31 = vld [vmem:[%s2416_s0 + $0xb8] sm:$0xff] }
  0x28   :  { %1674 = vmatpush3.bf16.msra.mxu0 %v1839_v53  ;;  %v1466_v53 = vcombine.high %v64_v45, %v68_v46  ;;  %v46_v42 = vld [vmem:[%s2416_s0 + $0xf8] sm:$0xff] }
  0x29   :  { %1738 = vmatpush3.bf16.msra.mxu1 %v1841_v56  ;;  %1675 = vmatprep.subr.bf16.mxu0 %v1842_v63  ;;  %v75_v56 = vld [vmem:[%s2416_s0 + $0x1e0] sm:$0xff]  ;;  %v1465_v63 = vcombine.low %v64_v45, %v68_v46 }
  0x2a   :  { %1739 = vmatprep.subr.bf16.mxu1 %v1844_v1  ;;  %v1474_v1 = vcombine.high %v72_v58, %v76_v59  ;;  %v1471_v9 = vcombine.low %v71_v55, %v75_v56 }
  0x2b   :  { %1048 = vmatmul.mubr.bf16.gmra.mrb[4].mxu0 %v1423_v52  ;;  %v1864_v52 = vld [vmem:[%s2415_s1 + $0x1f8] sm:$0xff]  }
  0x2c   :  { %1145 = vmatmul.mubr.bf16.gmra.mrb[4].mxu1 %v1425_v54  ;;  %1055 = vmatprep.mubr.bf16.mxu0 %v1432_v61  ;;  %v1865_v54 = vld [vmem:[%s2415_s1 + $0x1b8] sm:$0xff]   ;;  %v208_v61 = vld [vmem:[%s2417_s2 + $0x8] sm:$0xff] }
  0x2d   :  { %1152 = vmatprep.mubr.bf16.mxu1 %v1434_v62  ;;  %1676 = vmatpush3.bf16.msra.mxu0 %v1843_v0  ;;  %v209_v62 = vld [vmem:[%s2417_s2 + $0x10] sm:$0xff]  ;;  %v1472_v0 = vcombine.high %v71_v55, %v75_v56 }
  0x2e   :  { %1740 = vmatpush3.bf16.msra.mxu1 %v1845_v2  ;;  %1677 = vmatprep.subr.bf16.mxu0 %v1846_v11  ;;  %v210_v2 = vld [vmem:[%s2417_s2 + $0x18] sm:$0xff]  ;;  %v1473_v11 = vcombine.low %v72_v58, %v76_v59  ;;  %v57_v55 = vld [vmem:[%s2416_s0 + $0x150] sm:$0xff] }
  0x2f   :  { %1741 = vmatprep.subr.bf16.mxu1 %v1848_v13  ;;  %235 = vperm.xlu1 %1801, %v209_v62   ;;  %v61_v56 = vld [vmem:[%s2416_s0 + $0x170] sm:$0xff]  ;;  %v62_v58 = vld [vmem:[%s2416_s0 + $0x178] sm:$0xff] }
  0x30   :  { %230 = vperm.xlu0 %1800, %v208_v61   ;;  %v1460_v61 = vcombine.high %v57_v55, %v61_v56  ;;  %v1462_v62 = vcombine.high %v58_v57, %v62_v58 }
  0x31   :  { %1678 = vmatpush3.bf16.msra.mxu0 %v1847_v12  ;;  %v1420_v12 = vcombine.high %v17_v4, %v21_v5 }
  0x32   :  { %1742 = vmatpush3.bf16.msra.mxu1 %v1849_v14  ;;  %1679 = vmatprep.subr.bf16.mxu0 %v1850_v19  ;;  %v214_v14 = vld [vmem:[%s2417_s2 + $0x38] sm:$0xff] }
  0x33   :  { %1056 = vmatmul.mubr.bf16.gmra.mrb[8].mxu0 %v1431_v3  ;;  %1743 = vmatprep.subr.bf16.mxu1 %v1852_v24  ;;  %v211_v3 = vld [vmem:[%s2417_s2 + $0x20] sm:$0xff]  ;;  %v30_v19 = vld [vmem:[%s2416_s0 + $0x78] sm:$0xff]  ;;  %v1428_v24 = vcombine.high %v25_v16, %v29_v17 }
  0x34   :  { %1153 = vmatmul.mubr.bf16.gmra.mrb[8].mxu1 %v1433_v7  ;;  %1063 = vmatprep.mubr.bf16.mxu0 %v1440_v8  ;;  %v22_v7 = vld [vmem:[%s2416_s0 + $0x38] sm:$0xff]  ;;  %v212_v8 = vld [vmem:[%s2417_s2 + $0x28] sm:$0xff] }
  0x35   :  { %1160 = vmatprep.mubr.bf16.mxu1 %v1442_v10  ;;  %1680 = vmatpush3.bf16.msra.mxu0 %v1851_v21  ;;  %v213_v10 = vld [vmem:[%s2417_s2 + $0x30] sm:$0xff]  ;;  %v1422_v13 = vcombine.high %v18_v6, %v22_v7  ;;  %v1419_v21 = vcombine.low %v17_v4, %v21_v5  ;;  %v1461_v4 = vcombine.low %v58_v57, %v62_v58 }
  0x36   :  { %1744 = vmatpush3.bf16.msra.mxu1 %v1853_v26  ;;  %1681 = vmatprep.subr.bf16.mxu0 %v1854_v29  ;;  %v218_v26 = vld [vmem:[%s2417_s2 + $0x58] sm:$0xff]  ;;  %v37_v29 = vld [vmem:[%s2416_s0 + $0xb0] sm:$0xff] }
  0x37   :  { %1745 = vmatprep.subr.bf16.mxu1 %v1856_v33  ;;  %240 = vperm.xlu1 %1801, %v210_v2   ;;  %v1427_v33 = vcombine.low %v25_v16, %v29_v17  ;;  %v1435_v43 = vcombine.low %v33_v28, %v37_v29  ;;  %v70_v2 = vld [vmem:[%s2416_s0 + $0x1b8] sm:$0xff] }
  0x38   :  { %245 = vperm.xlu0 %1800, %v211_v3   ;;  %v1459_v3 = vcombine.low %v57_v55, %v61_v56 }
  0x39   :  { %1682 = vmatpush3.bf16.msra.mxu0 %v1855_v32  ;;  %v220_v32 = vld [vmem:[%s2417_s2 + $0x68] sm:$0xff] }
  0x3a   :  { %1746 = vmatpush3.bf16.msra.mxu1 %v1857_v34  ;;  %1683 = vmatprep.subr.bf16.mxu0 %v1858_v39  ;;  %v221_v34 = vld [vmem:[%s2417_s2 + $0x70] sm:$0xff] }
  0x3b   :  { %1064 = vmatmul.mubr.bf16.gmra.mrb[12].mxu0 %v1439_v20  ;;  %1747 = vmatprep.subr.bf16.mxu1 %v1860_v41  ;;  %v216_v20 = vld [vmem:[%s2417_s2 + $0x48] sm:$0xff]  ;;  %v41_v39 = vld [vmem:[%s2416_s0 + $0xd0] sm:$0xff]  ;;  %v42_v41 = vld [vmem:[%s2416_s0 + $0xd8] sm:$0xff] }
  0x3c   :  { %1161 = vmatmul.mubr.bf16.gmra.mrb[12].mxu1 %v1441_v22  ;;  %1071 = vmatprep.mubr.bf16.mxu0 %v1448_v23  ;;  %v217_v22 = vld [vmem:[%s2417_s2 + $0x50] sm:$0xff]  ;;  %v1421_v23 = vcombine.low %v18_v6, %v22_v7  ;;  %v1446_v46 = vcombine.high %v42_v41, %v46_v42 }
  0x3d   :  { %1168 = vmatprep.mubr.bf16.mxu1 %v1450_v25  ;;  %1684 = vmatpush3.bf16.msra.mxu0 %v1859_v40  ;;  %v1430_v25 = vcombine.high %v26_v18, %v30_v19  ;;  %v45_v40 = vld [vmem:[%s2416_s0 + $0xf0] sm:$0xff] }
  0x3e   :  { %1748 = vmatpush3.bf16.msra.mxu1 %v1861_v44  ;;  %1685 = vmatprep.subr.bf16.mxu0 %v1862_v47  ;;  %v1437_v44 = vcombine.low %v34_v30, %v38_v31  ;;  %v1444_v45 = vcombine.high %v41_v39, %v45_v40  ;;  %v49_v47 = vld [vmem:[%s2416_s0 + $0x110] sm:$0xff] }
  0x3f   :  { %1749 = vmatprep.subr.bf16.mxu1 %v1864_v52  ;;  %250 = vperm.xlu1 %1801, %v212_v8   ;;  %v1445_v52 = vcombine.low %v42_v41, %v46_v42  ;;  %v73_v7 = vld [vmem:[%s2416_s0 + $0x1d0] sm:$0xff] }
  0x40   :  { %255 = vperm.xlu0 %1800, %v213_v10   ;;  %v77_v8 = vld [vmem:[%s2416_s0 + $0x1f0] sm:$0xff]  ;;  %v78_v10 = vld [vmem:[%s2416_s0 + $0x1f8] sm:$0xff] }
  0x41   :  { %1686 = vmatpush3.bf16.msra.mxu0 %v1863_v49  ;;  %v50_v49 = vld [vmem:[%s2416_s0 + $0x118] sm:$0xff] }
  0x42   :  { %1750 = vmatpush3.bf16.msra.mxu1 %v1865_v54 }
  0x43   :  { %1072 = vmatmul.mubr.bf16.gmra.mrb[16].mxu0 %v1447_v35  ;;  %260 = vperm.xlu1 %1801, %v214_v14   ;;  %v1429_v35 = vcombine.low %v26_v18, %v30_v19 }
  0x44   :  { %1169 = vmatmul.mubr.bf16.gmra.mrb[16].mxu1 %v1449_v36  ;;  %1079 = vmatprep.mubr.bf16.mxu0 %v1456_v37  ;;  %v1436_v36 = vcombine.high %v33_v28, %v37_v29  ;;  %v1438_v37 = vcombine.high %v34_v30, %v38_v31 }
  0x45   :  { %1176 = vmatprep.mubr.bf16.mxu1 %v1458_v38  ;;  %265 = vperm.xlu0 %1800, %v215_v15   ;;  %v222_v38 = vld [vmem:[%s2417_s2 + $0x78] sm:$0xff]  ;;  %v1475_v15 = vcombine.low %v73_v7, %v77_v8 }
  0x47   :  { %270 = vperm.xlu1 %1801, %v216_v20  }
  0x49   :  { %275 = vperm.xlu0 %1800, %v217_v22  }
  0x4b   :  { %1080 = vmatmul.mubr.bf16.gmra.mrb[20].mxu0 %v1455_v48  ;;  %280 = vperm.xlu1 %1801, %v218_v26   ;;  %v53_v48 = vld [vmem:[%s2416_s0 + $0x130] sm:$0xff] }
  0x4c   :  { %1177 = vmatmul.mubr.bf16.gmra.mrb[20].mxu1 %v1457_v50  ;;  %1087 = vmatprep.mubr.bf16.mxu0 %v1464_v51  ;;  %v54_v50 = vld [vmem:[%s2416_s0 + $0x138] sm:$0xff]  ;;  %v1443_v51 = vcombine.low %v41_v39, %v45_v40  ;;  %v1451_v59 = vcombine.low %v49_v47, %v53_v48 }
  0x4d   :  { %1184 = vmatprep.mubr.bf16.mxu1 %v1466_v53  ;;  %285 = vperm.xlu0 %1800, %v219_v27   ;;  %v1452_v53 = vcombine.high %v49_v47, %v53_v48  ;;  %v1454_v54 = vcombine.high %v50_v49, %v54_v50 }
  0x4f   :  { %290 = vperm.xlu1 %1801, %v220_v32  }
  0x51   :  { %295 = vperm.xlu0 %1800, %v221_v34  }
  0x53   :  { %1088 = vmatmul.mubr.bf16.gmra.mrb[24].mxu0 %v1463_v60  ;;  %300 = vperm.xlu1 %1801, %v222_v38   ;;  %v1453_v60 = vcombine.low %v50_v49, %v54_v50 }
  0x54   :  { %1185 = vmatmul.mubr.bf16.gmra.mrb[24].mxu1 %v1465_v63  ;;  %1095 = vmatprep.mubr.bf16.mxu0 %v1472_v0  ;;  %v65_v63 = vld [vmem:[%s2416_s0 + $0x190] sm:$0xff] }
  0x55   :  { %1192 = vmatprep.mubr.bf16.mxu1 %v1474_v1  ;;  %v69_v0 = vld [vmem:[%s2416_s0 + $0x1b0] sm:$0xff]  ;;  %v66_v1 = vld [vmem:[%s2416_s0 + $0x198] sm:$0xff] }
  0x56   :  { %v1468_v5 = vcombine.high %v65_v63, %v69_v0  ;;  %v1470_v6 = vcombine.high %v66_v1, %v70_v2 }
  0x5b   :  { %1096 = vmatmul.mubr.bf16.gmra.mrb[28].mxu0 %v1471_v9  ;;  %v74_v9 = vld [vmem:[%s2416_s0 + $0x1d8] sm:$0xff] }
  0x5c   :  { %1193 = vmatmul.mubr.bf16.gmra.mrb[28].mxu1 %v1473_v11  ;;  %1233 = vmatprep.mubr.bf16.mxu0 %v1420_v12  ;;  %v1467_v11 = vcombine.low %v65_v63, %v69_v0  ;;  %v1469_v12 = vcombine.low %v66_v1, %v70_v2  ;;  %v1478_v14 = vcombine.high %v74_v9, %v78_v10 }
  0x5d   :  { %1330 = vmatprep.mubr.bf16.mxu1 %v1422_v13  ;;  %v1476_v13 = vcombine.high %v73_v7, %v77_v8  ;;  %v1477_v16 = vcombine.low %v74_v9, %v78_v10 }
  0x63   :  { %1234 = vmatmul.mubr.bf16.vlgmr.msra.gmra.mrb[32].mxu0 %v1419_v21 }
  0x64   :  { %1331 = vmatmul.mubr.bf16.vlgmr.msra.gmra.mrb[32].mxu1 %v1421_v23  ;;  %1241 = vmatprep.mubr.bf16.mxu0 %v1428_v24 }
  0x65   :  { %1338 = vmatprep.mubr.bf16.mxu1 %v1430_v25 }
  0x6b   :  { %1242 = vmatmul.mubr.bf16.gmra.mrb[36].mxu0 %v1427_v33 }
  0x6c   :  { %1339 = vmatmul.mubr.bf16.gmra.mrb[36].mxu1 %v1429_v35  ;;  %1249 = vmatprep.mubr.bf16.mxu0 %v1436_v36 }
  0x6d   :  { %1346 = vmatprep.mubr.bf16.mxu1 %v1438_v37 }
  0x73   :  { %1250 = vmatmul.mubr.bf16.gmra.mrb[40].mxu0 %v1435_v43 }
  0x74   :  { %1347 = vmatmul.mubr.bf16.gmra.mrb[40].mxu1 %v1437_v44  ;;  %1257 = vmatprep.mubr.bf16.mxu0 %v1444_v45 }
  0x75   :  { %1354 = vmatprep.mubr.bf16.mxu1 %v1446_v46 }
  0x7b   :  { %1258 = vmatmul.mubr.bf16.gmra.mrb[44].mxu0 %v1443_v51 }
  0x7c   :  { %1355 = vmatmul.mubr.bf16.gmra.mrb[44].mxu1 %v1445_v52  ;;  %1265 = vmatprep.mubr.bf16.mxu0 %v1452_v53 }
  0x7d   :  { %1362 = vmatprep.mubr.bf16.mxu1 %v1454_v54 }
  0x83   :  { %1266 = vmatmul.mubr.bf16.gmra.mrb[48].mxu0 %v1451_v59 }
  0x84   :  { %1363 = vmatmul.mubr.bf16.gmra.mrb[48].mxu1 %v1453_v60  ;;  %1273 = vmatprep.mubr.bf16.mxu0 %v1460_v61 }
  0x85   :  { %1370 = vmatprep.mubr.bf16.mxu1 %v1462_v62 }
  0x8b   :  { %1274 = vmatmul.mubr.bf16.gmra.mrb[52].mxu0 %v1459_v3 }
  0x8c   :  { %1371 = vmatmul.mubr.bf16.gmra.mrb[52].mxu1 %v1461_v4  ;;  %1281 = vmatprep.mubr.bf16.mxu0 %v1468_v5 }
  0x8d   :  { %1378 = vmatprep.mubr.bf16.mxu1 %v1470_v6 }
  0x93   :  { %1282 = vmatmul.mubr.bf16.gmra.mrb[56].mxu0 %v1467_v11 }
  0x94   :  { %1379 = vmatmul.mubr.bf16.gmra.mrb[56].mxu1 %v1469_v12  ;;  %1289 = vmatprep.mubr.bf16.mxu0 %v1476_v13 }
  0x95   :  { %1386 = vmatprep.mubr.bf16.mxu1 %v1478_v14 }
  0x9b   :  { %1290 = vmatmul.mubr.bf16.gmra.mrb[60].mxu0 %v1475_v15 }
  0x9c   :  { %1387 = vmatmul.mubr.bf16.gmra.mrb[60].mxu1 %v1477_v16 }
  0x9f   :  { %v226_v17 = vpop.permute.xlu0 %225 }
  0xae   :  { %v236_v18 = vpop.permute.xlu1 %235 }
  0xaf   :  { %v231_v20 = vpop.permute.xlu0 %230 }
  0xb6   :  { %v241_v37 = vpop.permute.xlu1 %240 }
  0xb7   :  { %v246_v52 = vpop.permute.xlu0 %245 }
  0xbe   :  { %v251_v55 = vpop.permute.xlu1 %250 }
  0xbf   :  { %v256_v6 = vpop.permute.xlu0 %255 }
  0xc2   :  { %v261_v9 = vpop.permute.xlu1 %260 }
  0xf6   :  { %v1559_v19 = vpop.f32.mrb[0].mxu0 }
  0xf7   :  { %v1623_v21 = vpop.f32.mrb[0].mxu1  ;;  %v1560_v22 = vpop.f32.mrb[1].mxu0 }
  0xf8   :  { %v1561_v23 = vadd.f32 %v1560_v22, %v1559_v19  ;;  %v1624_v24 = vpop.f32.mrb[1].mxu1  ;;  %v1562_v25 = vpop.f32.mrb[2].mxu0 }
  0xf9   :  { %v1625_v26 = vadd.f32 %v1624_v24, %v1623_v21  ;;  %v1626_v27 = vpop.f32.mrb[2].mxu1  ;;  %v1563_v28 = vpop.f32.mrb[3].mxu0 }
  0xfa   :  { %v1042_v29 = vadd.f32 %v1561_v23, %v226_v17  ;;  %v1564_v30 = vadd.f32 %v1563_v28, %v1562_v25  ;;  %v1627_v31 = vpop.f32.mrb[3].mxu1  ;;  %v266_v24 = vpop.permute.xlu0 %265 }
  0xfb   :  { %v1628_v32 = vadd.f32 %v1627_v31, %v1626_v27  ;;  %v271_v27 = vpop.permute.xlu1 %270 }
  0xfc   :  { %v2319_v33 = vadd.f32 %v1625_v26, %v1042_v29  ;;  %v1045_v34 = vadd.f32 %v1564_v30, %v231_v20 }
  0xfe   :  { %v2321_v35 = vadd.f32 %v1628_v32, %v1045_v34  ;;  %v1565_v36 = vpop.f32.mrb[4].mxu0 }
  0xff   :  { %v1629_v38 = vpop.f32.mrb[4].mxu1  ;;  %v1566_v39 = vpop.f32.mrb[5].mxu0 }
 0x100   :  { %v1567_v40 = vadd.f32 %v1566_v39, %v1565_v36  ;;  %v1630_v41 = vpop.f32.mrb[5].mxu1  ;;  %v1568_v42 = vpop.f32.mrb[6].mxu0 }
 0x101   :  { %v1631_v43 = vadd.f32 %v1630_v41, %v1629_v38  ;;  %v1632_v44 = vpop.f32.mrb[6].mxu1  ;;  %v1569_v45 = vpop.f32.mrb[7].mxu0 }
 0x102   :  { %v1050_v46 = vadd.f32 %v1567_v40, %v236_v18  ;;  %v1570_v47 = vadd.f32 %v1569_v45, %v1568_v42  ;;  %v1633_v48 = vpop.f32.mrb[7].mxu1 }
 0x103   :  { %v1634_v49 = vadd.f32 %v1633_v48, %v1632_v44  ;;  %v276_v44 = vpop.permute.xlu0 %275 }
 0x104   :  { %v2323_v50 = vadd.f32 %v1631_v43, %v1050_v46  ;;  %v1053_v51 = vadd.f32 %v1570_v47, %v241_v37  ;;  %v281_v47 = vpop.permute.xlu1 %280 }
 0x106   :  { %v2325_v53 = vadd.f32 %v1634_v49, %v1053_v51  ;;  %v1571_v54 = vpop.f32.mrb[8].mxu0 }
 0x107   :  { %v1635_v56 = vpop.f32.mrb[8].mxu1  ;;  %v1572_v57 = vpop.f32.mrb[9].mxu0 }
 0x108   :  { %v1573_v58 = vadd.f32 %v1572_v57, %v1571_v54  ;;  %v1636_v59 = vpop.f32.mrb[9].mxu1  ;;  %v1574_v60 = vpop.f32.mrb[10].mxu0 }
 0x109   :  { %v1637_v61 = vadd.f32 %v1636_v59, %v1635_v56  ;;  %v1638_v62 = vpop.f32.mrb[10].mxu1  ;;  %v1575_v63 = vpop.f32.mrb[11].mxu0 }
 0x10a   :  { %v1058_v0 = vadd.f32 %v1573_v58, %v246_v52  ;;  %v1576_v1 = vadd.f32 %v1575_v63, %v1574_v60  ;;  %v1639_v2 = vpop.f32.mrb[11].mxu1 }
 0x10b   :  { %v1640_v3 = vadd.f32 %v1639_v2, %v1638_v62 }
 0x10c   :  { %v2327_v4 = vadd.f32 %v1637_v61, %v1058_v0  ;;  %v1061_v5 = vadd.f32 %v1576_v1, %v251_v55  ;;  %v286_v0 = vpop.permute.xlu0 %285 }
 0x10e   :  { %v2329_v7 = vadd.f32 %v1640_v3, %v1061_v5  ;;  %v1577_v8 = vpop.f32.mrb[12].mxu0  ;;  %v291_v3 = vpop.permute.xlu1 %290 }
 0x10f   :  { %v1641_v10 = vpop.f32.mrb[12].mxu1  ;;  %v1578_v11 = vpop.f32.mrb[13].mxu0 }
 0x110   :  { %v1579_v12 = vadd.f32 %v1578_v11, %v1577_v8  ;;  %v1642_v13 = vpop.f32.mrb[13].mxu1  ;;  %v1580_v14 = vpop.f32.mrb[14].mxu0 }
 0x111   :  { %v1643_v15 = vadd.f32 %v1642_v13, %v1641_v10  ;;  %v1644_v16 = vpop.f32.mrb[14].mxu1  ;;  %v1581_v17 = vpop.f32.mrb[15].mxu0 }
 0x112   :  { %v1066_v18 = vadd.f32 %v1579_v12, %v256_v6  ;;  %v1582_v19 = vadd.f32 %v1581_v17, %v1580_v14  ;;  %v1645_v20 = vpop.f32.mrb[15].mxu1 }
 0x113   :  { %v1646_v21 = vadd.f32 %v1645_v20, %v1644_v16  ;;  %v296_v20 = vpop.permute.xlu0 %295 }
 0x114   :  { %v2331_v22 = vadd.f32 %v1643_v15, %v1066_v18  ;;  %v1069_v23 = vadd.f32 %v1582_v19, %v261_v9 }
 0x116   :  { %v2333_v25 = vadd.f32 %v1646_v21, %v1069_v23  ;;  %v1583_v26 = vpop.f32.mrb[16].mxu0 }
 0x117   :  { %v1647_v28 = vpop.f32.mrb[16].mxu1  ;;  %v1584_v29 = vpop.f32.mrb[17].mxu0 }
 0x118   :  { %v1585_v30 = vadd.f32 %v1584_v29, %v1583_v26  ;;  %v1648_v31 = vpop.f32.mrb[17].mxu1  ;;  %v1586_v32 = vpop.f32.mrb[18].mxu0 }
 0x119   :  { %v1649_v34 = vadd.f32 %v1648_v31, %v1647_v28  ;;  %v1650_v36 = vpop.f32.mrb[18].mxu1  ;;  %v1587_v37 = vpop.f32.mrb[19].mxu0 }
 0x11a   :  { %v1074_v38 = vadd.f32 %v1585_v30, %v266_v24  ;;  %v1588_v39 = vadd.f32 %v1587_v37, %v1586_v32  ;;  %v1651_v40 = vpop.f32.mrb[19].mxu1  ;;  %v301_v24 = vpop.permute.xlu1 %300 }
 0x11b   :  { %v1652_v41 = vadd.f32 %v1651_v40, %v1650_v36 }
 0x11c   :  { %v2335_v42 = vadd.f32 %v1649_v34, %v1074_v38  ;;  %v1077_v43 = vadd.f32 %v1588_v39, %v271_v27 }
 0x11e   :  { %v2337_v45 = vadd.f32 %v1652_v41, %v1077_v43  ;;  %v1589_v46 = vpop.f32.mrb[20].mxu0 }
 0x11f   :  { %v1653_v48 = vpop.f32.mrb[20].mxu1  ;;  %v1590_v49 = vpop.f32.mrb[21].mxu0 }
 0x120   :  { %v1591_v51 = vadd.f32 %v1590_v49, %v1589_v46  ;;  %v1654_v52 = vpop.f32.mrb[21].mxu1  ;;  %v1592_v54 = vpop.f32.mrb[22].mxu0 }
 0x121   :  { %v1655_v55 = vadd.f32 %v1654_v52, %v1653_v48  ;;  %v1656_v56 = vpop.f32.mrb[22].mxu1  ;;  %v1593_v57 = vpop.f32.mrb[23].mxu0 }
 0x122   :  { %v1082_v58 = vadd.f32 %v1591_v51, %v276_v44  ;;  %v1594_v59 = vadd.f32 %v1593_v57, %v1592_v54  ;;  %v1657_v60 = vpop.f32.mrb[23].mxu1 }
 0x123   :  { %v1658_v61 = vadd.f32 %v1657_v60, %v1656_v56 }
 0x124   :  { %v2339_v62 = vadd.f32 %v1655_v55, %v1082_v58  ;;  %v1085_v63 = vadd.f32 %v1594_v59, %v281_v47 }
 0x126   :  { %v2341_v1 = vadd.f32 %v1658_v61, %v1085_v63  ;;  %v1595_v2 = vpop.f32.mrb[24].mxu0 }
 0x127   :  { %v1659_v5 = vpop.f32.mrb[24].mxu1  ;;  %v1596_v6 = vpop.f32.mrb[25].mxu0 }
 0x128   :  { %v1597_v8 = vadd.f32 %v1596_v6, %v1595_v2  ;;  %v1660_v9 = vpop.f32.mrb[25].mxu1  ;;  %v1598_v10 = vpop.f32.mrb[26].mxu0 }
 0x129   :  { %v1661_v11 = vadd.f32 %v1660_v9, %v1659_v5  ;;  %v1662_v12 = vpop.f32.mrb[26].mxu1  ;;  %v1599_v13 = vpop.f32.mrb[27].mxu0 }
 0x12a   :  { %v1090_v14 = vadd.f32 %v1597_v8, %v286_v0  ;;  %v1600_v15 = vadd.f32 %v1599_v13, %v1598_v10  ;;  %v1663_v16 = vpop.f32.mrb[27].mxu1 }
 0x12b   :  { %v1664_v17 = vadd.f32 %v1663_v16, %v1662_v12 }
 0x12c   :  { %v2343_v18 = vadd.f32 %v1661_v11, %v1090_v14  ;;  %v1093_v19 = vadd.f32 %v1600_v15, %v291_v3 }
 0x12e   :  { %v2345_v21 = vadd.f32 %v1664_v17, %v1093_v19  ;;  %v1601_v23 = vpop.f32.mrb[28].mxu0 }
 0x12f   :  { %v1665_v26 = vpop.f32.mrb[28].mxu1  ;;  %v1602_v27 = vpop.f32.mrb[29].mxu0 }
 0x130   :  { %v1603_v28 = vadd.f32 %v1602_v27, %v1601_v23  ;;  %v1666_v29 = vpop.f32.mrb[29].mxu1  ;;  %v1604_v30 = vpop.f32.mrb[30].mxu0 }
 0x131   :  { %v1667_v31 = vadd.f32 %v1666_v29, %v1665_v26  ;;  %v1668_v32 = vpop.f32.mrb[30].mxu1  ;;  %v1605_v34 = vpop.f32.mrb[31].mxu0 }
 0x132   :  { %v1098_v36 = vadd.f32 %v1603_v28, %v296_v20  ;;  %v1606_v37 = vadd.f32 %v1605_v34, %v1604_v30  ;;  %v1669_v38 = vpop.f32.mrb[31].mxu1 }
 0x133   :  { %v1670_v39 = vadd.f32 %v1669_v38, %v1668_v32 }
 0x134   :  { %v2347_v40 = vadd.f32 %v1667_v31, %v1098_v36  ;;  %v1101_v41 = vadd.f32 %v1606_v37, %v301_v24 }
 0x136   :  { %v2349_v43 = vadd.f32 %v1670_v39, %v1101_v41  ;;  %v1687_v44 = vpop.f32.mrb[32].mxu0 }
 0x137   :  { %v1751_v46 = vpop.f32.mrb[32].mxu1  ;;  %v1688_v47 = vpop.f32.mrb[33].mxu0 }
 0x138   :  { %v1689_v48 = vadd.f32 %v1688_v47, %v1687_v44  ;;  %v1752_v49 = vpop.f32.mrb[33].mxu1  ;;  %v1690_v51 = vpop.f32.mrb[34].mxu0 }
 0x139   :  { %v1753_v52 = vadd.f32 %v1752_v49, %v1751_v46  ;;  %v1754_v54 = vpop.f32.mrb[34].mxu1  ;;  %v1691_v55 = vpop.f32.mrb[35].mxu0 }
 0x13a   :  { %v1236_v56 = vadd.f32 %v1689_v48, %v2319_v33  ;;  %v1692_v57 = vadd.f32 %v1691_v55, %v1690_v51  ;;  %v1755_v58 = vpop.f32.mrb[35].mxu1 }
 0x13b   :  { %v1756_v59 = vadd.f32 %v1755_v58, %v1754_v54 }
 0x13c   :  { %v1333_v60 = vadd.f32 %v1753_v52, %v1236_v56  ;;  %v1239_v61 = vadd.f32 %v1692_v57, %v2321_v35 }
 0x13e   :  { %1395 = vst [vmem:[%s2418_s3] sm:$0xff] %v1333_v60  ;;  %v1336_v63 = vadd.f32 %v1756_v59, %v1239_v61  ;;  %v1693_v0 = vpop.f32.mrb[36].mxu0 }
 0x13f   :  { %v1757_v2 = vpop.f32.mrb[36].mxu1  ;;  %v1694_v3 = vpop.f32.mrb[37].mxu0 }
 0x140   :  { %1396 = vst [vmem:[%s2418_s3 + $0x8] sm:$0xff] %v1336_v63  ;;  %v1695_v5 = vadd.f32 %v1694_v3, %v1693_v0  ;;  %v1758_v33 = vpop.f32.mrb[37].mxu1  ;;  %v1696_v6 = vpop.f32.mrb[38].mxu0 }
 0x141   :  { %v1759_v8 = vadd.f32 %v1758_v33, %v1757_v2  ;;  %v1760_v9 = vpop.f32.mrb[38].mxu1  ;;  %v1697_v10 = vpop.f32.mrb[39].mxu0 }
 0x142   :  { %v1244_v35 = vadd.f32 %v1695_v5, %v2323_v50  ;;  %v1698_v11 = vadd.f32 %v1697_v10, %v1696_v6  ;;  %v1761_v12 = vpop.f32.mrb[39].mxu1 }
 0x143   :  { %v1762_v13 = vadd.f32 %v1761_v12, %v1760_v9 }
 0x144   :  { %v1341_v14 = vadd.f32 %v1759_v8, %v1244_v35  ;;  %v1247_v15 = vadd.f32 %v1698_v11, %v2325_v53 }
 0x146   :  { %1397 = vst [vmem:[%s2418_s3 + $0x10] sm:$0xff] %v1341_v14  ;;  %v1344_v16 = vadd.f32 %v1762_v13, %v1247_v15  ;;  %v1699_v17 = vpop.f32.mrb[40].mxu0 }
 0x147   :  { %v1763_v19 = vpop.f32.mrb[40].mxu1  ;;  %v1700_v20 = vpop.f32.mrb[41].mxu0 }
 0x148   :  { %1398 = vst [vmem:[%s2418_s3 + $0x18] sm:$0xff] %v1344_v16  ;;  %v1701_v23 = vadd.f32 %v1700_v20, %v1699_v17  ;;  %v1764_v50 = vpop.f32.mrb[41].mxu1  ;;  %v1702_v24 = vpop.f32.mrb[42].mxu0 }
 0x149   :  { %v1765_v26 = vadd.f32 %v1764_v50, %v1763_v19  ;;  %v1766_v27 = vpop.f32.mrb[42].mxu1  ;;  %v1703_v28 = vpop.f32.mrb[43].mxu0 }
 0x14a   :  { %v1252_v53 = vadd.f32 %v1701_v23, %v2327_v4  ;;  %v1704_v29 = vadd.f32 %v1703_v28, %v1702_v24  ;;  %v1767_v30 = vpop.f32.mrb[43].mxu1 }
 0x14b   :  { %v1768_v31 = vadd.f32 %v1767_v30, %v1766_v27 }
 0x14c   :  { %v1349_v32 = vadd.f32 %v1765_v26, %v1252_v53  ;;  %v1255_v34 = vadd.f32 %v1704_v29, %v2329_v7 }
 0x14e   :  { %1399 = vst [vmem:[%s2418_s3 + $0x20] sm:$0xff] %v1349_v32  ;;  %v1352_v36 = vadd.f32 %v1768_v31, %v1255_v34  ;;  %v1705_v37 = vpop.f32.mrb[44].mxu0 }
 0x14f   :  { %v1769_v38 = vpop.f32.mrb[44].mxu1  ;;  %v1706_v39 = vpop.f32.mrb[45].mxu0 }
 0x150   :  { %1400 = vst [vmem:[%s2418_s3 + $0x28] sm:$0xff] %v1352_v36  ;;  %v1707_v41 = vadd.f32 %v1706_v39, %v1705_v37  ;;  %v1770_v4 = vpop.f32.mrb[45].mxu1  ;;  %v1708_v44 = vpop.f32.mrb[46].mxu0 }
 0x151   :  { %v1771_v46 = vadd.f32 %v1770_v4, %v1769_v38  ;;  %v1772_v47 = vpop.f32.mrb[46].mxu1  ;;  %v1709_v48 = vpop.f32.mrb[47].mxu0 }
 0x152   :  { %v1260_v7 = vadd.f32 %v1707_v41, %v2331_v22  ;;  %v1710_v49 = vadd.f32 %v1709_v48, %v1708_v44  ;;  %v1773_v51 = vpop.f32.mrb[47].mxu1 }
 0x153   :  { %v1774_v52 = vadd.f32 %v1773_v51, %v1772_v47 }
 0x154   :  { %v1357_v54 = vadd.f32 %v1771_v46, %v1260_v7  ;;  %v1263_v55 = vadd.f32 %v1710_v49, %v2333_v25 }
 0x156   :  { %1401 = vst [vmem:[%s2418_s3 + $0x30] sm:$0xff] %v1357_v54  ;;  %v1360_v56 = vadd.f32 %v1774_v52, %v1263_v55  ;;  %v1711_v57 = vpop.f32.mrb[48].mxu0 }
 0x157   :  { %v1775_v58 = vpop.f32.mrb[48].mxu1  ;;  %v1712_v59 = vpop.f32.mrb[49].mxu0 }
 0x158   :  { %1402 = vst [vmem:[%s2418_s3 + $0x38] sm:$0xff] %v1360_v56  ;;  %v1713_v60 = vadd.f32 %v1712_v59, %v1711_v57  ;;  %v1776_v22 = vpop.f32.mrb[49].mxu1  ;;  %v1714_v61 = vpop.f32.mrb[50].mxu0 }
 0x159   :  { %v1777_v63 = vadd.f32 %v1776_v22, %v1775_v58  ;;  %v1778_v0 = vpop.f32.mrb[50].mxu1  ;;  %v1715_v2 = vpop.f32.mrb[51].mxu0 }
 0x15a   :  { %v1268_v25 = vadd.f32 %v1713_v60, %v2335_v42  ;;  %v1716_v3 = vadd.f32 %v1715_v2, %v1714_v61  ;;  %v1779_v5 = vpop.f32.mrb[51].mxu1 }
 0x15b   :  { %v1780_v33 = vadd.f32 %v1779_v5, %v1778_v0 }
 0x15c   :  { %v1365_v6 = vadd.f32 %v1777_v63, %v1268_v25  ;;  %v1271_v8 = vadd.f32 %v1716_v3, %v2337_v45 }
 0x15e   :  { %1403 = vst [vmem:[%s2418_s3 + $0x40] sm:$0xff] %v1365_v6  ;;  %v1368_v9 = vadd.f32 %v1780_v33, %v1271_v8  ;;  %v1717_v10 = vpop.f32.mrb[52].mxu0 }
 0x15f   :  { %v1781_v35 = vpop.f32.mrb[52].mxu1  ;;  %v1718_v11 = vpop.f32.mrb[53].mxu0 }
 0x160   :  { %1404 = vst [vmem:[%s2418_s3 + $0x48] sm:$0xff] %v1368_v9  ;;  %v1719_v12 = vadd.f32 %v1718_v11, %v1717_v10  ;;  %v1782_v42 = vpop.f32.mrb[53].mxu1  ;;  %v1720_v13 = vpop.f32.mrb[54].mxu0 }
 0x161   :  { %v1783_v14 = vadd.f32 %v1782_v42, %v1781_v35  ;;  %v1784_v15 = vpop.f32.mrb[54].mxu1  ;;  %v1721_v16 = vpop.f32.mrb[55].mxu0 }
 0x162   :  { %v1276_v45 = vadd.f32 %v1719_v12, %v2339_v62  ;;  %v1722_v17 = vadd.f32 %v1721_v16, %v1720_v13  ;;  %v1785_v19 = vpop.f32.mrb[55].mxu1 }
 0x163   :  { %v1786_v20 = vadd.f32 %v1785_v19, %v1784_v15 }
 0x164   :  { %v1373_v23 = vadd.f32 %v1783_v14, %v1276_v45  ;;  %v1279_v50 = vadd.f32 %v1722_v17, %v2341_v1 }
 0x166   :  { %1405 = vst [vmem:[%s2418_s3 + $0x50] sm:$0xff] %v1373_v23  ;;  %v1376_v24 = vadd.f32 %v1786_v20, %v1279_v50  ;;  %v1723_v26 = vpop.f32.mrb[56].mxu0 }
 0x167   :  { %v1787_v27 = vpop.f32.mrb[56].mxu1  ;;  %v1724_v28 = vpop.f32.mrb[57].mxu0 }
 0x168   :  { %1406 = vst [vmem:[%s2418_s3 + $0x58] sm:$0xff] %v1376_v24  ;;  %v1725_v53 = vadd.f32 %v1724_v28, %v1723_v26  ;;  %v1788_v62 = vpop.f32.mrb[57].mxu1  ;;  %v1726_v29 = vpop.f32.mrb[58].mxu0 }
 0x169   :  { %v1789_v30 = vadd.f32 %v1788_v62, %v1787_v27  ;;  %v1790_v31 = vpop.f32.mrb[58].mxu1  ;;  %v1727_v32 = vpop.f32.mrb[59].mxu0 }
 0x16a   :  { %v1284_v1 = vadd.f32 %v1725_v53, %v2343_v18  ;;  %v1728_v34 = vadd.f32 %v1727_v32, %v1726_v29  ;;  %v1791_v36 = vpop.f32.mrb[59].mxu1 }
 0x16b   :  { %v1792_v37 = vadd.f32 %v1791_v36, %v1790_v31 }
 0x16c   :  { %v1381_v38 = vadd.f32 %v1789_v30, %v1284_v1  ;;  %v1287_v39 = vadd.f32 %v1728_v34, %v2345_v21 }
 0x16e   :  { %1407 = vst [vmem:[%s2418_s3 + $0x60] sm:$0xff] %v1381_v38  ;;  %v1384_v41 = vadd.f32 %v1792_v37, %v1287_v39  ;;  %v1729_v4 = vpop.f32.mrb[60].mxu0 }
 0x16f   :  { %v1793_v44 = vpop.f32.mrb[60].mxu1  ;;  %v1730_v46 = vpop.f32.mrb[61].mxu0 }
 0x170   :  { %1408 = vst [vmem:[%s2418_s3 + $0x68] sm:$0xff] %v1384_v41  ;;  %v1731_v47 = vadd.f32 %v1730_v46, %v1729_v4  ;;  %v1794_v18 = vpop.f32.mrb[61].mxu1  ;;  %v1732_v48 = vpop.f32.mrb[62].mxu0 }
 0x171   :  { %v1795_v7 = vadd.f32 %v1794_v18, %v1793_v44  ;;  %v1796_v49 = vpop.f32.mrb[62].mxu1  ;;  %v1733_v51 = vpop.f32.mrb[63].mxu0 }
 0x172   :  { %v1292_v21 = vadd.f32 %v1731_v47, %v2347_v40  ;;  %v1734_v52 = vadd.f32 %v1733_v51, %v1732_v48  ;;  %v1797_v54 = vpop.f32.mrb[63].mxu1 }
 0x173   :  { %v1798_v55 = vadd.f32 %v1797_v54, %v1796_v49 }
 0x174   :  { %v1389_v56 = vadd.f32 %v1795_v7, %v1292_v21  ;;  %v1295_v57 = vadd.f32 %v1734_v52, %v2349_v43 }
 0x176   :  { %1409 = vst [vmem:[%s2418_s3 + $0x70] sm:$0xff] %v1389_v56  ;;  %v1392_v58 = vadd.f32 %v1798_v55, %v1295_v57 }
 0x178   :  { %1410 = vst [vmem:[%s2418_s3 + $0x78] sm:$0xff] %v1392_v58 }

// kernel: forward.13
= control target key start
LH: loop header
LB: loop body
LE: loop exit
PB: predicated region body
PF: predicated region fallthrough
CT: control target
= control target key end

     0   :  { %s3347_s9 = smov 0   ;;  %s4277_s0 = inlined_call_operand.vmem [shape: f32[3,8,1536], index: 0, kind: input, shape index: {}]   ;;  %s4278_s1 = inlined_call_operand.vmem [shape: bf16[384,1536], index: 1, kind: input, shape index: {}]   ;;  %s4279_s2 = inlined_call_operand.vmem [shape: f32[3,8,384], index: 2, kind: output, shape index: {}]  }
   0x1 LB: > { %s2514_s10 = sadd.s32 4294967295, %s3328_s9   ;;  %p2518_p0 = scmp.ge.s32.totalorder %s3328_s9, 1  ;;  %s3328_s9 = sphi %s3347_s9, %s12_s9  }
   0x2   : > { %p112_p1 = scmp.lt.s32.totalorder %s3328_s9, 4 }
   0x4   : > { %p113_p2 = pnand %p2518_p0, %p112_p1 }
   0x5   : > { %p134_p3 = scmp.lt.s32.totalorder (!%p113_p2), %s2514_s10, 2  ;;  %p2521_p4 = scmp.ne.s32.totalorder (!%p113_p2), %s2514_s10, 0 }
   0x6   : > { %116 = sbr.rel (%p113_p2) target bundleno = 555 (0x22b), region = 28 }
   0xd   : > { %s135_s11 = scalar_select %p134_p3, %s2514_s10, 2 }
   0xe   : > { %148 = sbr.rel (%p2521_p4) target bundleno = 21 (0x15), region = 32  ;;  %v3330_v0 = vmov (!%p2521_p4), 0.0  }
   0xf   : > { %s2848_s12 = smul.u32 96, %s135_s11  ;;  %149 = vst [vmem:[#allocation2] sm:$0xff] (!%p2521_p4), %v3330_v0  ;;  %150 = vst [vmem:[#allocation2 + $0x8] sm:$0xff] (!%p2521_p4), %v3330_v0 }
  0x10   : > { %s2849_s13 = smul.u32 24, %s135_s11  ;;  %151 = vst [vmem:[#allocation2 + $0x10] sm:$0xff] (!%p2521_p4), %v3330_v0  ;;  %152 = vst [vmem:[#allocation3] sm:$0xff] (!%p2521_p4), %v3330_v0 }
  0x11   : > { %s3358_s16 = scalar_lea.vmem %s4277_s0, %s2848_s12  ;;  %153 = vst [vmem:[#allocation3 + $0x8] sm:$0xff] (!%p2521_p4), %v3330_v0  ;;  %154 = vst [vmem:[#allocation3 + $0x10] sm:$0xff] (!%p2521_p4), %v3330_v0 }
  0x12   : > { %s3363_s19 = scalar_lea.vmem %s4279_s2, %s2849_s13 }
  0x15 PF: > { %v2860_v1 = vld [vmem:[%s4278_s1 + $0x4] ss:$48 sps:$4 sm:$0xff]   ;;  %v2862_v2 = vld [vmem:[%s4278_s1 + $0xc] ss:$48 sps:$4 sm:$0xff]   ;;  %v2864_v3 = vld [vmem:[%s4278_s1] ss:$48 sps:$4 sm:$0xff]  }
  0x16   : > { %1901 = vmatprep.subr.bf16.mxu0 %v2860_v1  ;;  %v2865_v4 = vld [vmem:[%s4278_s1 + $0x8] ss:$48 sps:$4 sm:$0xff]   ;;  %1983 = vmatprep.subr.bf16.mxu1 %v2862_v2  ;;  %v2866_v5 = vld [vmem:[%s4278_s1 + $0x64] ss:$48 sps:$4 sm:$0xff]   ;;  %v2868_v6 = vld [vmem:[%s4278_s1 + $0x6c] ss:$48 sps:$4 sm:$0xff]  }
  0x17   : > { %1902 = vmatpush1.bf16.msra.mxu0 %v2864_v3  ;;  %1984 = vmatpush1.bf16.msra.mxu1 %v2865_v4  ;;  %v2870_v7 = vld [vmem:[%s4278_s1 + $0x60] ss:$48 sps:$4 sm:$0xff]   ;;  %v2871_v8 = vld [vmem:[%s4278_s1 + $0x68] ss:$48 sps:$4 sm:$0xff]   ;;  %v2872_v9 = vld [vmem:[%s4278_s1 + $0xc4] ss:$48 sps:$4 sm:$0xff]  }
  0x18   : > { %1903 = vmatprep.subr.bf16.mxu0 %v2866_v5  ;;  %1985 = vmatprep.subr.bf16.mxu1 %v2868_v6  ;;  %v2874_v10 = vld [vmem:[%s4278_s1 + $0xcc] ss:$48 sps:$4 sm:$0xff]   ;;  %v2876_v11 = vld [vmem:[%s4278_s1 + $0xc0] ss:$48 sps:$4 sm:$0xff]   ;;  %v2877_v12 = vld [vmem:[%s4278_s1 + $0xc8] ss:$48 sps:$4 sm:$0xff]  }
  0x19   : > { %v2878_v13 = vld [vmem:[%s4278_s1 + $0x124] ss:$48 sps:$4 sm:$0xff]   ;;  %v2880_v14 = vld [vmem:[%s4278_s1 + $0x12c] ss:$48 sps:$4 sm:$0xff]   ;;  %v2882_v15 = vld [vmem:[%s4278_s1 + $0x120] ss:$48 sps:$4 sm:$0xff]  }
  0x1a   : > { %v2883_v16 = vld [vmem:[%s4278_s1 + $0x128] ss:$48 sps:$4 sm:$0xff]   ;;  %v2884_v17 = vld [vmem:[%s4278_s1 + $0x184] ss:$48 sps:$4 sm:$0xff]   ;;  %v2886_v18 = vld [vmem:[%s4278_s1 + $0x18c] ss:$48 sps:$4 sm:$0xff]  }
  0x1b   : > { %1904 = vmatpush1.bf16.msra.mxu0 %v2870_v7  ;;  %1986 = vmatpush1.bf16.msra.mxu1 %v2871_v8  ;;  %v2888_v19 = vld [vmem:[%s4278_s1 + $0x180] ss:$48 sps:$4 sm:$0xff]   ;;  %v2889_v20 = vld [vmem:[%s4278_s1 + $0x188] ss:$48 sps:$4 sm:$0xff]   ;;  %v2890_v21 = vld [vmem:[%s4278_s1 + $0x1e4] ss:$48 sps:$4 sm:$0xff]  }
  0x1c   : > { %1905 = vmatprep.subr.bf16.mxu0 %v2872_v9  ;;  %1987 = vmatprep.subr.bf16.mxu1 %v2874_v10  ;;  %v2892_v22 = vld [vmem:[%s4278_s1 + $0x1ec] ss:$48 sps:$4 sm:$0xff]   ;;  %v2894_v23 = vld [vmem:[%s4278_s1 + $0x1e0] ss:$48 sps:$4 sm:$0xff]   ;;  %v2895_v24 = vld [vmem:[%s4278_s1 + $0x1e8] ss:$48 sps:$4 sm:$0xff]  }
  0x1d   : > { %v2896_v25 = vld [vmem:[%s4278_s1 + $0x244] ss:$48 sps:$4 sm:$0xff]   ;;  %v2898_v26 = vld [vmem:[%s4278_s1 + $0x24c] ss:$48 sps:$4 sm:$0xff]   ;;  %v2900_v27 = vld [vmem:[%s4278_s1 + $0x240] ss:$48 sps:$4 sm:$0xff]  }
  0x1e   : > { %v2901_v28 = vld [vmem:[%s4278_s1 + $0x248] ss:$48 sps:$4 sm:$0xff]   ;;  %v2902_v29 = vld [vmem:[%s4278_s1 + $0x2a4] ss:$48 sps:$4 sm:$0xff]   ;;  %v2904_v30 = vld [vmem:[%s4278_s1 + $0x2ac] ss:$48 sps:$4 sm:$0xff]  }
  0x1f   : > { %1906 = vmatpush1.bf16.msra.mxu0 %v2876_v11  ;;  %1988 = vmatpush1.bf16.msra.mxu1 %v2877_v12  ;;  %v2906_v31 = vld [vmem:[%s4278_s1 + $0x2a0] ss:$48 sps:$4 sm:$0xff]   ;;  %v2907_v32 = vld [vmem:[%s4278_s1 + $0x2a8] ss:$48 sps:$4 sm:$0xff]   ;;  %v2908_v33 = vld [vmem:[%s4278_s1 + $0x304] ss:$48 sps:$4 sm:$0xff]  }
  0x20   : > { %1907 = vmatprep.subr.bf16.mxu0 %v2878_v13  ;;  %1989 = vmatprep.subr.bf16.mxu1 %v2880_v14  ;;  %v2910_v34 = vld [vmem:[%s4278_s1 + $0x30c] ss:$48 sps:$4 sm:$0xff]   ;;  %v2912_v35 = vld [vmem:[%s4278_s1 + $0x300] ss:$48 sps:$4 sm:$0xff]   ;;  %v2913_v36 = vld [vmem:[%s4278_s1 + $0x308] ss:$48 sps:$4 sm:$0xff]  }
  0x21   : > { %v2914_v37 = vld [vmem:[%s4278_s1 + $0x364] ss:$48 sps:$4 sm:$0xff]   ;;  %v2916_v38 = vld [vmem:[%s4278_s1 + $0x36c] ss:$48 sps:$4 sm:$0xff]   ;;  %v2918_v39 = vld [vmem:[%s4278_s1 + $0x360] ss:$48 sps:$4 sm:$0xff]  }
  0x22   : > { %v2919_v40 = vld [vmem:[%s4278_s1 + $0x368] ss:$48 sps:$4 sm:$0xff]   ;;  %v2920_v41 = vld [vmem:[%s4278_s1 + $0x3c4] ss:$48 sps:$4 sm:$0xff]   ;;  %v2922_v42 = vld [vmem:[%s4278_s1 + $0x3cc] ss:$48 sps:$4 sm:$0xff]  }
  0x23   : > { %1908 = vmatpush1.bf16.msra.mxu0 %v2882_v15  ;;  %1990 = vmatpush1.bf16.msra.mxu1 %v2883_v16  ;;  %v2924_v43 = vld [vmem:[%s4278_s1 + $0x3c0] ss:$48 sps:$4 sm:$0xff]   ;;  %v2925_v44 = vld [vmem:[%s4278_s1 + $0x3c8] ss:$48 sps:$4 sm:$0xff]   ;;  %v2926_v45 = vld [vmem:[%s4278_s1 + $0x424] ss:$48 sps:$4 sm:$0xff]  }
  0x24   : > { %1909 = vmatprep.subr.bf16.mxu0 %v2884_v17  ;;  %1991 = vmatprep.subr.bf16.mxu1 %v2886_v18  ;;  %v2928_v46 = vld [vmem:[%s4278_s1 + $0x42c] ss:$48 sps:$4 sm:$0xff]   ;;  %v2930_v48 = vld [vmem:[%s4278_s1 + $0x420] ss:$48 sps:$4 sm:$0xff]   ;;  %v2931_v50 = vld [vmem:[%s4278_s1 + $0x428] ss:$48 sps:$4 sm:$0xff]  }
  0x25   : > { %v156_v47 = vld [vmem:[#allocation2 + $0x8] sm:$0xff]  ;;  %v2932_v51 = vld [vmem:[%s4278_s1 + $0x484] ss:$48 sps:$4 sm:$0xff]   ;;  %v2936_v53 = vld [vmem:[%s4278_s1 + $0x480] ss:$48 sps:$4 sm:$0xff]   ;;  %v3331_v15 = vmov 0  }
  0x26   : > { %v3506_v49 = vpack.c.bf16 %v156_v47, %v156_v47  ;;  %v2934_v52 = vld [vmem:[%s4278_s1 + $0x48c] ss:$48 sps:$4 sm:$0xff]   ;;  %v2937_v54 = vld [vmem:[%s4278_s1 + $0x488] ss:$48 sps:$4 sm:$0xff]   ;;  %v2938_v55 = vld [vmem:[%s4278_s1 + $0x4e4] ss:$48 sps:$4 sm:$0xff]  }
  0x27   : > { %1910 = vmatpush1.bf16.msra.mxu0 %v2888_v19  ;;  %1992 = vmatpush1.bf16.msra.mxu1 %v2889_v20  ;;  %v2940_v56 = vld [vmem:[%s4278_s1 + $0x4ec] ss:$48 sps:$4 sm:$0xff]   ;;  %v2942_v57 = vld [vmem:[%s4278_s1 + $0x4e0] ss:$48 sps:$4 sm:$0xff]   ;;  %v2943_v58 = vld [vmem:[%s4278_s1 + $0x4e8] ss:$48 sps:$4 sm:$0xff]  }
  0x28   : > { %1911 = vmatprep.subr.bf16.mxu0 %v2890_v21  ;;  %1993 = vmatprep.subr.bf16.mxu1 %v2892_v22  ;;  %v2944_v59 = vld [vmem:[%s4278_s1 + $0x544] ss:$48 sps:$4 sm:$0xff]   ;;  %v2946_v60 = vld [vmem:[%s4278_s1 + $0x54c] ss:$48 sps:$4 sm:$0xff]   ;;  %v2948_v61 = vld [vmem:[%s4278_s1 + $0x540] ss:$48 sps:$4 sm:$0xff]  }
  0x29   : > { %1933 = vmatprep.mubr.bf16.mxu0 %v3506_v49  ;;  %2015 = vmatprep.mubr.bf16.mxu1 %v3506_v49  ;;  %v2949_v62 = vld [vmem:[%s4278_s1 + $0x548] ss:$48 sps:$4 sm:$0xff]   ;;  %v2950_v63 = vld [vmem:[%s4278_s1 + $0x5a4] ss:$48 sps:$4 sm:$0xff]   ;;  %v2952_v0 = vld [vmem:[%s4278_s1 + $0x5ac] ss:$48 sps:$4 sm:$0xff]  }
  0x2a   : > { %v2954_v1 = vld [vmem:[%s4278_s1 + $0x5a0] ss:$48 sps:$4 sm:$0xff]   ;;  %v2955_v2 = vld [vmem:[%s4278_s1 + $0x5a8] ss:$48 sps:$4 sm:$0xff]   ;;  %v2958_v4 = vld [vmem:[%s4278_s1 + $0x604] ss:$48 sps:$4 sm:$0xff]  }
  0x2b   : > { %1912 = vmatpush1.bf16.msra.mxu0 %v2894_v23  ;;  %1994 = vmatpush1.bf16.msra.mxu1 %v2895_v24  ;;  %v155_v3 = vld [vmem:[#allocation2] sm:$0xff]  ;;  %v2961_v5 = vld [vmem:[%s4278_s1 + $0x60c] ss:$48 sps:$4 sm:$0xff]   ;;  %v2959_v8 = vld [vmem:[%s4278_s1 + $0x608] ss:$48 sps:$4 sm:$0xff]  }
  0x2c   : > { %1913 = vmatprep.subr.bf16.mxu0 %v2896_v25  ;;  %1995 = vmatprep.subr.bf16.mxu1 %v2898_v26  ;;  %v3567_v6 = vpack.c.bf16 %v155_v3, %v155_v3  ;;  %v2956_v7 = vld [vmem:[%s4278_s1 + $0x600] ss:$48 sps:$4 sm:$0xff]   ;;  %v2964_v9 = vld [vmem:[%s4278_s1 + $0x664] ss:$48 sps:$4 sm:$0xff]   ;;  %v2967_v10 = vld [vmem:[%s4278_s1 + $0x66c] ss:$48 sps:$4 sm:$0xff]  }
  0x2d   : > { %v2962_v11 = vld [vmem:[%s4278_s1 + $0x660] ss:$48 sps:$4 sm:$0xff]   ;;  %v2965_v12 = vld [vmem:[%s4278_s1 + $0x668] ss:$48 sps:$4 sm:$0xff]   ;;  %v2970_v13 = vld [vmem:[%s4278_s1 + $0x6c4] ss:$48 sps:$4 sm:$0xff]  }
  0x2e   : > { %v2973_v14 = vld [vmem:[%s4278_s1 + $0x6cc] ss:$48 sps:$4 sm:$0xff]   ;;  %v2968_v16 = vld [vmem:[%s4278_s1 + $0x6c0] ss:$48 sps:$4 sm:$0xff]   ;;  %v2971_v17 = vld [vmem:[%s4278_s1 + $0x6c8] ss:$48 sps:$4 sm:$0xff]  }
  0x2f   : > { %1914 = vmatpush1.bf16.msra.mxu0 %v2900_v27  ;;  %1996 = vmatpush1.bf16.msra.mxu1 %v2901_v28  ;;  %v2976_v18 = vld [vmem:[%s4278_s1 + $0x724] ss:$48 sps:$4 sm:$0xff]   ;;  %v2979_v19 = vld [vmem:[%s4278_s1 + $0x72c] ss:$48 sps:$4 sm:$0xff]   ;;  %v2974_v20 = vld [vmem:[%s4278_s1 + $0x720] ss:$48 sps:$4 sm:$0xff]  }
  0x30   : > { %1915 = vmatprep.subr.bf16.mxu0 %v2902_v29  ;;  %1997 = vmatprep.subr.bf16.mxu1 %v2904_v30  ;;  %v2977_v21 = vld [vmem:[%s4278_s1 + $0x728] ss:$48 sps:$4 sm:$0xff]   ;;  %v2982_v22 = vld [vmem:[%s4278_s1 + $0x784] ss:$48 sps:$4 sm:$0xff]   ;;  %v2985_v23 = vld [vmem:[%s4278_s1 + $0x78c] ss:$48 sps:$4 sm:$0xff]  }
  0x31   : > { %v2980_v24 = vld [vmem:[%s4278_s1 + $0x780] ss:$48 sps:$4 sm:$0xff]   ;;  %v2983_v25 = vld [vmem:[%s4278_s1 + $0x788] ss:$48 sps:$4 sm:$0xff]   ;;  %v2988_v26 = vld [vmem:[%s4278_s1 + $0x7e4] ss:$48 sps:$4 sm:$0xff]  }
  0x32   : > { %v2991_v27 = vld [vmem:[%s4278_s1 + $0x7ec] ss:$48 sps:$4 sm:$0xff]   ;;  %v2986_v28 = vld [vmem:[%s4278_s1 + $0x7e0] ss:$48 sps:$4 sm:$0xff]   ;;  %v2989_v29 = vld [vmem:[%s4278_s1 + $0x7e8] ss:$48 sps:$4 sm:$0xff]  }
  0x33   : > { %1916 = vmatpush1.bf16.msra.mxu0 %v2906_v31  ;;  %1998 = vmatpush1.bf16.msra.mxu1 %v2907_v32  ;;  %v2994_v30 = vld [vmem:[%s4278_s1 + $0x844] ss:$48 sps:$4 sm:$0xff]   ;;  %v2997_v31 = vld [vmem:[%s4278_s1 + $0x84c] ss:$48 sps:$4 sm:$0xff]   ;;  %v2992_v32 = vld [vmem:[%s4278_s1 + $0x840] ss:$48 sps:$4 sm:$0xff]  }
  0x34   : > { %1917 = vmatprep.subr.bf16.mxu0 %v2908_v33  ;;  %1999 = vmatprep.subr.bf16.mxu1 %v2910_v34  ;;  %v2995_v33 = vld [vmem:[%s4278_s1 + $0x848] ss:$48 sps:$4 sm:$0xff]   ;;  %v3000_v34 = vld [vmem:[%s4278_s1 + $0x8a4] ss:$48 sps:$4 sm:$0xff]   ;;  %v3040_v3 = vld [vmem:[%s4278_s1 + $0x250] ss:$48 sps:$4 sm:$0xff]  }
  0x35   : > { %v3013_v47 = vld [vmem:[%s4278_s1 + $0x78] ss:$48 sps:$4 sm:$0xff]  }
  0x37   : > { %1918 = vmatpush1.bf16.msra.mxu0 %v2912_v35  ;;  %2000 = vmatpush1.bf16.msra.mxu1 %v2913_v36  ;;  %v3003_v35 = vld [vmem:[%s4278_s1 + $0x8ac] ss:$48 sps:$4 sm:$0xff]   ;;  %v2998_v36 = vld [vmem:[%s4278_s1 + $0x8a0] ss:$48 sps:$4 sm:$0xff]  }
  0x38   : > { %1919 = vmatprep.subr.bf16.mxu0 %v2914_v37  ;;  %2001 = vmatprep.subr.bf16.mxu1 %v2916_v38  ;;  %v3001_v37 = vld [vmem:[%s4278_s1 + $0x8a8] ss:$48 sps:$4 sm:$0xff]   ;;  %v157_v38 = vld [vmem:[#allocation2 + $0x10] sm:$0xff] }
  0x3b   : > { %1920 = vmatpush1.bf16.msra.mxu0 %v2918_v39  ;;  %2002 = vmatpush1.bf16.msra.mxu1 %v2919_v40  ;;  %v3006_v39 = vld [vmem:[%s4278_s1 + $0x14] ss:$48 sps:$4 sm:$0xff]   ;;  %v3009_v40 = vld [vmem:[%s4278_s1 + $0x1c] ss:$48 sps:$4 sm:$0xff]  }
  0x3c   : > { %1921 = vmatprep.subr.bf16.mxu0 %v2920_v41  ;;  %2003 = vmatprep.subr.bf16.mxu1 %v2922_v42  ;;  %v3669_v41 = vpack.c.bf16 %v157_v38, %v157_v38  ;;  %v3004_v42 = vld [vmem:[%s4278_s1 + $0x10] ss:$48 sps:$4 sm:$0xff]   ;;  %v3091_v38 = vld [vmem:[%s4278_s1 + $0x558] ss:$48 sps:$4 sm:$0xff]  }
  0x3f   : > { %1922 = vmatpush1.bf16.msra.mxu0 %v2924_v43  ;;  %2004 = vmatpush1.bf16.msra.mxu1 %v2925_v44  ;;  %v3007_v43 = vld [vmem:[%s4278_s1 + $0x18] ss:$48 sps:$4 sm:$0xff]   ;;  %v3012_v44 = vld [vmem:[%s4278_s1 + $0x74] ss:$48 sps:$4 sm:$0xff]  }
  0x40   : > { %1923 = vmatprep.subr.bf16.mxu0 %v2926_v45  ;;  %2005 = vmatprep.subr.bf16.mxu1 %v2928_v46  ;;  %v3015_v45 = vld [vmem:[%s4278_s1 + $0x7c] ss:$48 sps:$4 sm:$0xff]   ;;  %v3010_v46 = vld [vmem:[%s4278_s1 + $0x70] ss:$48 sps:$4 sm:$0xff]  }
  0x43   : > { %1924 = vmatpush1.bf16.msra.mxu0 %v2930_v48  ;;  %2006 = vmatpush1.bf16.msra.mxu1 %v2931_v50  ;;  %v3018_v48 = vld [vmem:[%s4278_s1 + $0xd4] ss:$48 sps:$4 sm:$0xff]   ;;  %v3021_v50 = vld [vmem:[%s4278_s1 + $0xdc] ss:$48 sps:$4 sm:$0xff]  }
  0x44   : > { %1925 = vmatprep.subr.bf16.mxu0 %v2932_v51  ;;  %2007 = vmatprep.subr.bf16.mxu1 %v2934_v52  ;;  %v3016_v51 = vld [vmem:[%s4278_s1 + $0xd0] ss:$48 sps:$4 sm:$0xff]   ;;  %v3019_v52 = vld [vmem:[%s4278_s1 + $0xd8] ss:$48 sps:$4 sm:$0xff]  }
  0x47   : > { %1926 = vmatpush1.bf16.msra.mxu0 %v2936_v53  ;;  %2008 = vmatpush1.bf16.msra.mxu1 %v2937_v54  ;;  %v3024_v53 = vld [vmem:[%s4278_s1 + $0x134] ss:$48 sps:$4 sm:$0xff]   ;;  %v3027_v54 = vld [vmem:[%s4278_s1 + $0x13c] ss:$48 sps:$4 sm:$0xff]  }
  0x48   : > { %1927 = vmatprep.subr.bf16.mxu0 %v2938_v55  ;;  %2009 = vmatprep.subr.bf16.mxu1 %v2940_v56  ;;  %v3022_v55 = vld [vmem:[%s4278_s1 + $0x130] ss:$48 sps:$4 sm:$0xff]   ;;  %v3025_v56 = vld [vmem:[%s4278_s1 + $0x138] ss:$48 sps:$4 sm:$0xff]  }
  0x4b   : > { %1928 = vmatpush1.bf16.msra.mxu0 %v2942_v57  ;;  %2010 = vmatpush1.bf16.msra.mxu1 %v2943_v58  ;;  %v3030_v57 = vld [vmem:[%s4278_s1 + $0x194] ss:$48 sps:$4 sm:$0xff]   ;;  %v3033_v58 = vld [vmem:[%s4278_s1 + $0x19c] ss:$48 sps:$4 sm:$0xff]  }
  0x4c   : > { %1929 = vmatprep.subr.bf16.mxu0 %v2944_v59  ;;  %2011 = vmatprep.subr.bf16.mxu1 %v2946_v60  ;;  %v3028_v59 = vld [vmem:[%s4278_s1 + $0x190] ss:$48 sps:$4 sm:$0xff]   ;;  %v3031_v60 = vld [vmem:[%s4278_s1 + $0x198] ss:$48 sps:$4 sm:$0xff]  }
  0x4f   : > { %1930 = vmatpush1.bf16.msra.mxu0 %v2948_v61  ;;  %2012 = vmatpush1.bf16.msra.mxu1 %v2949_v62  ;;  %v3036_v61 = vld [vmem:[%s4278_s1 + $0x1f4] ss:$48 sps:$4 sm:$0xff]   ;;  %v3039_v62 = vld [vmem:[%s4278_s1 + $0x1fc] ss:$48 sps:$4 sm:$0xff]  }
  0x50   : > { %1931 = vmatprep.subr.bf16.mxu0 %v2950_v63  ;;  %2013 = vmatprep.subr.bf16.mxu1 %v2952_v0  ;;  %v3034_v63 = vld [vmem:[%s4278_s1 + $0x1f0] ss:$48 sps:$4 sm:$0xff]   ;;  %v3037_v0 = vld [vmem:[%s4278_s1 + $0x1f8] ss:$48 sps:$4 sm:$0xff]  }
  0x53   : > { %1932 = vmatpush1.bf16.msra.mxu0 %v2954_v1  ;;  %2014 = vmatpush1.bf16.msra.mxu1 %v2955_v2  ;;  %v3042_v1 = vld [vmem:[%s4278_s1 + $0x254] ss:$48 sps:$4 sm:$0xff]   ;;  %v3045_v2 = vld [vmem:[%s4278_s1 + $0x25c] ss:$48 sps:$4 sm:$0xff]  }
  0x54   : > { %1942 = vmatprep.subr.bf16.mxu0 %v2958_v4  ;;  %2024 = vmatprep.subr.bf16.mxu1 %v2961_v5  ;;  %v3043_v4 = vld [vmem:[%s4278_s1 + $0x258] ss:$48 sps:$4 sm:$0xff]   ;;  %v3048_v5 = vld [vmem:[%s4278_s1 + $0x2b4] ss:$48 sps:$4 sm:$0xff]  }
  0x56   : > { %1934 = vmatmul.mubr.bf16.vlgmr.msra.gmra.mrb[0].mxu0 %v3567_v6  ;;  %2016 = vmatmul.mubr.bf16.vlgmr.msra.gmra.mrb[0].mxu1 %v3567_v6 }
  0x57   : > { %1943 = vmatpush1.bf16.msra.mxu0 %v2956_v7  ;;  %2025 = vmatpush1.bf16.msra.mxu1 %v2959_v8  ;;  %v3051_v7 = vld [vmem:[%s4278_s1 + $0x2bc] ss:$48 sps:$4 sm:$0xff]   ;;  %v3046_v8 = vld [vmem:[%s4278_s1 + $0x2b0] ss:$48 sps:$4 sm:$0xff]  }
  0x58   : > { %1944 = vmatprep.subr.bf16.mxu0 %v2964_v9  ;;  %2026 = vmatprep.subr.bf16.mxu1 %v2967_v10  ;;  %v3049_v9 = vld [vmem:[%s4278_s1 + $0x2b8] ss:$48 sps:$4 sm:$0xff]   ;;  %v3054_v10 = vld [vmem:[%s4278_s1 + $0x314] ss:$48 sps:$4 sm:$0xff]  }
  0x59   : > { %1974 = vmatprep.mubr.bf16.mxu0 %v3331_v15  ;;  %2056 = vmatprep.mubr.bf16.mxu1 %v3331_v15 }
  0x5b   : > { %1945 = vmatpush1.bf16.msra.mxu0 %v2962_v11  ;;  %2027 = vmatpush1.bf16.msra.mxu1 %v2965_v12  ;;  %v3057_v11 = vld [vmem:[%s4278_s1 + $0x31c] ss:$48 sps:$4 sm:$0xff]   ;;  %v3052_v12 = vld [vmem:[%s4278_s1 + $0x310] ss:$48 sps:$4 sm:$0xff]  }
  0x5c   : > { %1946 = vmatprep.subr.bf16.mxu0 %v2970_v13  ;;  %2028 = vmatprep.subr.bf16.mxu1 %v2973_v14  ;;  %v3055_v13 = vld [vmem:[%s4278_s1 + $0x318] ss:$48 sps:$4 sm:$0xff]   ;;  %v3060_v14 = vld [vmem:[%s4278_s1 + $0x374] ss:$48 sps:$4 sm:$0xff]  }
  0x5f   : > { %1947 = vmatpush1.bf16.msra.mxu0 %v2968_v16  ;;  %2029 = vmatpush1.bf16.msra.mxu1 %v2971_v17  ;;  %v3063_v16 = vld [vmem:[%s4278_s1 + $0x37c] ss:$48 sps:$4 sm:$0xff]   ;;  %v3058_v17 = vld [vmem:[%s4278_s1 + $0x370] ss:$48 sps:$4 sm:$0xff]  }
  0x60   : > { %1948 = vmatprep.subr.bf16.mxu0 %v2976_v18  ;;  %2030 = vmatprep.subr.bf16.mxu1 %v2979_v19  ;;  %v3061_v18 = vld [vmem:[%s4278_s1 + $0x378] ss:$48 sps:$4 sm:$0xff]   ;;  %v3066_v19 = vld [vmem:[%s4278_s1 + $0x3d4] ss:$48 sps:$4 sm:$0xff]  }
  0x63   : > { %1949 = vmatpush1.bf16.msra.mxu0 %v2974_v20  ;;  %2031 = vmatpush1.bf16.msra.mxu1 %v2977_v21  ;;  %v3069_v20 = vld [vmem:[%s4278_s1 + $0x3dc] ss:$48 sps:$4 sm:$0xff]   ;;  %v3064_v21 = vld [vmem:[%s4278_s1 + $0x3d0] ss:$48 sps:$4 sm:$0xff]  }
  0x64   : > { %1950 = vmatprep.subr.bf16.mxu0 %v2982_v22  ;;  %2032 = vmatprep.subr.bf16.mxu1 %v2985_v23  ;;  %v3067_v22 = vld [vmem:[%s4278_s1 + $0x3d8] ss:$48 sps:$4 sm:$0xff]   ;;  %v3072_v23 = vld [vmem:[%s4278_s1 + $0x434] ss:$48 sps:$4 sm:$0xff]  }
  0x67   : > { %1951 = vmatpush1.bf16.msra.mxu0 %v2980_v24  ;;  %2033 = vmatpush1.bf16.msra.mxu1 %v2983_v25  ;;  %v3075_v24 = vld [vmem:[%s4278_s1 + $0x43c] ss:$48 sps:$4 sm:$0xff]   ;;  %v3070_v25 = vld [vmem:[%s4278_s1 + $0x430] ss:$48 sps:$4 sm:$0xff]  }
  0x68   : > { %1952 = vmatprep.subr.bf16.mxu0 %v2988_v26  ;;  %2034 = vmatprep.subr.bf16.mxu1 %v2991_v27  ;;  %v3073_v26 = vld [vmem:[%s4278_s1 + $0x438] ss:$48 sps:$4 sm:$0xff]   ;;  %v3078_v27 = vld [vmem:[%s4278_s1 + $0x494] ss:$48 sps:$4 sm:$0xff]  }
  0x6b   : > { %1953 = vmatpush1.bf16.msra.mxu0 %v2986_v28  ;;  %2035 = vmatpush1.bf16.msra.mxu1 %v2989_v29  ;;  %v3081_v28 = vld [vmem:[%s4278_s1 + $0x49c] ss:$48 sps:$4 sm:$0xff]   ;;  %v3076_v29 = vld [vmem:[%s4278_s1 + $0x490] ss:$48 sps:$4 sm:$0xff]  }
  0x6c   : > { %1954 = vmatprep.subr.bf16.mxu0 %v2994_v30  ;;  %2036 = vmatprep.subr.bf16.mxu1 %v2997_v31  ;;  %v3079_v30 = vld [vmem:[%s4278_s1 + $0x498] ss:$48 sps:$4 sm:$0xff]   ;;  %v3084_v31 = vld [vmem:[%s4278_s1 + $0x4f4] ss:$48 sps:$4 sm:$0xff]  }
  0x6f   : > { %1955 = vmatpush1.bf16.msra.mxu0 %v2992_v32  ;;  %2037 = vmatpush1.bf16.msra.mxu1 %v2995_v33  ;;  %v3087_v32 = vld [vmem:[%s4278_s1 + $0x4fc] ss:$48 sps:$4 sm:$0xff]   ;;  %v3082_v33 = vld [vmem:[%s4278_s1 + $0x4f0] ss:$48 sps:$4 sm:$0xff]  }
  0x70   : > { %1956 = vmatprep.subr.bf16.mxu0 %v3000_v34  ;;  %2038 = vmatprep.subr.bf16.mxu1 %v3003_v35  ;;  %v3085_v34 = vld [vmem:[%s4278_s1 + $0x4f8] ss:$48 sps:$4 sm:$0xff]   ;;  %v3090_v35 = vld [vmem:[%s4278_s1 + $0x554] ss:$48 sps:$4 sm:$0xff]  }
  0x73   : > { %1957 = vmatpush1.bf16.msra.mxu0 %v2998_v36  ;;  %2039 = vmatpush1.bf16.msra.mxu1 %v3001_v37  ;;  %v3093_v36 = vld [vmem:[%s4278_s1 + $0x55c] ss:$48 sps:$4 sm:$0xff]   ;;  %v3088_v37 = vld [vmem:[%s4278_s1 + $0x550] ss:$48 sps:$4 sm:$0xff]  }
  0x74   : > { %2065 = vmatprep.subr.bf16.mxu0 %v3006_v39  ;;  %2147 = vmatprep.subr.bf16.mxu1 %v3009_v40  ;;  %v3096_v39 = vld [vmem:[%s4278_s1 + $0x5b4] ss:$48 sps:$4 sm:$0xff]   ;;  %v3099_v40 = vld [vmem:[%s4278_s1 + $0x5bc] ss:$48 sps:$4 sm:$0xff]  }
  0x76   : > { %1975 = vmatmul.mubr.bf16.vlgmr.msra.gmra.mrb[0].mxu0 %v3669_v41  ;;  %2057 = vmatmul.mubr.bf16.vlgmr.msra.gmra.mrb[0].mxu1 %v3669_v41 }
  0x77   : > { %2066 = vmatpush1.bf16.msra.mxu0 %v3004_v42  ;;  %2148 = vmatpush1.bf16.msra.mxu1 %v3007_v43  ;;  %v3094_v42 = vld [vmem:[%s4278_s1 + $0x5b0] ss:$48 sps:$4 sm:$0xff]   ;;  %v3097_v43 = vld [vmem:[%s4278_s1 + $0x5b8] ss:$48 sps:$4 sm:$0xff]  }
  0x78   : > { %2067 = vmatprep.subr.bf16.mxu0 %v3012_v44  ;;  %2149 = vmatprep.subr.bf16.mxu1 %v3015_v45  ;;  %v3102_v44 = vld [vmem:[%s4278_s1 + $0x614] ss:$48 sps:$4 sm:$0xff]   ;;  %v3105_v45 = vld [vmem:[%s4278_s1 + $0x61c] ss:$48 sps:$4 sm:$0xff]  }
  0x79   : > { %2097 = vmatprep.mubr.bf16.mxu0 %v3506_v49  ;;  %2179 = vmatprep.mubr.bf16.mxu1 %v3506_v49 }
  0x7b   : > { %2068 = vmatpush1.bf16.msra.mxu0 %v3010_v46  ;;  %2150 = vmatpush1.bf16.msra.mxu1 %v3013_v47  ;;  %v3100_v46 = vld [vmem:[%s4278_s1 + $0x610] ss:$48 sps:$4 sm:$0xff]   ;;  %v3103_v47 = vld [vmem:[%s4278_s1 + $0x618] ss:$48 sps:$4 sm:$0xff]  }
  0x7c   : > { %2069 = vmatprep.subr.bf16.mxu0 %v3018_v48  ;;  %2151 = vmatprep.subr.bf16.mxu1 %v3021_v50  ;;  %v3108_v48 = vld [vmem:[%s4278_s1 + $0x674] ss:$48 sps:$4 sm:$0xff]   ;;  %v3111_v50 = vld [vmem:[%s4278_s1 + $0x67c] ss:$48 sps:$4 sm:$0xff]  }
  0x7f   : > { %2070 = vmatpush1.bf16.msra.mxu0 %v3016_v51  ;;  %2152 = vmatpush1.bf16.msra.mxu1 %v3019_v52  ;;  %v3106_v51 = vld [vmem:[%s4278_s1 + $0x670] ss:$48 sps:$4 sm:$0xff]   ;;  %v3109_v52 = vld [vmem:[%s4278_s1 + $0x678] ss:$48 sps:$4 sm:$0xff]  }
  0x80   : > { %2071 = vmatprep.subr.bf16.mxu0 %v3024_v53  ;;  %2153 = vmatprep.subr.bf16.mxu1 %v3027_v54  ;;  %v3114_v53 = vld [vmem:[%s4278_s1 + $0x6d4] ss:$48 sps:$4 sm:$0xff]   ;;  %v3117_v54 = vld [vmem:[%s4278_s1 + $0x6dc] ss:$48 sps:$4 sm:$0xff]  }
  0x83   : > { %2072 = vmatpush1.bf16.msra.mxu0 %v3022_v55  ;;  %2154 = vmatpush1.bf16.msra.mxu1 %v3025_v56  ;;  %v3112_v55 = vld [vmem:[%s4278_s1 + $0x6d0] ss:$48 sps:$4 sm:$0xff]   ;;  %v3115_v56 = vld [vmem:[%s4278_s1 + $0x6d8] ss:$48 sps:$4 sm:$0xff]  }
  0x84   : > { %2073 = vmatprep.subr.bf16.mxu0 %v3030_v57  ;;  %2155 = vmatprep.subr.bf16.mxu1 %v3033_v58  ;;  %v3120_v57 = vld [vmem:[%s4278_s1 + $0x734] ss:$48 sps:$4 sm:$0xff]   ;;  %v3123_v58 = vld [vmem:[%s4278_s1 + $0x73c] ss:$48 sps:$4 sm:$0xff]  }
  0x87   : > { %2074 = vmatpush1.bf16.msra.mxu0 %v3028_v59  ;;  %2156 = vmatpush1.bf16.msra.mxu1 %v3031_v60  ;;  %v3118_v59 = vld [vmem:[%s4278_s1 + $0x730] ss:$48 sps:$4 sm:$0xff]   ;;  %v3121_v60 = vld [vmem:[%s4278_s1 + $0x738] ss:$48 sps:$4 sm:$0xff]  }
  0x88   : > { %2075 = vmatprep.subr.bf16.mxu0 %v3036_v61  ;;  %2157 = vmatprep.subr.bf16.mxu1 %v3039_v62  ;;  %v3126_v61 = vld [vmem:[%s4278_s1 + $0x794] ss:$48 sps:$4 sm:$0xff]   ;;  %v3129_v62 = vld [vmem:[%s4278_s1 + $0x79c] ss:$48 sps:$4 sm:$0xff]  }
  0x8b   : > { %2076 = vmatpush1.bf16.msra.mxu0 %v3034_v63  ;;  %2158 = vmatpush1.bf16.msra.mxu1 %v3037_v0  ;;  %v3124_v63 = vld [vmem:[%s4278_s1 + $0x790] ss:$48 sps:$4 sm:$0xff]   ;;  %v3127_v0 = vld [vmem:[%s4278_s1 + $0x798] ss:$48 sps:$4 sm:$0xff]  }
  0x8c   : > { %2077 = vmatprep.subr.bf16.mxu0 %v3042_v1  ;;  %2159 = vmatprep.subr.bf16.mxu1 %v3045_v2  ;;  %v3132_v1 = vld [vmem:[%s4278_s1 + $0x7f4] ss:$48 sps:$4 sm:$0xff]   ;;  %v3135_v2 = vld [vmem:[%s4278_s1 + $0x7fc] ss:$48 sps:$4 sm:$0xff]  }
  0x8f   : > { %2078 = vmatpush1.bf16.msra.mxu0 %v3040_v3  ;;  %2160 = vmatpush1.bf16.msra.mxu1 %v3043_v4  ;;  %v3130_v3 = vld [vmem:[%s4278_s1 + $0x7f0] ss:$48 sps:$4 sm:$0xff]   ;;  %v3133_v4 = vld [vmem:[%s4278_s1 + $0x7f8] ss:$48 sps:$4 sm:$0xff]  }
  0x90   : > { %2079 = vmatprep.subr.bf16.mxu0 %v3048_v5  ;;  %2161 = vmatprep.subr.bf16.mxu1 %v3051_v7  ;;  %v3138_v5 = vld [vmem:[%s4278_s1 + $0x854] ss:$48 sps:$4 sm:$0xff]   ;;  %v3141_v7 = vld [vmem:[%s4278_s1 + $0x85c] ss:$48 sps:$4 sm:$0xff]  }
  0x93   : > { %2080 = vmatpush1.bf16.msra.mxu0 %v3046_v8  ;;  %2162 = vmatpush1.bf16.msra.mxu1 %v3049_v9  ;;  %v3136_v8 = vld [vmem:[%s4278_s1 + $0x850] ss:$48 sps:$4 sm:$0xff]   ;;  %v3139_v9 = vld [vmem:[%s4278_s1 + $0x858] ss:$48 sps:$4 sm:$0xff]  }
  0x94   : > { %2081 = vmatprep.subr.bf16.mxu0 %v3054_v10  ;;  %2163 = vmatprep.subr.bf16.mxu1 %v3057_v11  ;;  %v3144_v10 = vld [vmem:[%s4278_s1 + $0x8b4] ss:$48 sps:$4 sm:$0xff]   ;;  %v3147_v11 = vld [vmem:[%s4278_s1 + $0x8bc] ss:$48 sps:$4 sm:$0xff]  }
  0x97   : > { %2082 = vmatpush1.bf16.msra.mxu0 %v3052_v12  ;;  %2164 = vmatpush1.bf16.msra.mxu1 %v3055_v13  ;;  %v3142_v12 = vld [vmem:[%s4278_s1 + $0x8b0] ss:$48 sps:$4 sm:$0xff]   ;;  %v3145_v13 = vld [vmem:[%s4278_s1 + $0x8b8] ss:$48 sps:$4 sm:$0xff]  }
  0x98   : > { %2083 = vmatprep.subr.bf16.mxu0 %v3060_v14  ;;  %2165 = vmatprep.subr.bf16.mxu1 %v3063_v16  ;;  %v3150_v14 = vld [vmem:[%s4278_s1 + $0x24] ss:$48 sps:$4 sm:$0xff]   ;;  %v3153_v16 = vld [vmem:[%s4278_s1 + $0x2c] ss:$48 sps:$4 sm:$0xff]  }
  0x9b   : > { %2084 = vmatpush1.bf16.msra.mxu0 %v3058_v17  ;;  %2166 = vmatpush1.bf16.msra.mxu1 %v3061_v18  ;;  %v3148_v17 = vld [vmem:[%s4278_s1 + $0x20] ss:$48 sps:$4 sm:$0xff]   ;;  %v3151_v18 = vld [vmem:[%s4278_s1 + $0x28] ss:$48 sps:$4 sm:$0xff]  }
  0x9c   : > { %2085 = vmatprep.subr.bf16.mxu0 %v3066_v19  ;;  %2167 = vmatprep.subr.bf16.mxu1 %v3069_v20  ;;  %v3156_v19 = vld [vmem:[%s4278_s1 + $0x84] ss:$48 sps:$4 sm:$0xff]   ;;  %v3159_v20 = vld [vmem:[%s4278_s1 + $0x8c] ss:$48 sps:$4 sm:$0xff]  }
  0x9f   : > { %2086 = vmatpush1.bf16.msra.mxu0 %v3064_v21  ;;  %2168 = vmatpush1.bf16.msra.mxu1 %v3067_v22  ;;  %v3154_v21 = vld [vmem:[%s4278_s1 + $0x80] ss:$48 sps:$4 sm:$0xff]   ;;  %v3157_v22 = vld [vmem:[%s4278_s1 + $0x88] ss:$48 sps:$4 sm:$0xff]  }
  0xa0   : > { %2087 = vmatprep.subr.bf16.mxu0 %v3072_v23  ;;  %2169 = vmatprep.subr.bf16.mxu1 %v3075_v24  ;;  %v3162_v23 = vld [vmem:[%s4278_s1 + $0xe4] ss:$48 sps:$4 sm:$0xff]   ;;  %v3165_v24 = vld [vmem:[%s4278_s1 + $0xec] ss:$48 sps:$4 sm:$0xff]  }
  0xa3   : > { %2088 = vmatpush1.bf16.msra.mxu0 %v3070_v25  ;;  %2170 = vmatpush1.bf16.msra.mxu1 %v3073_v26  ;;  %v3160_v25 = vld [vmem:[%s4278_s1 + $0xe0] ss:$48 sps:$4 sm:$0xff]   ;;  %v3163_v26 = vld [vmem:[%s4278_s1 + $0xe8] ss:$48 sps:$4 sm:$0xff]  }
  0xa4   : > { %2089 = vmatprep.subr.bf16.mxu0 %v3078_v27  ;;  %2171 = vmatprep.subr.bf16.mxu1 %v3081_v28  ;;  %v3168_v27 = vld [vmem:[%s4278_s1 + $0x144] ss:$48 sps:$4 sm:$0xff]   ;;  %v3166_v28 = vld [vmem:[%s4278_s1 + $0x140] ss:$48 sps:$4 sm:$0xff]  }
  0xa7   : > { %2090 = vmatpush1.bf16.msra.mxu0 %v3076_v29  ;;  %2172 = vmatpush1.bf16.msra.mxu1 %v3079_v30  ;;  %v3169_v29 = vld [vmem:[%s4278_s1 + $0x148] ss:$48 sps:$4 sm:$0xff]   ;;  %v3174_v30 = vld [vmem:[%s4278_s1 + $0x1a4] ss:$48 sps:$4 sm:$0xff]  }
  0xa8   : > { %2091 = vmatprep.subr.bf16.mxu0 %v3084_v31  ;;  %2173 = vmatprep.subr.bf16.mxu1 %v3087_v32  ;;  %v3177_v31 = vld [vmem:[%s4278_s1 + $0x1ac] ss:$48 sps:$4 sm:$0xff]   ;;  %v3172_v32 = vld [vmem:[%s4278_s1 + $0x1a0] ss:$48 sps:$4 sm:$0xff]  }
  0xab   : > { %2092 = vmatpush1.bf16.msra.mxu0 %v3082_v33  ;;  %2174 = vmatpush1.bf16.msra.mxu1 %v3085_v34  ;;  %v3175_v33 = vld [vmem:[%s4278_s1 + $0x1a8] ss:$48 sps:$4 sm:$0xff]   ;;  %v3180_v34 = vld [vmem:[%s4278_s1 + $0x204] ss:$48 sps:$4 sm:$0xff]  }
  0xac   : > { %2093 = vmatprep.subr.bf16.mxu0 %v3090_v35  ;;  %2175 = vmatprep.subr.bf16.mxu1 %v3093_v36  ;;  %v3183_v35 = vld [vmem:[%s4278_s1 + $0x20c] ss:$48 sps:$4 sm:$0xff]   ;;  %v3178_v36 = vld [vmem:[%s4278_s1 + $0x200] ss:$48 sps:$4 sm:$0xff]  }
  0xaf   : > { %2094 = vmatpush1.bf16.msra.mxu0 %v3088_v37  ;;  %2176 = vmatpush1.bf16.msra.mxu1 %v3091_v38  ;;  %v3181_v37 = vld [vmem:[%s4278_s1 + $0x208] ss:$48 sps:$4 sm:$0xff]   ;;  %v3186_v38 = vld [vmem:[%s4278_s1 + $0x264] ss:$48 sps:$4 sm:$0xff]  }
  0xb0   : > { %2095 = vmatprep.subr.bf16.mxu0 %v3096_v39  ;;  %2177 = vmatprep.subr.bf16.mxu1 %v3099_v40  ;;  %v3189_v39 = vld [vmem:[%s4278_s1 + $0x26c] ss:$48 sps:$4 sm:$0xff]   ;;  %v3184_v40 = vld [vmem:[%s4278_s1 + $0x260] ss:$48 sps:$4 sm:$0xff]  }
  0xb3   : > { %2096 = vmatpush1.bf16.msra.mxu0 %v3094_v42  ;;  %2178 = vmatpush1.bf16.msra.mxu1 %v3097_v43  ;;  %v3187_v42 = vld [vmem:[%s4278_s1 + $0x268] ss:$48 sps:$4 sm:$0xff]   ;;  %v3192_v43 = vld [vmem:[%s4278_s1 + $0x2c4] ss:$48 sps:$4 sm:$0xff]  }
  0xb4   : > { %2106 = vmatprep.subr.bf16.mxu0 %v3102_v44  ;;  %2188 = vmatprep.subr.bf16.mxu1 %v3105_v45  ;;  %v3195_v44 = vld [vmem:[%s4278_s1 + $0x2cc] ss:$48 sps:$4 sm:$0xff]   ;;  %v3190_v45 = vld [vmem:[%s4278_s1 + $0x2c0] ss:$48 sps:$4 sm:$0xff]  }
  0xb6   : > { %2098 = vmatmul.mubr.bf16.vlgmr.msra.gmra.mrb[4].mxu0 %v3567_v6  ;;  %2180 = vmatmul.mubr.bf16.vlgmr.msra.gmra.mrb[4].mxu1 %v3567_v6 }
  0xb7   : > { %2107 = vmatpush1.bf16.msra.mxu0 %v3100_v46  ;;  %2189 = vmatpush1.bf16.msra.mxu1 %v3103_v47  ;;  %v3193_v46 = vld [vmem:[%s4278_s1 + $0x2c8] ss:$48 sps:$4 sm:$0xff]   ;;  %v3198_v47 = vld [vmem:[%s4278_s1 + $0x324] ss:$48 sps:$4 sm:$0xff]  }
  0xb8   : > { %2108 = vmatprep.subr.bf16.mxu0 %v3108_v48  ;;  %2190 = vmatprep.subr.bf16.mxu1 %v3111_v50  ;;  %v3201_v48 = vld [vmem:[%s4278_s1 + $0x32c] ss:$48 sps:$4 sm:$0xff]   ;;  %v3196_v50 = vld [vmem:[%s4278_s1 + $0x320] ss:$48 sps:$4 sm:$0xff]  }
  0xb9   : > { %2138 = vmatprep.mubr.bf16.mxu0 %v3331_v15  ;;  %2220 = vmatprep.mubr.bf16.mxu1 %v3331_v15 }
  0xbb   : > { %2109 = vmatpush1.bf16.msra.mxu0 %v3106_v51  ;;  %2191 = vmatpush1.bf16.msra.mxu1 %v3109_v52  ;;  %v3199_v51 = vld [vmem:[%s4278_s1 + $0x328] ss:$48 sps:$4 sm:$0xff]   ;;  %v3204_v52 = vld [vmem:[%s4278_s1 + $0x384] ss:$48 sps:$4 sm:$0xff]  }
  0xbc   : > { %2110 = vmatprep.subr.bf16.mxu0 %v3114_v53  ;;  %2192 = vmatprep.subr.bf16.mxu1 %v3117_v54  ;;  %v3207_v53 = vld [vmem:[%s4278_s1 + $0x38c] ss:$48 sps:$4 sm:$0xff]   ;;  %v3202_v54 = vld [vmem:[%s4278_s1 + $0x380] ss:$48 sps:$4 sm:$0xff]  }
  0xbf   : > { %2111 = vmatpush1.bf16.msra.mxu0 %v3112_v55  ;;  %2193 = vmatpush1.bf16.msra.mxu1 %v3115_v56  ;;  %v3205_v55 = vld [vmem:[%s4278_s1 + $0x388] ss:$48 sps:$4 sm:$0xff]   ;;  %v3210_v56 = vld [vmem:[%s4278_s1 + $0x3e4] ss:$48 sps:$4 sm:$0xff]  }
  0xc0   : > { %2112 = vmatprep.subr.bf16.mxu0 %v3120_v57  ;;  %2194 = vmatprep.subr.bf16.mxu1 %v3123_v58  ;;  %v3213_v57 = vld [vmem:[%s4278_s1 + $0x3ec] ss:$48 sps:$4 sm:$0xff]   ;;  %v3208_v58 = vld [vmem:[%s4278_s1 + $0x3e0] ss:$48 sps:$4 sm:$0xff]  }
  0xc3   : > { %2113 = vmatpush1.bf16.msra.mxu0 %v3118_v59  ;;  %2195 = vmatpush1.bf16.msra.mxu1 %v3121_v60  ;;  %v3211_v59 = vld [vmem:[%s4278_s1 + $0x3e8] ss:$48 sps:$4 sm:$0xff]   ;;  %v3216_v60 = vld [vmem:[%s4278_s1 + $0x444] ss:$48 sps:$4 sm:$0xff]  }
  0xc4   : > { %2114 = vmatprep.subr.bf16.mxu0 %v3126_v61  ;;  %2196 = vmatprep.subr.bf16.mxu1 %v3129_v62  ;;  %v3219_v61 = vld [vmem:[%s4278_s1 + $0x44c] ss:$48 sps:$4 sm:$0xff]   ;;  %v3214_v62 = vld [vmem:[%s4278_s1 + $0x440] ss:$48 sps:$4 sm:$0xff]  }
  0xc7   : > { %2115 = vmatpush1.bf16.msra.mxu0 %v3124_v63  ;;  %2197 = vmatpush1.bf16.msra.mxu1 %v3127_v0  ;;  %v3217_v63 = vld [vmem:[%s4278_s1 + $0x448] ss:$48 sps:$4 sm:$0xff]   ;;  %v3222_v0 = vld [vmem:[%s4278_s1 + $0x4a4] ss:$48 sps:$4 sm:$0xff]  }
  0xc8   : > { %2116 = vmatprep.subr.bf16.mxu0 %v3132_v1  ;;  %2198 = vmatprep.subr.bf16.mxu1 %v3135_v2  ;;  %v3225_v1 = vld [vmem:[%s4278_s1 + $0x4ac] ss:$48 sps:$4 sm:$0xff]   ;;  %v3220_v2 = vld [vmem:[%s4278_s1 + $0x4a0] ss:$48 sps:$4 sm:$0xff]  }
  0xcb   : > { %2117 = vmatpush1.bf16.msra.mxu0 %v3130_v3  ;;  %2199 = vmatpush1.bf16.msra.mxu1 %v3133_v4  ;;  %v3223_v3 = vld [vmem:[%s4278_s1 + $0x4a8] ss:$48 sps:$4 sm:$0xff]   ;;  %v3228_v4 = vld [vmem:[%s4278_s1 + $0x504] ss:$48 sps:$4 sm:$0xff]  }
  0xcc   : > { %2118 = vmatprep.subr.bf16.mxu0 %v3138_v5  ;;  %2200 = vmatprep.subr.bf16.mxu1 %v3141_v7  ;;  %v3231_v5 = vld [vmem:[%s4278_s1 + $0x50c] ss:$48 sps:$4 sm:$0xff]   ;;  %v3226_v7 = vld [vmem:[%s4278_s1 + $0x500] ss:$48 sps:$4 sm:$0xff]  }
  0xcf   : > { %2119 = vmatpush1.bf16.msra.mxu0 %v3136_v8  ;;  %2201 = vmatpush1.bf16.msra.mxu1 %v3139_v9  ;;  %v3229_v8 = vld [vmem:[%s4278_s1 + $0x508] ss:$48 sps:$4 sm:$0xff]   ;;  %v3234_v9 = vld [vmem:[%s4278_s1 + $0x564] ss:$48 sps:$4 sm:$0xff]  }
  0xd0   : > { %2120 = vmatprep.subr.bf16.mxu0 %v3144_v10  ;;  %2202 = vmatprep.subr.bf16.mxu1 %v3147_v11  ;;  %v3237_v10 = vld [vmem:[%s4278_s1 + $0x56c] ss:$48 sps:$4 sm:$0xff]   ;;  %v3232_v11 = vld [vmem:[%s4278_s1 + $0x560] ss:$48 sps:$4 sm:$0xff]  }
  0xd3   : > { %2121 = vmatpush1.bf16.msra.mxu0 %v3142_v12  ;;  %2203 = vmatpush1.bf16.msra.mxu1 %v3145_v13  ;;  %v3235_v12 = vld [vmem:[%s4278_s1 + $0x568] ss:$48 sps:$4 sm:$0xff]   ;;  %v3240_v13 = vld [vmem:[%s4278_s1 + $0x5c4] ss:$48 sps:$4 sm:$0xff]  }
  0xd4   : > { %2229 = vmatprep.subr.bf16.mxu0 %v3150_v14  ;;  %2311 = vmatprep.subr.bf16.mxu1 %v3153_v16  ;;  %v3243_v14 = vld [vmem:[%s4278_s1 + $0x5cc] ss:$48 sps:$4 sm:$0xff]   ;;  %v3238_v16 = vld [vmem:[%s4278_s1 + $0x5c0] ss:$48 sps:$4 sm:$0xff]  }
  0xd6   : > { %2139 = vmatmul.mubr.bf16.vlgmr.msra.gmra.mrb[4].mxu0 %v3669_v41  ;;  %2221 = vmatmul.mubr.bf16.vlgmr.msra.gmra.mrb[4].mxu1 %v3669_v41 }
  0xd7   : > { %2230 = vmatpush1.bf16.msra.mxu0 %v3148_v17  ;;  %2312 = vmatpush1.bf16.msra.mxu1 %v3151_v18  ;;  %v3241_v17 = vld [vmem:[%s4278_s1 + $0x5c8] ss:$48 sps:$4 sm:$0xff]   ;;  %v3246_v18 = vld [vmem:[%s4278_s1 + $0x624] ss:$48 sps:$4 sm:$0xff]  }
  0xd8   : > { %2231 = vmatprep.subr.bf16.mxu0 %v3156_v19  ;;  %2313 = vmatprep.subr.bf16.mxu1 %v3159_v20  ;;  %v3249_v19 = vld [vmem:[%s4278_s1 + $0x62c] ss:$48 sps:$4 sm:$0xff]   ;;  %v3244_v20 = vld [vmem:[%s4278_s1 + $0x620] ss:$48 sps:$4 sm:$0xff]  }
  0xd9   : > { %2261 = vmatprep.mubr.bf16.mxu0 %v3506_v49  ;;  %2343 = vmatprep.mubr.bf16.mxu1 %v3506_v49  ;;  %v3171_v49 = vld [vmem:[%s4278_s1 + $0x14c] ss:$48 sps:$4 sm:$0xff]  }
  0xdb   : > { %2232 = vmatpush1.bf16.msra.mxu0 %v3154_v21  ;;  %2314 = vmatpush1.bf16.msra.mxu1 %v3157_v22  ;;  %v3247_v21 = vld [vmem:[%s4278_s1 + $0x628] ss:$48 sps:$4 sm:$0xff]   ;;  %v3252_v22 = vld [vmem:[%s4278_s1 + $0x684] ss:$48 sps:$4 sm:$0xff]  }
  0xdc   : > { %2233 = vmatprep.subr.bf16.mxu0 %v3162_v23  ;;  %2315 = vmatprep.subr.bf16.mxu1 %v3165_v24  ;;  %v3255_v23 = vld [vmem:[%s4278_s1 + $0x68c] ss:$48 sps:$4 sm:$0xff]   ;;  %v3250_v24 = vld [vmem:[%s4278_s1 + $0x680] ss:$48 sps:$4 sm:$0xff]  }
  0xdf   : > { %2234 = vmatpush1.bf16.msra.mxu0 %v3160_v25  ;;  %2316 = vmatpush1.bf16.msra.mxu1 %v3163_v26  ;;  %v3253_v25 = vld [vmem:[%s4278_s1 + $0x688] ss:$48 sps:$4 sm:$0xff]   ;;  %v3258_v26 = vld [vmem:[%s4278_s1 + $0x6e4] ss:$48 sps:$4 sm:$0xff]  }
  0xe0   : > { %2235 = vmatprep.subr.bf16.mxu0 %v3168_v27  ;;  %2317 = vmatprep.subr.bf16.mxu1 %v3171_v49  ;;  %v3256_v27 = vld [vmem:[%s4278_s1 + $0x6e0] ss:$48 sps:$4 sm:$0xff]   ;;  %v3259_v49 = vld [vmem:[%s4278_s1 + $0x6e8] ss:$48 sps:$4 sm:$0xff]  }
  0xe3   : > { %2236 = vmatpush1.bf16.msra.mxu0 %v3166_v28  ;;  %2318 = vmatpush1.bf16.msra.mxu1 %v3169_v29  ;;  %v3264_v28 = vld [vmem:[%s4278_s1 + $0x744] ss:$48 sps:$4 sm:$0xff]   ;;  %v3262_v29 = vld [vmem:[%s4278_s1 + $0x740] ss:$48 sps:$4 sm:$0xff]  }
  0xe4   : > { %2237 = vmatprep.subr.bf16.mxu0 %v3174_v30  ;;  %2319 = vmatprep.subr.bf16.mxu1 %v3177_v31  ;;  %v3265_v30 = vld [vmem:[%s4278_s1 + $0x748] ss:$48 sps:$4 sm:$0xff]   ;;  %v3270_v31 = vld [vmem:[%s4278_s1 + $0x7a4] ss:$48 sps:$4 sm:$0xff]  }
  0xe7   : > { %2238 = vmatpush1.bf16.msra.mxu0 %v3172_v32  ;;  %2320 = vmatpush1.bf16.msra.mxu1 %v3175_v33  ;;  %v3273_v32 = vld [vmem:[%s4278_s1 + $0x7ac] ss:$48 sps:$4 sm:$0xff]   ;;  %v3268_v33 = vld [vmem:[%s4278_s1 + $0x7a0] ss:$48 sps:$4 sm:$0xff]  }
  0xe8   : > { %2239 = vmatprep.subr.bf16.mxu0 %v3180_v34  ;;  %2321 = vmatprep.subr.bf16.mxu1 %v3183_v35  ;;  %v3271_v34 = vld [vmem:[%s4278_s1 + $0x7a8] ss:$48 sps:$4 sm:$0xff]   ;;  %v3276_v35 = vld [vmem:[%s4278_s1 + $0x804] ss:$48 sps:$4 sm:$0xff]  }
  0xeb   : > { %2240 = vmatpush1.bf16.msra.mxu0 %v3178_v36  ;;  %2322 = vmatpush1.bf16.msra.mxu1 %v3181_v37  ;;  %v3279_v36 = vld [vmem:[%s4278_s1 + $0x80c] ss:$48 sps:$4 sm:$0xff]   ;;  %v3274_v37 = vld [vmem:[%s4278_s1 + $0x800] ss:$48 sps:$4 sm:$0xff]  }
  0xec   : > { %2241 = vmatprep.subr.bf16.mxu0 %v3186_v38  ;;  %2323 = vmatprep.subr.bf16.mxu1 %v3189_v39  ;;  %v3277_v38 = vld [vmem:[%s4278_s1 + $0x808] ss:$48 sps:$4 sm:$0xff]   ;;  %v3282_v39 = vld [vmem:[%s4278_s1 + $0x864] ss:$48 sps:$4 sm:$0xff]  }
  0xef   : > { %2242 = vmatpush1.bf16.msra.mxu0 %v3184_v40  ;;  %2324 = vmatpush1.bf16.msra.mxu1 %v3187_v42  ;;  %v3285_v40 = vld [vmem:[%s4278_s1 + $0x86c] ss:$48 sps:$4 sm:$0xff]   ;;  %v3280_v42 = vld [vmem:[%s4278_s1 + $0x860] ss:$48 sps:$4 sm:$0xff]  }
  0xf0   : > { %2243 = vmatprep.subr.bf16.mxu0 %v3192_v43  ;;  %2325 = vmatprep.subr.bf16.mxu1 %v3195_v44  ;;  %v3283_v43 = vld [vmem:[%s4278_s1 + $0x868] ss:$48 sps:$4 sm:$0xff]   ;;  %v3288_v44 = vld [vmem:[%s4278_s1 + $0x8c4] ss:$48 sps:$4 sm:$0xff]  }
  0xf3   : > { %2244 = vmatpush1.bf16.msra.mxu0 %v3190_v45  ;;  %2326 = vmatpush1.bf16.msra.mxu1 %v3193_v46  ;;  %v3291_v45 = vld [vmem:[%s4278_s1 + $0x8cc] ss:$48 sps:$4 sm:$0xff]   ;;  %v3286_v46 = vld [vmem:[%s4278_s1 + $0x8c0] ss:$48 sps:$4 sm:$0xff]  }
  0xf4   : > { %2245 = vmatprep.subr.bf16.mxu0 %v3198_v47  ;;  %2327 = vmatprep.subr.bf16.mxu1 %v3201_v48  ;;  %v3289_v47 = vld [vmem:[%s4278_s1 + $0x8c8] ss:$48 sps:$4 sm:$0xff]  }
  0xf7   : > { %2246 = vmatpush1.bf16.msra.mxu0 %v3196_v50  ;;  %2328 = vmatpush1.bf16.msra.mxu1 %v3199_v51 }
  0xf8   : > { %2247 = vmatprep.subr.bf16.mxu0 %v3204_v52  ;;  %2329 = vmatprep.subr.bf16.mxu1 %v3207_v53 }
  0xfb   : > { %2248 = vmatpush1.bf16.msra.mxu0 %v3202_v54  ;;  %2330 = vmatpush1.bf16.msra.mxu1 %v3205_v55 }
  0xfc   : > { %2249 = vmatprep.subr.bf16.mxu0 %v3210_v56  ;;  %2331 = vmatprep.subr.bf16.mxu1 %v3213_v57 }
  0xff   : > { %2250 = vmatpush1.bf16.msra.mxu0 %v3208_v58  ;;  %2332 = vmatpush1.bf16.msra.mxu1 %v3211_v59 }
 0x100   : > { %2251 = vmatprep.subr.bf16.mxu0 %v3216_v60  ;;  %2333 = vmatprep.subr.bf16.mxu1 %v3219_v61 }
 0x103   : > { %2252 = vmatpush1.bf16.msra.mxu0 %v3214_v62  ;;  %2334 = vmatpush1.bf16.msra.mxu1 %v3217_v63 }
 0x104   : > { %2253 = vmatprep.subr.bf16.mxu0 %v3222_v0  ;;  %2335 = vmatprep.subr.bf16.mxu1 %v3225_v1  ;;  %v449_v0 = vld [vmem:[%s3358_s16] sm:$0xff] }
 0x105   : > { %v453_v1 = vld [vmem:[%s3358_s16 + $0x20] sm:$0xff] }
 0x107   : > { %2254 = vmatpush1.bf16.msra.mxu0 %v3220_v2  ;;  %2336 = vmatpush1.bf16.msra.mxu1 %v3223_v3  ;;  %v452_v2 = vld [vmem:[%s3358_s16 + $0x18] sm:$0xff] }
 0x108   : > { %2255 = vmatprep.subr.bf16.mxu0 %v3228_v4  ;;  %2337 = vmatprep.subr.bf16.mxu1 %v3231_v5  ;;  %v450_v4 = vld [vmem:[%s3358_s16 + $0x8] sm:$0xff] }
 0x10b   : > { %2256 = vmatpush1.bf16.msra.mxu0 %v3226_v7  ;;  %2338 = vmatpush1.bf16.msra.mxu1 %v3229_v8  ;;  %v454_v7 = vld [vmem:[%s3358_s16 + $0x28] sm:$0xff] }
 0x10c   : > { %2257 = vmatprep.subr.bf16.mxu0 %v3234_v9  ;;  %2339 = vmatprep.subr.bf16.mxu1 %v3237_v10  ;;  %v451_v9 = vld [vmem:[%s3358_s16 + $0x10] sm:$0xff] }
 0x10f   : > { %2258 = vmatpush1.bf16.msra.mxu0 %v3232_v11  ;;  %2340 = vmatpush1.bf16.msra.mxu1 %v3235_v12 }
 0x110   : > { %2259 = vmatprep.subr.bf16.mxu0 %v3240_v13  ;;  %2341 = vmatprep.subr.bf16.mxu1 %v3243_v14 }
 0x113   : > { %2260 = vmatpush1.bf16.msra.mxu0 %v3238_v16  ;;  %2342 = vmatpush1.bf16.msra.mxu1 %v3241_v17 }
 0x114   : > { %2270 = vmatprep.subr.bf16.mxu0 %v3246_v18  ;;  %2352 = vmatprep.subr.bf16.mxu1 %v3249_v19 }
 0x116   : > { %2262 = vmatmul.mubr.bf16.vlgmr.msra.gmra.mrb[8].mxu0 %v3567_v6  ;;  %2344 = vmatmul.mubr.bf16.vlgmr.msra.gmra.mrb[8].mxu1 %v3567_v6  ;;  %v3261_v6 = vld [vmem:[%s4278_s1 + $0x6ec] ss:$48 sps:$4 sm:$0xff]  }
 0x117   : > { %2271 = vmatpush1.bf16.msra.mxu0 %v3244_v20  ;;  %2353 = vmatpush1.bf16.msra.mxu1 %v3247_v21  ;;  %v459_v20 = vld [vmem:[%s3358_s16 + $0x50] sm:$0xff]  ;;  %v456_v21 = vld [vmem:[%s3358_s16 + $0x38] sm:$0xff] }
 0x118   : > { %2272 = vmatprep.subr.bf16.mxu0 %v3252_v22  ;;  %2354 = vmatprep.subr.bf16.mxu1 %v3255_v23  ;;  %v458_v22 = vld [vmem:[%s3358_s16 + $0x48] sm:$0xff]  ;;  %v460_v23 = vld [vmem:[%s3358_s16 + $0x58] sm:$0xff] }
 0x119   : > { %2302 = vmatprep.mubr.bf16.mxu0 %v3331_v15  ;;  %2384 = vmatprep.mubr.bf16.mxu1 %v3331_v15  ;;  %v3267_v15 = vld [vmem:[%s4278_s1 + $0x74c] ss:$48 sps:$4 sm:$0xff]  }
 0x11b   : > { %2273 = vmatpush1.bf16.msra.mxu0 %v3250_v24  ;;  %2355 = vmatpush1.bf16.msra.mxu1 %v3253_v25  ;;  %v455_v24 = vld [vmem:[%s3358_s16 + $0x30] sm:$0xff] }
 0x11c   : > { %2274 = vmatprep.subr.bf16.mxu0 %v3258_v26  ;;  %2356 = vmatprep.subr.bf16.mxu1 %v3261_v6 }
 0x11f   : > { %2275 = vmatpush1.bf16.msra.mxu0 %v3256_v27  ;;  %2357 = vmatpush1.bf16.msra.mxu1 %v3259_v49 }
 0x120   : > { %2276 = vmatprep.subr.bf16.mxu0 %v3264_v28  ;;  %2358 = vmatprep.subr.bf16.mxu1 %v3267_v15 }
 0x123   : > { %2277 = vmatpush1.bf16.msra.mxu0 %v3262_v29  ;;  %2359 = vmatpush1.bf16.msra.mxu1 %v3265_v30  ;;  %v457_v29 = vld [vmem:[%s3358_s16 + $0x40] sm:$0xff] }
 0x124   : > { %2278 = vmatprep.subr.bf16.mxu0 %v3270_v31  ;;  %2360 = vmatprep.subr.bf16.mxu1 %v3273_v32 }
 0x127   : > { %2279 = vmatpush1.bf16.msra.mxu0 %v3268_v33  ;;  %2361 = vmatpush1.bf16.msra.mxu1 %v3271_v34 }
 0x128   : > { %2280 = vmatprep.subr.bf16.mxu0 %v3276_v35  ;;  %2362 = vmatprep.subr.bf16.mxu1 %v3279_v36 }
 0x12b   : > { %2281 = vmatpush1.bf16.msra.mxu0 %v3274_v37  ;;  %2363 = vmatpush1.bf16.msra.mxu1 %v3277_v38 }
 0x12c   : > { %2282 = vmatprep.subr.bf16.mxu0 %v3282_v39  ;;  %2364 = vmatprep.subr.bf16.mxu1 %v3285_v40 }
 0x12f   : > { %2283 = vmatpush1.bf16.msra.mxu0 %v3280_v42  ;;  %2365 = vmatpush1.bf16.msra.mxu1 %v3283_v43 }
 0x130   : > { %2284 = vmatprep.subr.bf16.mxu0 %v3288_v44  ;;  %2366 = vmatprep.subr.bf16.mxu1 %v3291_v45 }
 0x133   : > { %2285 = vmatpush1.bf16.msra.mxu0 %v3286_v46  ;;  %2367 = vmatpush1.bf16.msra.mxu1 %v3289_v47 }
 0x136   : > { %2303 = vmatmul.mubr.bf16.vlgmr.msra.gmra.mrb[8].mxu0 %v3669_v41  ;;  %2385 = vmatmul.mubr.bf16.vlgmr.msra.gmra.mrb[8].mxu1 %v3669_v41 }
 0x149   : > { %v1976_v48 = vpop.f32.mrb[0].mxu0  ;;  %v2058_v50 = vpop.f32.mrb[0].mxu1 }
 0x14a   : > { %v1978_v51 = vpop.f32.mrb[1].mxu0  ;;  %v2060_v52 = vpop.f32.mrb[1].mxu1  ;;  %v2812_v3 = vadd.f32 %v1976_v48, %v449_v0  ;;  %v2814_v14 = vadd.f32 %v2058_v50, %v451_v9 }
 0x14b   : > { %v1980_v53 = vpop.f32.mrb[2].mxu0  ;;  %v2062_v54 = vpop.f32.mrb[2].mxu1  ;;  %v2815_v8 = vadd.f32 %v2060_v52, %v452_v2  ;;  %v2813_v10 = vadd.f32 %v1978_v51, %v450_v4 }
 0x14c   : > { %v1981_v55 = vpop.f32.mrb[3].mxu0  ;;  %v2063_v56 = vpop.f32.mrb[3].mxu1  ;;  %v2393_v11 = vmul.f32 0.5, %v2812_v3  ;;  %v2395_v19 = vmul.f32 0.5, %v2814_v14 }
 0x14d   : > { %v2405_v16 = vmul.f32 0.5, %v2815_v8  ;;  %v2394_v17 = vmul.f32 0.5, %v2813_v10  ;;  %v2433_v56 = vld [vmem:[#allocation3 + $0x8] sm:$0xff] }
 0x14e   : > { %3292 = vtanh.f32 %v2393_v11 }
 0x158   : > { %v3293_v28 = vpop.eup %3292 }
 0x159   : > { %v2399_v50 = vadd.f32 1.0, %v3293_v28 }
 0x1a9   : > { %v2140_v57 = vpop.f32.mrb[4].mxu0  ;;  %v2222_v58 = vpop.f32.mrb[4].mxu1 }
 0x1aa   : > { %v2142_v59 = vpop.f32.mrb[5].mxu0  ;;  %v2224_v60 = vpop.f32.mrb[5].mxu1  ;;  %v2816_v5 = vadd.f32 %v2140_v57, %v453_v1  ;;  %v2818_v35 = vadd.f32 %v2222_v58, %v455_v24  ;;  %v2432_v58 = vld [vmem:[#allocation3] sm:$0xff] }
 0x1ab   : > { %v2144_v61 = vpop.f32.mrb[6].mxu0  ;;  %v2226_v41 = vpop.f32.mrb[6].mxu1  ;;  %v2817_v12 = vadd.f32 %v2142_v59, %v454_v7  ;;  %v2819_v15 = vadd.f32 %v2224_v60, %v456_v21  ;;  %v2402_v60 = vmul.f32 0.5, %v2399_v50 }
 0x1ac   : > { %v2145_v62 = vpop.f32.mrb[7].mxu0  ;;  %v2227_v63 = vpop.f32.mrb[7].mxu1  ;;  %v2406_v13 = vmul.f32 0.5, %v2816_v5  ;;  %v2417_v46 = vmul.f32 0.5, %v2818_v35 }
 0x1ad   : > { %v2407_v18 = vmul.f32 0.5, %v2817_v12  ;;  %v2418_v44 = vmul.f32 0.5, %v2819_v15  ;;  %v2434_v63 = vld [vmem:[#allocation3 + $0x10] sm:$0xff] }
 0x1ae   : > { %3294 = vtanh.f32 %v2406_v13 }
 0x1af   : > { %3296 = vtanh.f32 %v2405_v16 }
 0x1b0   : > { %3298 = vtanh.f32 %v2394_v17 }
 0x1b1   : > { %3300 = vtanh.f32 %v2407_v18 }
 0x1b2   : > { %3302 = vtanh.f32 %v2395_v19 }
 0x1b8   : > { %v3295_v34 = vpop.eup %3294 }
 0x1b9   : > { %v3297_v38 = vpop.eup %3296  ;;  %v2412_v43 = vadd.f32 1.0, %v3295_v34 }
 0x1ba   : > { %v3299_v39 = vpop.eup %3298  ;;  %v2411_v45 = vadd.f32 1.0, %v3297_v38 }
 0x1bb   : > { %v3301_v42 = vpop.eup %3300  ;;  %v2400_v48 = vadd.f32 1.0, %v3299_v39  ;;  %v2415_v53 = vmul.f32 0.5, %v2412_v43 }
 0x1bc   : > { %v3303_v47 = vpop.eup %3302  ;;  %v2413_v51 = vadd.f32 1.0, %v3301_v42  ;;  %v2414_v55 = vmul.f32 0.5, %v2411_v45 }
 0x1bd   : > { %v2401_v54 = vadd.f32 1.0, %v3303_v47  ;;  %v2403_v57 = vmul.f32 0.5, %v2400_v48  ;;  %v2436_v62 = vmul.f32 %v2433_v56, %v2415_v53 }
 0x1be   : > { %v2416_v61 = vmul.f32 0.5, %v2413_v51  ;;  %v2435_v2 = vmul.f32 %v2432_v58, %v2414_v55 }
 0x1bf   : > { %v2404_v1 = vmul.f32 0.5, %v2401_v54 }
 0x1c0   : > { %v2437_v7 = vmul.f32 %v2434_v63, %v2416_v61 }
 0x209   : > { %v2304_v25 = vpop.f32.mrb[8].mxu0  ;;  %v2386_v26 = vpop.f32.mrb[8].mxu1 }
 0x20a   : > { %v2822_v6 = vadd.f32 %v2386_v26, %v459_v20  ;;  %v2306_v27 = vpop.f32.mrb[9].mxu0  ;;  %v2388_v49 = vpop.f32.mrb[9].mxu1  ;;  %v2820_v40 = vadd.f32 %v2304_v25, %v457_v29 }
 0x20b   : > { %v2821_v30 = vadd.f32 %v2306_v27, %v458_v22  ;;  %v2823_v31 = vadd.f32 %v2388_v49, %v460_v23  ;;  %v2308_v32 = vpop.f32.mrb[10].mxu0  ;;  %v2390_v33 = vpop.f32.mrb[10].mxu1 }
 0x20c   : > { %3304 = vtanh.f32 %v2822_v6  ;;  %v2309_v36 = vpop.f32.mrb[11].mxu0  ;;  %v2391_v37 = vpop.f32.mrb[11].mxu1  ;;  %v2419_v52 = vmul.f32 0.5, %v2820_v40 }
 0x20d   : > { %3306 = vtanh.f32 %v2821_v30 }
 0x20e   : > { %3308 = vtanh.f32 %v2823_v31 }
 0x20f   : > { %3310 = vtanh.f32 %v2418_v44 }
 0x210   : > { %3312 = vtanh.f32 %v2417_v46 }
 0x211   : > { %3314 = vtanh.f32 %v2419_v52 }
 0x216   : > { %v3305_v59 = vpop.eup %3304 }
 0x217   : > { %v3307_v41 = vpop.eup %3306  ;;  %v2439_v0 = vmul.f32 %v3305_v59, %v2403_v57 }
 0x218   : > { %v2438_v3 = vmul.f32 %v3307_v41, %v2402_v60  ;;  %v3309_v4 = vpop.eup %3308 }
 0x219   : > { %v2442_v5 = vadd.f32 %v2439_v0, %v2436_v62  ;;  %v2440_v9 = vmul.f32 %v3309_v4, %v2404_v1  ;;  %v3311_v11 = vpop.eup %3310 }
 0x21a   : > { %v2441_v8 = vadd.f32 %v2438_v3, %v2435_v2  ;;  %v3313_v12 = vpop.eup %3312  ;;  %v2424_v14 = vadd.f32 1.0, %v3311_v11 }
 0x21b   : > { %3316 = vtanh.f32 %v2442_v5  ;;  %2451 = vst [vmem:[#allocation3 + $0x8] sm:$0xff] %v2442_v5  ;;  %v2443_v10 = vadd.f32 %v2440_v9, %v2437_v7  ;;  %v3315_v13 = vpop.eup %3314  ;;  %v2423_v16 = vadd.f32 1.0, %v3313_v12 }
 0x21c   : > { %3318 = vtanh.f32 %v2441_v8  ;;  %2450 = vst [vmem:[#allocation3] sm:$0xff] %v2441_v8  ;;  %v2425_v17 = vadd.f32 1.0, %v3315_v13  ;;  %v2427_v18 = vmul.f32 0.5, %v2424_v14 }
 0x21d   : > { %3320 = vtanh.f32 %v2443_v10  ;;  %2452 = vst [vmem:[#allocation3 + $0x10] sm:$0xff] %v2443_v10  ;;  %v2426_v20 = vmul.f32 0.5, %v2423_v16 }
 0x21e   : > { %v2428_v23 = vmul.f32 0.5, %v2425_v17 }
 0x225   : > { %v3317_v19 = vpop.eup %3316 }
 0x226   : > { %v3319_v21 = vpop.eup %3318  ;;  %v2448_v22 = vmul.f32 %v3317_v19, %v2427_v18 }
 0x227   : > { %v2447_v24 = vmul.f32 %v3319_v21, %v2426_v20  ;;  %v3321_v25 = vpop.eup %3320 }
 0x228   : > { %2454 = vst [vmem:[#allocation2 + $0x8] sm:$0xff] %v2448_v22  ;;  %2457 = vst [vmem:[%s3363_s19 + $0x8] sm:$0xff] %v2448_v22  ;;  %v2449_v26 = vmul.f32 %v3321_v25, %v2428_v23 }
 0x229   : > { %2453 = vst [vmem:[#allocation2] sm:$0xff] %v2447_v24  ;;  %2456 = vst [vmem:[%s3363_s19] sm:$0xff] %v2447_v24 }
 0x22a   : > { %2455 = vst [vmem:[#allocation2 + $0x10] sm:$0xff] %v2449_v26  ;;  %2458 = vst [vmem:[%s3363_s19 + $0x10] sm:$0xff] %v2449_v26 }
 0x22b PF: > { %s12_s9 = sadd.s32 1, %s3328_s9  }
 0x22c   : > { %p9_p5 = scmp.ge.s32.totalorder %s12_s9, 5  }
 0x22e   :  { %11 = sbr.rel (!%p9_p5) target bundleno = 1 (0x1), region = 62 }

</bundles_post_ra>
